<compile_context>
chip_gen: v5e
topology: v5e:2x2
jax: 0.10.0
libtpu: 0.0.40
codegen_flags: <defaults>
</compile_context>

<pallas_src>
import math
import jax
import jax.numpy as jnp
from jax import lax
from jax.experimental import pallas as pl
from jax.experimental.pallas import tpu as pltpu

HIGHEST = lax.Precision.HIGHEST

# ---------------- hyper-params (small, consistent with the module) ----------
INPUT_SIZE = 4
HIDDEN = 32
NUM_LAYERS = 2
OUTPUT_SIZE = 3
DROPOUT = 0.0          # inference: nn.Dropout is identity
KSIZE = 4
PAD = 1

BATCH = 2
SEQ = 8


# ---------------------------- Pallas kernel ---------------------------------
def make_kernel(B, T, Cin, H, out_size, num_layers, ksize, pad):
    L1 = T + 2 * pad - ksize + 1          # conv1 output length
    L2 = L1 + 2 * pad - ksize + 1         # conv2 output length

    def kernel(c1_ref, w1_ref, b1_ref, w2_ref, b2_ref,
               wih_ref, whh_ref, bl_ref, wfc_ref, bfc_ref, out_ref):
        f32 = jnp.float32

        # ---- conv1: single im2col matmul, batch folded into sublanes -------
        out1 = jnp.dot(c1_ref[...], w1_ref[...], precision=HIGHEST,
                       preferred_element_type=f32) + b1_ref[...]      # (B*L1, H)

        # ---- conv2: zero-pad in registers, im2col, single matmul -----------
        zrow = jnp.zeros((pad, H), f32)
        cols2 = []
        for b in range(B):
            o1b = out1[b * L1:(b + 1) * L1, :]                        # (L1, H)
            p1b = jnp.concatenate([zrow, o1b, zrow], axis=0)          # (L1+2p, H)
            cols2.append(jnp.concatenate(
                [p1b[k:k + L2, :] for k in range(ksize)], axis=1))    # (L2, K*H)
        cols2 = jnp.concatenate(cols2, axis=0)                        # (B*L2, K*H)
        out2 = jnp.dot(cols2, w2_ref[...], precision=HIGHEST,
                       preferred_element_type=f32) + b2_ref[...]      # (B*L2, H)

        # ---- reorder once to time-major (t, b) rows (off the critical path)
        xs = jnp.concatenate(
            [out2[b * L2 + t:b * L2 + t + 1, :]
             for t in range(L2) for b in range(B)], axis=0)           # (L2*B, H)

        # ---- stacked LSTM, fully unrolled, fused 4H-lane gates --------------
        h = jnp.zeros((B, H), f32)
        for layer in range(num_layers):
            w_ih = wih_ref[layer]                                     # (H, 4H)
            w_hh = whh_ref[layer]                                     # (H, 4H)
            bias = bl_ref[layer]                                      # (1, 4H)

            # input projection for ALL timesteps in one MXU op (hoisted out
            # of the serial recurrence)
            pre = jnp.dot(xs, w_ih, precision=HIGHEST,
                          preferred_element_type=f32) + bias          # (L2*B, 4H)

            h = jnp.zeros((B, H), f32)
            c = jnp.zeros((B, H), f32)
            outs = []
            for t in range(L2):
                gates = pre[t * B:(t + 1) * B, :] + jnp.dot(
                    h, w_hh, precision=HIGHEST,
                    preferred_element_type=f32)                       # (B, 4H)
                sg = jax.nn.sigmoid(gates)         # one EUP pass over 128 lanes
                i_g = sg[:, 0:H]
                f_g = sg[:, H:2 * H]
                o_g = sg[:, 3 * H:4 * H]
                g_g = jnp.tanh(gates[:, 2 * H:3 * H])
                c = f_g * c + i_g * g_g
                h = o_g * jnp.tanh(c)
                if layer + 1 < num_layers:         # last layer: only h_T needed
                    outs.append(h)
            if layer + 1 < num_layers:
                xs = jnp.concatenate(outs, axis=0)                    # (L2*B, H)

        # dropout(p) at inference is identity
        out = jnp.dot(h, wfc_ref[...], precision=HIGHEST,
                      preferred_element_type=f32) + bfc_ref[...]
        out_ref[...] = out.astype(out_ref.dtype)

    return kernel, L1, L2


def lstm_deepconv_forward(x, params):
    """x: (B, T, C_in) float32 -> (B, OUTPUT_SIZE) float32."""
    B, T, Cin = x.shape
    H = HIDDEN
    kernel, L1, L2 = make_kernel(B, T, Cin, H, OUTPUT_SIZE, NUM_LAYERS, KSIZE, PAD)

    # --- host-side layout plumbing: im2col conv1 input, flatten weights -----
    x_pad = jnp.pad(x.astype(jnp.float32), ((0, 0), (PAD, PAD), (0, 0)))
    cols1 = jnp.concatenate([x_pad[:, k:k + L1, :] for k in range(KSIZE)],
                            axis=2).reshape(B * L1, KSIZE * Cin)      # (B*L1, K*Cin)

    w1 = jnp.transpose(params["conv1_w"], (2, 1, 0)).reshape(KSIZE * Cin, H)
    b1 = params["conv1_b"].reshape(1, H)
    w2 = jnp.transpose(params["conv2_w"], (2, 1, 0)).reshape(KSIZE * H, H)
    b2 = params["conv2_b"].reshape(1, H)
    # LSTM: PyTorch (L, 4H, H), gate row order [i,f,g,o] -> (L, H, 4H) lane-major
    wih = jnp.transpose(params["w_ih"], (0, 2, 1))
    whh = jnp.transpose(params["w_hh"], (0, 2, 1))
    blstm = (params["b_ih"] + params["b_hh"]).reshape(NUM_LAYERS, 1, 4 * H)
    wfc = params["fc_w"].T                                            # (H, out)
    bfc = params["fc_b"].reshape(1, OUTPUT_SIZE)

    vmem = pl.BlockSpec(memory_space=pltpu.MemorySpace.VMEM)
    return pl.pallas_call(
        kernel,
        out_shape=jax.ShapeDtypeStruct((B, OUTPUT_SIZE), jnp.float32),
        in_specs=[vmem] * 10,
        out_specs=vmem,
    )(cols1, w1, b1, w2, b2, wih, whh, blstm, wfc, bfc)


# ----------------------- deterministic parameter init -----------------------
def init_params(key):
    ks = jax.random.split(key, 12)

    def u(k, shape, fan_in):
        bound = 1.0 / math.sqrt(fan_in)
        return jax.random.uniform(k, shape, jnp.float32, -bound, bound)

    H = HIDDEN
    return {
        "conv1_w": u(ks[0], (H, INPUT_SIZE, KSIZE), INPUT_SIZE * KSIZE),
        "conv1_b": u(ks[1], (H,), INPUT_SIZE * KSIZE),
        "conv2_w": u(ks[2], (H, H, KSIZE), H * KSIZE),
        "conv2_b": u(ks[3], (H,), H * KSIZE),
        "w_ih": u(ks[4], (NUM_LAYERS, 4 * H, H), H),
        "w_hh": u(ks[5], (NUM_LAYERS, 4 * H, H), H),
        "b_ih": u(ks[6], (NUM_LAYERS, 4 * H), H),
        "b_hh": u(ks[7], (NUM_LAYERS, 4 * H), H),
        "fc_w": u(ks[8], (OUTPUT_SIZE, H), H),
        "fc_b": u(ks[9], (OUTPUT_SIZE,), H),
    }


# ------------------------------ pure-JAX reference --------------------------
def reference_forward(x, params):
    H = HIDDEN
    dn = ("NCH", "OIH", "NCH")
    y = jnp.transpose(x, (0, 2, 1))                                   # (B, C, T)
    y = lax.conv_general_dilated(y, params["conv1_w"], (1,), [(PAD, PAD)],
                                 dimension_numbers=dn, precision=HIGHEST)
    y = y + params["conv1_b"][None, :, None]
    y = lax.conv_general_dilated(y, params["conv2_w"], (1,), [(PAD, PAD)],
                                 dimension_numbers=dn, precision=HIGHEST)
    y = y + params["conv2_b"][None, :, None]
    seq = jnp.transpose(y, (0, 2, 1))                                 # (B, L2, H)

    B = seq.shape[0]
    for l in range(NUM_LAYERS):
        w_ih, w_hh = params["w_ih"][l], params["w_hh"][l]
        bias = params["b_ih"][l] + params["b_hh"][l]
        h = jnp.zeros((B, H), jnp.float32)
        c = jnp.zeros((B, H), jnp.float32)
        outs = []
        for t in range(seq.shape[1]):
            gates = (jnp.dot(seq[:, t, :], w_ih.T, precision=HIGHEST)
                     + jnp.dot(h, w_hh.T, precision=HIGHEST) + bias)
            i, f, g, o = jnp.split(gates, 4, axis=-1)
            i, f, o = jax.nn.sigmoid(i), jax.nn.sigmoid(f), jax.nn.sigmoid(o)
            g = jnp.tanh(g)
            c = f * c + i * g
            h = o * jnp.tanh(c)
            outs.append(h)
        seq = jnp.stack(outs, axis=1)
    last = seq[:, -1, :]
    return jnp.dot(last, params["fc_w"].T, precision=HIGHEST) + params["fc_b"]


# ---------------------------------- main -------------------------------------
if __name__ == "__main__":
    key = jax.random.PRNGKey(0)
    k_x, k_p = jax.random.split(key)
    x = jax.random.normal(k_x, (BATCH, SEQ, INPUT_SIZE), jnp.float32)
    params = init_params(k_p)

    fwd = jax.jit(lstm_deepconv_forward)
    out = fwd(x, params)
    out = jax.block_until_ready(out)

    ref = jax.block_until_ready(reference_forward(x, params))
    assert out.shape == (BATCH, OUTPUT_SIZE)
    assert jnp.allclose(out, ref, atol=5e-3, rtol=5e-3), (
        f"mismatch: max abs diff {jnp.max(jnp.abs(out - ref))}")

    print("KERNEL_OK")
</pallas_src>

<mosaic_0001>
module attributes {stable_mosaic.version = 11 : i64} {
  func.func @kernel(%arg0: memref<14x16xf32, #tpu.memory_space<vmem>>, %arg1: memref<16x32xf32, #tpu.memory_space<vmem>>, %arg2: memref<1x32xf32, #tpu.memory_space<vmem>>, %arg3: memref<128x32xf32, #tpu.memory_space<vmem>>, %arg4: memref<1x32xf32, #tpu.memory_space<vmem>>, %arg5: memref<2x32x128xf32, #tpu.memory_space<vmem>>, %arg6: memref<2x32x128xf32, #tpu.memory_space<vmem>>, %arg7: memref<2x1x128xf32, #tpu.memory_space<vmem>>, %arg8: memref<32x3xf32, #tpu.memory_space<vmem>>, %arg9: memref<1x3xf32, #tpu.memory_space<vmem>>, %arg10: memref<2x3xf32, #tpu.memory_space<vmem>>) attributes {dimension_semantics = [], scalar_prefetch = 0 : i64, scratch_operands = 0 : i64, tpu.core_type = #tpu.core_type<tc>} {
    %c0 = arith.constant 0 : index
    %c0_0 = arith.constant 0 : index
    %0 = vector.load %arg0[%c0, %c0_0] : memref<14x16xf32, #tpu.memory_space<vmem>>, vector<14x16xf32>
    %c0_1 = arith.constant 0 : index
    %c0_2 = arith.constant 0 : index
    %1 = vector.load %arg1[%c0_1, %c0_2] : memref<16x32xf32, #tpu.memory_space<vmem>>, vector<16x32xf32>
    %cst = arith.constant dense<0.000000e+00> : vector<14x32xf32>
    %2 = tpu.matmul %0, %1, %cst {dimension_numbers = #tpu.dot_dimension_numbers<[1], [0], [0], [1], [0, 0, 1, 1], [], []>, precision = #tpu.contract_precision<fp32>} : vector<14x16xf32>, vector<16x32xf32>, vector<14x32xf32> -> vector<14x32xf32>
    %c0_3 = arith.constant 0 : index
    %c0_4 = arith.constant 0 : index
    %3 = vector.load %arg2[%c0_3, %c0_4] : memref<1x32xf32, #tpu.memory_space<vmem>>, vector<1x32xf32>
    %4 = vector.broadcast %3 : vector<1x32xf32> to vector<14x32xf32>
    %5 = arith.addf %2, %4 : vector<14x32xf32>
    %cst_5 = arith.constant 0.000000e+00 : f32
    %6 = vector.broadcast %cst_5 : f32 to vector<1x32xf32>
    %7 = vector.extract_strided_slice %5 {offsets = [0, 0], sizes = [7, 32], strides = [1, 1]} : vector<14x32xf32> to vector<7x32xf32>
    %8 = tpu.concatenate %6, %7, %6 in 0 : vector<1x32xf32>, vector<7x32xf32>, vector<1x32xf32> -> vector<9x32xf32>
    %9 = vector.extract_strided_slice %8 {offsets = [0, 0], sizes = [6, 32], strides = [1, 1]} : vector<9x32xf32> to vector<6x32xf32>
    %10 = vector.extract_strided_slice %8 {offsets = [1, 0], sizes = [6, 32], strides = [1, 1]} : vector<9x32xf32> to vector<6x32xf32>
    %11 = vector.extract_strided_slice %8 {offsets = [2, 0], sizes = [6, 32], strides = [1, 1]} : vector<9x32xf32> to vector<6x32xf32>
    %12 = vector.extract_strided_slice %8 {offsets = [3, 0], sizes = [6, 32], strides = [1, 1]} : vector<9x32xf32> to vector<6x32xf32>
    %13 = tpu.concatenate %9, %10, %11, %12 in 1 : vector<6x32xf32>, vector<6x32xf32>, vector<6x32xf32>, vector<6x32xf32> -> vector<6x128xf32>
    %14 = vector.extract_strided_slice %5 {offsets = [7, 0], sizes = [7, 32], strides = [1, 1]} : vector<14x32xf32> to vector<7x32xf32>
    %15 = tpu.concatenate %6, %14, %6 in 0 : vector<1x32xf32>, vector<7x32xf32>, vector<1x32xf32> -> vector<9x32xf32>
    %16 = vector.extract_strided_slice %15 {offsets = [0, 0], sizes = [6, 32], strides = [1, 1]} : vector<9x32xf32> to vector<6x32xf32>
    %17 = vector.extract_strided_slice %15 {offsets = [1, 0], sizes = [6, 32], strides = [1, 1]} : vector<9x32xf32> to vector<6x32xf32>
    %18 = vector.extract_strided_slice %15 {offsets = [2, 0], sizes = [6, 32], strides = [1, 1]} : vector<9x32xf32> to vector<6x32xf32>
    %19 = vector.extract_strided_slice %15 {offsets = [3, 0], sizes = [6, 32], strides = [1, 1]} : vector<9x32xf32> to vector<6x32xf32>
    %20 = tpu.concatenate %16, %17, %18, %19 in 1 : vector<6x32xf32>, vector<6x32xf32>, vector<6x32xf32>, vector<6x32xf32> -> vector<6x128xf32>
    %21 = tpu.concatenate %13, %20 in 0 : vector<6x128xf32>, vector<6x128xf32> -> vector<12x128xf32>
    %c0_6 = arith.constant 0 : index
    %c0_7 = arith.constant 0 : index
    %22 = vector.load %arg3[%c0_6, %c0_7] : memref<128x32xf32, #tpu.memory_space<vmem>>, vector<128x32xf32>
    %cst_8 = arith.constant dense<0.000000e+00> : vector<12x32xf32>
    %23 = tpu.matmul %21, %22, %cst_8 {dimension_numbers = #tpu.dot_dimension_numbers<[1], [0], [0], [1], [0, 0, 1, 1], [], []>, precision = #tpu.contract_precision<fp32>} : vector<12x128xf32>, vector<128x32xf32>, vector<12x32xf32> -> vector<12x32xf32>
    %c0_9 = arith.constant 0 : index
    %c0_10 = arith.constant 0 : index
    %24 = vector.load %arg4[%c0_9, %c0_10] : memref<1x32xf32, #tpu.memory_space<vmem>>, vector<1x32xf32>
    %25 = vector.broadcast %24 : vector<1x32xf32> to vector<12x32xf32>
    %26 = arith.addf %23, %25 : vector<12x32xf32>
    %27 = vector.extract_strided_slice %26 {offsets = [0, 0], sizes = [1, 32], strides = [1, 1]} : vector<12x32xf32> to vector<1x32xf32>
    %28 = vector.extract_strided_slice %26 {offsets = [6, 0], sizes = [1, 32], strides = [1, 1]} : vector<12x32xf32> to vector<1x32xf32>
    %29 = vector.extract_strided_slice %26 {offsets = [1, 0], sizes = [1, 32], strides = [1, 1]} : vector<12x32xf32> to vector<1x32xf32>
    %30 = vector.extract_strided_slice %26 {offsets = [7, 0], sizes = [1, 32], strides = [1, 1]} : vector<12x32xf32> to vector<1x32xf32>
    %31 = vector.extract_strided_slice %26 {offsets = [2, 0], sizes = [1, 32], strides = [1, 1]} : vector<12x32xf32> to vector<1x32xf32>
    %32 = vector.extract_strided_slice %26 {offsets = [8, 0], sizes = [1, 32], strides = [1, 1]} : vector<12x32xf32> to vector<1x32xf32>
    %33 = vector.extract_strided_slice %26 {offsets = [3, 0], sizes = [1, 32], strides = [1, 1]} : vector<12x32xf32> to vector<1x32xf32>
    %34 = vector.extract_strided_slice %26 {offsets = [9, 0], sizes = [1, 32], strides = [1, 1]} : vector<12x32xf32> to vector<1x32xf32>
    %35 = vector.extract_strided_slice %26 {offsets = [4, 0], sizes = [1, 32], strides = [1, 1]} : vector<12x32xf32> to vector<1x32xf32>
    %36 = vector.extract_strided_slice %26 {offsets = [10, 0], sizes = [1, 32], strides = [1, 1]} : vector<12x32xf32> to vector<1x32xf32>
    %37 = vector.extract_strided_slice %26 {offsets = [5, 0], sizes = [1, 32], strides = [1, 1]} : vector<12x32xf32> to vector<1x32xf32>
    %38 = vector.extract_strided_slice %26 {offsets = [11, 0], sizes = [1, 32], strides = [1, 1]} : vector<12x32xf32> to vector<1x32xf32>
    %39 = tpu.concatenate %27, %28, %29, %30, %31, %32, %33, %34, %35, %36, %37, %38 in 0 : vector<1x32xf32>, vector<1x32xf32>, vector<1x32xf32>, vector<1x32xf32>, vector<1x32xf32>, vector<1x32xf32>, vector<1x32xf32>, vector<1x32xf32>, vector<1x32xf32>, vector<1x32xf32>, vector<1x32xf32>, vector<1x32xf32> -> vector<12x32xf32>
    %c0_11 = arith.constant 0 : index
    %c0_12 = arith.constant 0 : index
    %c0_13 = arith.constant 0 : index
    %40 = vector.load %arg5[%c0_11, %c0_12, %c0_13] : memref<2x32x128xf32, #tpu.memory_space<vmem>>, vector<1x32x128xf32>
    %41 = vector.shape_cast %40 : vector<1x32x128xf32> to vector<32x128xf32>
    %c0_14 = arith.constant 0 : index
    %c0_15 = arith.constant 0 : index
    %c0_16 = arith.constant 0 : index
    %42 = vector.load %arg6[%c0_14, %c0_15, %c0_16] : memref<2x32x128xf32, #tpu.memory_space<vmem>>, vector<1x32x128xf32>
    %43 = vector.shape_cast %42 : vector<1x32x128xf32> to vector<32x128xf32>
    %c0_17 = arith.constant 0 : index
    %c0_18 = arith.constant 0 : index
    %c0_19 = arith.constant 0 : index
    %44 = vector.load %arg7[%c0_17, %c0_18, %c0_19] : memref<2x1x128xf32, #tpu.memory_space<vmem>>, vector<1x1x128xf32>
    %45 = vector.shape_cast %44 : vector<1x1x128xf32> to vector<1x128xf32>
    %cst_20 = arith.constant dense<0.000000e+00> : vector<12x128xf32>
    %46 = tpu.matmul %39, %41, %cst_20 {dimension_numbers = #tpu.dot_dimension_numbers<[1], [0], [0], [1], [0, 0, 1, 1], [], []>, precision = #tpu.contract_precision<fp32>} : vector<12x32xf32>, vector<32x128xf32>, vector<12x128xf32> -> vector<12x128xf32>
    %47 = vector.broadcast %45 : vector<1x128xf32> to vector<12x128xf32>
    %48 = arith.addf %46, %47 : vector<12x128xf32>
    %cst_21 = arith.constant 0.000000e+00 : f32
    %49 = vector.broadcast %cst_21 : f32 to vector<2x32xf32>
    %cst_22 = arith.constant 0.000000e+00 : f32
    %50 = vector.broadcast %cst_22 : f32 to vector<2x32xf32>
    %51 = vector.extract_strided_slice %48 {offsets = [0, 0], sizes = [2, 128], strides = [1, 1]} : vector<12x128xf32> to vector<2x128xf32>
    %cst_23 = arith.constant dense<0.000000e+00> : vector<2x128xf32>
    %52 = tpu.matmul %49, %43, %cst_23 {dimension_numbers = #tpu.dot_dimension_numbers<[1], [0], [0], [1], [0, 0, 1, 1], [], []>, precision = #tpu.contract_precision<fp32>} : vector<2x32xf32>, vector<32x128xf32>, vector<2x128xf32> -> vector<2x128xf32>
    %53 = arith.addf %51, %52 : vector<2x128xf32>
    %54 = arith.negf %53 : vector<2x128xf32>
    %55 = math.exp %54 : vector<2x128xf32>
    %cst_24 = arith.constant 1.000000e+00 : f32
    %56 = vector.broadcast %cst_24 : f32 to vector<2x128xf32>
    %57 = arith.addf %56, %55 : vector<2x128xf32>
    %58 = arith.divf %56, %57 : vector<2x128xf32>
    %59 = vector.extract_strided_slice %58 {offsets = [0, 0], sizes = [2, 32], strides = [1, 1]} : vector<2x128xf32> to vector<2x32xf32>
    %60 = vector.extract_strided_slice %58 {offsets = [0, 32], sizes = [2, 32], strides = [1, 1]} : vector<2x128xf32> to vector<2x32xf32>
    %61 = vector.extract_strided_slice %58 {offsets = [0, 96], sizes = [2, 32], strides = [1, 1]} : vector<2x128xf32> to vector<2x32xf32>
    %62 = vector.extract_strided_slice %53 {offsets = [0, 64], sizes = [2, 32], strides = [1, 1]} : vector<2x128xf32> to vector<2x32xf32>
    %63 = math.tanh %62 : vector<2x32xf32>
    %64 = arith.mulf %60, %50 : vector<2x32xf32>
    %65 = arith.mulf %59, %63 : vector<2x32xf32>
    %66 = arith.addf %64, %65 : vector<2x32xf32>
    %67 = math.tanh %66 : vector<2x32xf32>
    %68 = arith.mulf %61, %67 : vector<2x32xf32>
    %69 = vector.extract_strided_slice %48 {offsets = [2, 0], sizes = [2, 128], strides = [1, 1]} : vector<12x128xf32> to vector<2x128xf32>
    %cst_25 = arith.constant dense<0.000000e+00> : vector<2x128xf32>
    %70 = tpu.matmul %68, %43, %cst_25 {dimension_numbers = #tpu.dot_dimension_numbers<[1], [0], [0], [1], [0, 0, 1, 1], [], []>, precision = #tpu.contract_precision<fp32>} : vector<2x32xf32>, vector<32x128xf32>, vector<2x128xf32> -> vector<2x128xf32>
    %71 = arith.addf %69, %70 : vector<2x128xf32>
    %72 = arith.negf %71 : vector<2x128xf32>
    %73 = math.exp %72 : vector<2x128xf32>
    %cst_26 = arith.constant 1.000000e+00 : f32
    %74 = vector.broadcast %cst_26 : f32 to vector<2x128xf32>
    %75 = arith.addf %74, %73 : vector<2x128xf32>
    %76 = arith.divf %74, %75 : vector<2x128xf32>
    %77 = vector.extract_strided_slice %76 {offsets = [0, 0], sizes = [2, 32], strides = [1, 1]} : vector<2x128xf32> to vector<2x32xf32>
    %78 = vector.extract_strided_slice %76 {offsets = [0, 32], sizes = [2, 32], strides = [1, 1]} : vector<2x128xf32> to vector<2x32xf32>
    %79 = vector.extract_strided_slice %76 {offsets = [0, 96], sizes = [2, 32], strides = [1, 1]} : vector<2x128xf32> to vector<2x32xf32>
    %80 = vector.extract_strided_slice %71 {offsets = [0, 64], sizes = [2, 32], strides = [1, 1]} : vector<2x128xf32> to vector<2x32xf32>
    %81 = math.tanh %80 : vector<2x32xf32>
    %82 = arith.mulf %78, %66 : vector<2x32xf32>
    %83 = arith.mulf %77, %81 : vector<2x32xf32>
    %84 = arith.addf %82, %83 : vector<2x32xf32>
    %85 = math.tanh %84 : vector<2x32xf32>
    %86 = arith.mulf %79, %85 : vector<2x32xf32>
    %87 = vector.extract_strided_slice %48 {offsets = [4, 0], sizes = [2, 128], strides = [1, 1]} : vector<12x128xf32> to vector<2x128xf32>
    %cst_27 = arith.constant dense<0.000000e+00> : vector<2x128xf32>
    %88 = tpu.matmul %86, %43, %cst_27 {dimension_numbers = #tpu.dot_dimension_numbers<[1], [0], [0], [1], [0, 0, 1, 1], [], []>, precision = #tpu.contract_precision<fp32>} : vector<2x32xf32>, vector<32x128xf32>, vector<2x128xf32> -> vector<2x128xf32>
    %89 = arith.addf %87, %88 : vector<2x128xf32>
    %90 = arith.negf %89 : vector<2x128xf32>
    %91 = math.exp %90 : vector<2x128xf32>
    %cst_28 = arith.constant 1.000000e+00 : f32
    %92 = vector.broadcast %cst_28 : f32 to vector<2x128xf32>
    %93 = arith.addf %92, %91 : vector<2x128xf32>
    %94 = arith.divf %92, %93 : vector<2x128xf32>
    %95 = vector.extract_strided_slice %94 {offsets = [0, 0], sizes = [2, 32], strides = [1, 1]} : vector<2x128xf32> to vector<2x32xf32>
    %96 = vector.extract_strided_slice %94 {offsets = [0, 32], sizes = [2, 32], strides = [1, 1]} : vector<2x128xf32> to vector<2x32xf32>
    %97 = vector.extract_strided_slice %94 {offsets = [0, 96], sizes = [2, 32], strides = [1, 1]} : vector<2x128xf32> to vector<2x32xf32>
    %98 = vector.extract_strided_slice %89 {offsets = [0, 64], sizes = [2, 32], strides = [1, 1]} : vector<2x128xf32> to vector<2x32xf32>
    %99 = math.tanh %98 : vector<2x32xf32>
    %100 = arith.mulf %96, %84 : vector<2x32xf32>
    %101 = arith.mulf %95, %99 : vector<2x32xf32>
    %102 = arith.addf %100, %101 : vector<2x32xf32>
    %103 = math.tanh %102 : vector<2x32xf32>
    %104 = arith.mulf %97, %103 : vector<2x32xf32>
    %105 = vector.extract_strided_slice %48 {offsets = [6, 0], sizes = [2, 128], strides = [1, 1]} : vector<12x128xf32> to vector<2x128xf32>
    %cst_29 = arith.constant dense<0.000000e+00> : vector<2x128xf32>
    %106 = tpu.matmul %104, %43, %cst_29 {dimension_numbers = #tpu.dot_dimension_numbers<[1], [0], [0], [1], [0, 0, 1, 1], [], []>, precision = #tpu.contract_precision<fp32>} : vector<2x32xf32>, vector<32x128xf32>, vector<2x128xf32> -> vector<2x128xf32>
    %107 = arith.addf %105, %106 : vector<2x128xf32>
    %108 = arith.negf %107 : vector<2x128xf32>
    %109 = math.exp %108 : vector<2x128xf32>
    %cst_30 = arith.constant 1.000000e+00 : f32
    %110 = vector.broadcast %cst_30 : f32 to vector<2x128xf32>
    %111 = arith.addf %110, %109 : vector<2x128xf32>
    %112 = arith.divf %110, %111 : vector<2x128xf32>
    %113 = vector.extract_strided_slice %112 {offsets = [0, 0], sizes = [2, 32], strides = [1, 1]} : vector<2x128xf32> to vector<2x32xf32>
    %114 = vector.extract_strided_slice %112 {offsets = [0, 32], sizes = [2, 32], strides = [1, 1]} : vector<2x128xf32> to vector<2x32xf32>
    %115 = vector.extract_strided_slice %112 {offsets = [0, 96], sizes = [2, 32], strides = [1, 1]} : vector<2x128xf32> to vector<2x32xf32>
    %116 = vector.extract_strided_slice %107 {offsets = [0, 64], sizes = [2, 32], strides = [1, 1]} : vector<2x128xf32> to vector<2x32xf32>
    %117 = math.tanh %116 : vector<2x32xf32>
    %118 = arith.mulf %114, %102 : vector<2x32xf32>
    %119 = arith.mulf %113, %117 : vector<2x32xf32>
    %120 = arith.addf %118, %119 : vector<2x32xf32>
    %121 = math.tanh %120 : vector<2x32xf32>
    %122 = arith.mulf %115, %121 : vector<2x32xf32>
    %123 = vector.extract_strided_slice %48 {offsets = [8, 0], sizes = [2, 128], strides = [1, 1]} : vector<12x128xf32> to vector<2x128xf32>
    %cst_31 = arith.constant dense<0.000000e+00> : vector<2x128xf32>
    %124 = tpu.matmul %122, %43, %cst_31 {dimension_numbers = #tpu.dot_dimension_numbers<[1], [0], [0], [1], [0, 0, 1, 1], [], []>, precision = #tpu.contract_precision<fp32>} : vector<2x32xf32>, vector<32x128xf32>, vector<2x128xf32> -> vector<2x128xf32>
    %125 = arith.addf %123, %124 : vector<2x128xf32>
    %126 = arith.negf %125 : vector<2x128xf32>
    %127 = math.exp %126 : vector<2x128xf32>
    %cst_32 = arith.constant 1.000000e+00 : f32
    %128 = vector.broadcast %cst_32 : f32 to vector<2x128xf32>
    %129 = arith.addf %128, %127 : vector<2x128xf32>
    %130 = arith.divf %128, %129 : vector<2x128xf32>
    %131 = vector.extract_strided_slice %130 {offsets = [0, 0], sizes = [2, 32], strides = [1, 1]} : vector<2x128xf32> to vector<2x32xf32>
    %132 = vector.extract_strided_slice %130 {offsets = [0, 32], sizes = [2, 32], strides = [1, 1]} : vector<2x128xf32> to vector<2x32xf32>
    %133 = vector.extract_strided_slice %130 {offsets = [0, 96], sizes = [2, 32], strides = [1, 1]} : vector<2x128xf32> to vector<2x32xf32>
    %134 = vector.extract_strided_slice %125 {offsets = [0, 64], sizes = [2, 32], strides = [1, 1]} : vector<2x128xf32> to vector<2x32xf32>
    %135 = math.tanh %134 : vector<2x32xf32>
    %136 = arith.mulf %132, %120 : vector<2x32xf32>
    %137 = arith.mulf %131, %135 : vector<2x32xf32>
    %138 = arith.addf %136, %137 : vector<2x32xf32>
    %139 = math.tanh %138 : vector<2x32xf32>
    %140 = arith.mulf %133, %139 : vector<2x32xf32>
    %141 = vector.extract_strided_slice %48 {offsets = [10, 0], sizes = [2, 128], strides = [1, 1]} : vector<12x128xf32> to vector<2x128xf32>
    %cst_33 = arith.constant dense<0.000000e+00> : vector<2x128xf32>
    %142 = tpu.matmul %140, %43, %cst_33 {dimension_numbers = #tpu.dot_dimension_numbers<[1], [0], [0], [1], [0, 0, 1, 1], [], []>, precision = #tpu.contract_precision<fp32>} : vector<2x32xf32>, vector<32x128xf32>, vector<2x128xf32> -> vector<2x128xf32>
    %143 = arith.addf %141, %142 : vector<2x128xf32>
    %144 = arith.negf %143 : vector<2x128xf32>
    %145 = math.exp %144 : vector<2x128xf32>
    %cst_34 = arith.constant 1.000000e+00 : f32
    %146 = vector.broadcast %cst_34 : f32 to vector<2x128xf32>
    %147 = arith.addf %146, %145 : vector<2x128xf32>
    %148 = arith.divf %146, %147 : vector<2x128xf32>
    %149 = vector.extract_strided_slice %148 {offsets = [0, 0], sizes = [2, 32], strides = [1, 1]} : vector<2x128xf32> to vector<2x32xf32>
    %150 = vector.extract_strided_slice %148 {offsets = [0, 32], sizes = [2, 32], strides = [1, 1]} : vector<2x128xf32> to vector<2x32xf32>
    %151 = vector.extract_strided_slice %148 {offsets = [0, 96], sizes = [2, 32], strides = [1, 1]} : vector<2x128xf32> to vector<2x32xf32>
    %152 = vector.extract_strided_slice %143 {offsets = [0, 64], sizes = [2, 32], strides = [1, 1]} : vector<2x128xf32> to vector<2x32xf32>
    %153 = math.tanh %152 : vector<2x32xf32>
    %154 = arith.mulf %150, %138 : vector<2x32xf32>
    %155 = arith.mulf %149, %153 : vector<2x32xf32>
    %156 = arith.addf %154, %155 : vector<2x32xf32>
    %157 = math.tanh %156 : vector<2x32xf32>
    %158 = arith.mulf %151, %157 : vector<2x32xf32>
    %159 = tpu.concatenate %68, %86, %104, %122, %140, %158 in 0 : vector<2x32xf32>, vector<2x32xf32>, vector<2x32xf32>, vector<2x32xf32>, vector<2x32xf32>, vector<2x32xf32> -> vector<12x32xf32>
    %c1 = arith.constant 1 : index
    %c0_35 = arith.constant 0 : index
    %c0_36 = arith.constant 0 : index
    %160 = vector.load %arg5[%c1, %c0_35, %c0_36] : memref<2x32x128xf32, #tpu.memory_space<vmem>>, vector<1x32x128xf32>
    %161 = vector.shape_cast %160 : vector<1x32x128xf32> to vector<32x128xf32>
    %c1_37 = arith.constant 1 : index
    %c0_38 = arith.constant 0 : index
    %c0_39 = arith.constant 0 : index
    %162 = vector.load %arg6[%c1_37, %c0_38, %c0_39] : memref<2x32x128xf32, #tpu.memory_space<vmem>>, vector<1x32x128xf32>
    %163 = vector.shape_cast %162 : vector<1x32x128xf32> to vector<32x128xf32>
    %c1_40 = arith.constant 1 : index
    %c0_41 = arith.constant 0 : index
    %c0_42 = arith.constant 0 : index
    %164 = vector.load %arg7[%c1_40, %c0_41, %c0_42] : memref<2x1x128xf32, #tpu.memory_space<vmem>>, vector<1x1x128xf32>
    %165 = vector.shape_cast %164 : vector<1x1x128xf32> to vector<1x128xf32>
    %cst_43 = arith.constant dense<0.000000e+00> : vector<12x128xf32>
    %166 = tpu.matmul %159, %161, %cst_43 {dimension_numbers = #tpu.dot_dimension_numbers<[1], [0], [0], [1], [0, 0, 1, 1], [], []>, precision = #tpu.contract_precision<fp32>} : vector<12x32xf32>, vector<32x128xf32>, vector<12x128xf32> -> vector<12x128xf32>
    %167 = vector.broadcast %165 : vector<1x128xf32> to vector<12x128xf32>
    %168 = arith.addf %166, %167 : vector<12x128xf32>
    %cst_44 = arith.constant 0.000000e+00 : f32
    %169 = vector.broadcast %cst_44 : f32 to vector<2x32xf32>
    %cst_45 = arith.constant 0.000000e+00 : f32
    %170 = vector.broadcast %cst_45 : f32 to vector<2x32xf32>
    %171 = vector.extract_strided_slice %168 {offsets = [0, 0], sizes = [2, 128], strides = [1, 1]} : vector<12x128xf32> to vector<2x128xf32>
    %cst_46 = arith.constant dense<0.000000e+00> : vector<2x128xf32>
    %172 = tpu.matmul %169, %163, %cst_46 {dimension_numbers = #tpu.dot_dimension_numbers<[1], [0], [0], [1], [0, 0, 1, 1], [], []>, precision = #tpu.contract_precision<fp32>} : vector<2x32xf32>, vector<32x128xf32>, vector<2x128xf32> -> vector<2x128xf32>
    %173 = arith.addf %171, %172 : vector<2x128xf32>
    %174 = arith.negf %173 : vector<2x128xf32>
    %175 = math.exp %174 : vector<2x128xf32>
    %cst_47 = arith.constant 1.000000e+00 : f32
    %176 = vector.broadcast %cst_47 : f32 to vector<2x128xf32>
    %177 = arith.addf %176, %175 : vector<2x128xf32>
    %178 = arith.divf %176, %177 : vector<2x128xf32>
    %179 = vector.extract_strided_slice %178 {offsets = [0, 0], sizes = [2, 32], strides = [1, 1]} : vector<2x128xf32> to vector<2x32xf32>
    %180 = vector.extract_strided_slice %178 {offsets = [0, 32], sizes = [2, 32], strides = [1, 1]} : vector<2x128xf32> to vector<2x32xf32>
    %181 = vector.extract_strided_slice %178 {offsets = [0, 96], sizes = [2, 32], strides = [1, 1]} : vector<2x128xf32> to vector<2x32xf32>
    %182 = vector.extract_strided_slice %173 {offsets = [0, 64], sizes = [2, 32], strides = [1, 1]} : vector<2x128xf32> to vector<2x32xf32>
    %183 = math.tanh %182 : vector<2x32xf32>
    %184 = arith.mulf %180, %170 : vector<2x32xf32>
    %185 = arith.mulf %179, %183 : vector<2x32xf32>
    %186 = arith.addf %184, %185 : vector<2x32xf32>
    %187 = math.tanh %186 : vector<2x32xf32>
    %188 = arith.mulf %181, %187 : vector<2x32xf32>
    %189 = vector.extract_strided_slice %168 {offsets = [2, 0], sizes = [2, 128], strides = [1, 1]} : vector<12x128xf32> to vector<2x128xf32>
    %cst_48 = arith.constant dense<0.000000e+00> : vector<2x128xf32>
    %190 = tpu.matmul %188, %163, %cst_48 {dimension_numbers = #tpu.dot_dimension_numbers<[1], [0], [0], [1], [0, 0, 1, 1], [], []>, precision = #tpu.contract_precision<fp32>} : vector<2x32xf32>, vector<32x128xf32>, vector<2x128xf32> -> vector<2x128xf32>
    %191 = arith.addf %189, %190 : vector<2x128xf32>
    %192 = arith.negf %191 : vector<2x128xf32>
    %193 = math.exp %192 : vector<2x128xf32>
    %cst_49 = arith.constant 1.000000e+00 : f32
    %194 = vector.broadcast %cst_49 : f32 to vector<2x128xf32>
    %195 = arith.addf %194, %193 : vector<2x128xf32>
    %196 = arith.divf %194, %195 : vector<2x128xf32>
    %197 = vector.extract_strided_slice %196 {offsets = [0, 0], sizes = [2, 32], strides = [1, 1]} : vector<2x128xf32> to vector<2x32xf32>
    %198 = vector.extract_strided_slice %196 {offsets = [0, 32], sizes = [2, 32], strides = [1, 1]} : vector<2x128xf32> to vector<2x32xf32>
    %199 = vector.extract_strided_slice %196 {offsets = [0, 96], sizes = [2, 32], strides = [1, 1]} : vector<2x128xf32> to vector<2x32xf32>
    %200 = vector.extract_strided_slice %191 {offsets = [0, 64], sizes = [2, 32], strides = [1, 1]} : vector<2x128xf32> to vector<2x32xf32>
    %201 = math.tanh %200 : vector<2x32xf32>
    %202 = arith.mulf %198, %186 : vector<2x32xf32>
    %203 = arith.mulf %197, %201 : vector<2x32xf32>
    %204 = arith.addf %202, %203 : vector<2x32xf32>
    %205 = math.tanh %204 : vector<2x32xf32>
    %206 = arith.mulf %199, %205 : vector<2x32xf32>
    %207 = vector.extract_strided_slice %168 {offsets = [4, 0], sizes = [2, 128], strides = [1, 1]} : vector<12x128xf32> to vector<2x128xf32>
    %cst_50 = arith.constant dense<0.000000e+00> : vector<2x128xf32>
    %208 = tpu.matmul %206, %163, %cst_50 {dimension_numbers = #tpu.dot_dimension_numbers<[1], [0], [0], [1], [0, 0, 1, 1], [], []>, precision = #tpu.contract_precision<fp32>} : vector<2x32xf32>, vector<32x128xf32>, vector<2x128xf32> -> vector<2x128xf32>
    %209 = arith.addf %207, %208 : vector<2x128xf32>
    %210 = arith.negf %209 : vector<2x128xf32>
    %211 = math.exp %210 : vector<2x128xf32>
    %cst_51 = arith.constant 1.000000e+00 : f32
    %212 = vector.broadcast %cst_51 : f32 to vector<2x128xf32>
    %213 = arith.addf %212, %211 : vector<2x128xf32>
    %214 = arith.divf %212, %213 : vector<2x128xf32>
    %215 = vector.extract_strided_slice %214 {offsets = [0, 0], sizes = [2, 32], strides = [1, 1]} : vector<2x128xf32> to vector<2x32xf32>
    %216 = vector.extract_strided_slice %214 {offsets = [0, 32], sizes = [2, 32], strides = [1, 1]} : vector<2x128xf32> to vector<2x32xf32>
    %217 = vector.extract_strided_slice %214 {offsets = [0, 96], sizes = [2, 32], strides = [1, 1]} : vector<2x128xf32> to vector<2x32xf32>
    %218 = vector.extract_strided_slice %209 {offsets = [0, 64], sizes = [2, 32], strides = [1, 1]} : vector<2x128xf32> to vector<2x32xf32>
    %219 = math.tanh %218 : vector<2x32xf32>
    %220 = arith.mulf %216, %204 : vector<2x32xf32>
    %221 = arith.mulf %215, %219 : vector<2x32xf32>
    %222 = arith.addf %220, %221 : vector<2x32xf32>
    %223 = math.tanh %222 : vector<2x32xf32>
    %224 = arith.mulf %217, %223 : vector<2x32xf32>
    %225 = vector.extract_strided_slice %168 {offsets = [6, 0], sizes = [2, 128], strides = [1, 1]} : vector<12x128xf32> to vector<2x128xf32>
    %cst_52 = arith.constant dense<0.000000e+00> : vector<2x128xf32>
    %226 = tpu.matmul %224, %163, %cst_52 {dimension_numbers = #tpu.dot_dimension_numbers<[1], [0], [0], [1], [0, 0, 1, 1], [], []>, precision = #tpu.contract_precision<fp32>} : vector<2x32xf32>, vector<32x128xf32>, vector<2x128xf32> -> vector<2x128xf32>
    %227 = arith.addf %225, %226 : vector<2x128xf32>
    %228 = arith.negf %227 : vector<2x128xf32>
    %229 = math.exp %228 : vector<2x128xf32>
    %cst_53 = arith.constant 1.000000e+00 : f32
    %230 = vector.broadcast %cst_53 : f32 to vector<2x128xf32>
    %231 = arith.addf %230, %229 : vector<2x128xf32>
    %232 = arith.divf %230, %231 : vector<2x128xf32>
    %233 = vector.extract_strided_slice %232 {offsets = [0, 0], sizes = [2, 32], strides = [1, 1]} : vector<2x128xf32> to vector<2x32xf32>
    %234 = vector.extract_strided_slice %232 {offsets = [0, 32], sizes = [2, 32], strides = [1, 1]} : vector<2x128xf32> to vector<2x32xf32>
    %235 = vector.extract_strided_slice %232 {offsets = [0, 96], sizes = [2, 32], strides = [1, 1]} : vector<2x128xf32> to vector<2x32xf32>
    %236 = vector.extract_strided_slice %227 {offsets = [0, 64], sizes = [2, 32], strides = [1, 1]} : vector<2x128xf32> to vector<2x32xf32>
    %237 = math.tanh %236 : vector<2x32xf32>
    %238 = arith.mulf %234, %222 : vector<2x32xf32>
    %239 = arith.mulf %233, %237 : vector<2x32xf32>
    %240 = arith.addf %238, %239 : vector<2x32xf32>
    %241 = math.tanh %240 : vector<2x32xf32>
    %242 = arith.mulf %235, %241 : vector<2x32xf32>
    %243 = vector.extract_strided_slice %168 {offsets = [8, 0], sizes = [2, 128], strides = [1, 1]} : vector<12x128xf32> to vector<2x128xf32>
    %cst_54 = arith.constant dense<0.000000e+00> : vector<2x128xf32>
    %244 = tpu.matmul %242, %163, %cst_54 {dimension_numbers = #tpu.dot_dimension_numbers<[1], [0], [0], [1], [0, 0, 1, 1], [], []>, precision = #tpu.contract_precision<fp32>} : vector<2x32xf32>, vector<32x128xf32>, vector<2x128xf32> -> vector<2x128xf32>
    %245 = arith.addf %243, %244 : vector<2x128xf32>
    %246 = arith.negf %245 : vector<2x128xf32>
    %247 = math.exp %246 : vector<2x128xf32>
    %cst_55 = arith.constant 1.000000e+00 : f32
    %248 = vector.broadcast %cst_55 : f32 to vector<2x128xf32>
    %249 = arith.addf %248, %247 : vector<2x128xf32>
    %250 = arith.divf %248, %249 : vector<2x128xf32>
    %251 = vector.extract_strided_slice %250 {offsets = [0, 0], sizes = [2, 32], strides = [1, 1]} : vector<2x128xf32> to vector<2x32xf32>
    %252 = vector.extract_strided_slice %250 {offsets = [0, 32], sizes = [2, 32], strides = [1, 1]} : vector<2x128xf32> to vector<2x32xf32>
    %253 = vector.extract_strided_slice %250 {offsets = [0, 96], sizes = [2, 32], strides = [1, 1]} : vector<2x128xf32> to vector<2x32xf32>
    %254 = vector.extract_strided_slice %245 {offsets = [0, 64], sizes = [2, 32], strides = [1, 1]} : vector<2x128xf32> to vector<2x32xf32>
    %255 = math.tanh %254 : vector<2x32xf32>
    %256 = arith.mulf %252, %240 : vector<2x32xf32>
    %257 = arith.mulf %251, %255 : vector<2x32xf32>
    %258 = arith.addf %256, %257 : vector<2x32xf32>
    %259 = math.tanh %258 : vector<2x32xf32>
    %260 = arith.mulf %253, %259 : vector<2x32xf32>
    %261 = vector.extract_strided_slice %168 {offsets = [10, 0], sizes = [2, 128], strides = [1, 1]} : vector<12x128xf32> to vector<2x128xf32>
    %cst_56 = arith.constant dense<0.000000e+00> : vector<2x128xf32>
    %262 = tpu.matmul %260, %163, %cst_56 {dimension_numbers = #tpu.dot_dimension_numbers<[1], [0], [0], [1], [0, 0, 1, 1], [], []>, precision = #tpu.contract_precision<fp32>} : vector<2x32xf32>, vector<32x128xf32>, vector<2x128xf32> -> vector<2x128xf32>
    %263 = arith.addf %261, %262 : vector<2x128xf32>
    %264 = arith.negf %263 : vector<2x128xf32>
    %265 = math.exp %264 : vector<2x128xf32>
    %cst_57 = arith.constant 1.000000e+00 : f32
    %266 = vector.broadcast %cst_57 : f32 to vector<2x128xf32>
    %267 = arith.addf %266, %265 : vector<2x128xf32>
    %268 = arith.divf %266, %267 : vector<2x128xf32>
    %269 = vector.extract_strided_slice %268 {offsets = [0, 0], sizes = [2, 32], strides = [1, 1]} : vector<2x128xf32> to vector<2x32xf32>
    %270 = vector.extract_strided_slice %268 {offsets = [0, 32], sizes = [2, 32], strides = [1, 1]} : vector<2x128xf32> to vector<2x32xf32>
    %271 = vector.extract_strided_slice %268 {offsets = [0, 96], sizes = [2, 32], strides = [1, 1]} : vector<2x128xf32> to vector<2x32xf32>
    %272 = vector.extract_strided_slice %263 {offsets = [0, 64], sizes = [2, 32], strides = [1, 1]} : vector<2x128xf32> to vector<2x32xf32>
    %273 = math.tanh %272 : vector<2x32xf32>
    %274 = arith.mulf %270, %258 : vector<2x32xf32>
    %275 = arith.mulf %269, %273 : vector<2x32xf32>
    %276 = arith.addf %274, %275 : vector<2x32xf32>
    %277 = math.tanh %276 : vector<2x32xf32>
    %278 = arith.mulf %271, %277 : vector<2x32xf32>
    %c0_58 = arith.constant 0 : index
    %c0_59 = arith.constant 0 : index
    %279 = vector.load %arg8[%c0_58, %c0_59] : memref<32x3xf32, #tpu.memory_space<vmem>>, vector<32x3xf32>
    %cst_60 = arith.constant dense<0.000000e+00> : vector<2x3xf32>
    %280 = tpu.matmul %278, %279, %cst_60 {dimension_numbers = #tpu.dot_dimension_numbers<[1], [0], [0], [1], [0, 0, 1, 1], [], []>, precision = #tpu.contract_precision<fp32>} : vector<2x32xf32>, vector<32x3xf32>, vector<2x3xf32> -> vector<2x3xf32>
    %c0_61 = arith.constant 0 : index
    %c0_62 = arith.constant 0 : index
    %281 = vector.load %arg9[%c0_61, %c0_62] : memref<1x3xf32, #tpu.memory_space<vmem>>, vector<1x3xf32>
    %282 = vector.broadcast %281 : vector<1x3xf32> to vector<2x3xf32>
    %283 = arith.addf %280, %282 : vector<2x3xf32>
    %c0_63 = arith.constant 0 : index
    %c0_64 = arith.constant 0 : index
    %284 = vector.load %arg10[%c0_63, %c0_64] : memref<2x3xf32, #tpu.memory_space<vmem>>, vector<2x3xf32>
    tpu.vector_store %arg10[%c0_63, %c0_64], %283 {strides = array<i32>} : memref<2x3xf32, #tpu.memory_space<vmem>>, vector<2x3xf32>,
    return
  }
}

</mosaic_0001>

<bundles_post_ra>
// kernel: lstm_deepconv_forward.1
= control target key start
LH: loop header
LB: loop body
LE: loop exit
PB: predicated region body
PF: predicated region fallthrough
CT: control target
= control target key end

     0   :  { %vm44_vm0 = vcmask 130048   ;;  %s5338_s0 = inlined_call_operand.vmem [shape: f32[14,16], index: 0, kind: input, shape index: {}]   ;;  %s5339_s1 = inlined_call_operand.vmem [shape: f32[16,32], index: 1, kind: input, shape index: {}]   ;;  %s5340_s2 = inlined_call_operand.vmem [shape: f32[1,32], index: 2, kind: input, shape index: {}]   ;;  %s5341_s3 = inlined_call_operand.vmem [shape: f32[128,32], index: 3, kind: input, shape index: {}]   ;;  %s5342_s4 = inlined_call_operand.vmem [shape: f32[1,32], index: 4, kind: input, shape index: {}]   ;;  %s5343_s5 = inlined_call_operand.vmem [shape: f32[2,32,128], index: 5, kind: input, shape index: {}]   ;;  %s5344_s6 = inlined_call_operand.vmem [shape: f32[2,32,128], index: 6, kind: input, shape index: {}]   ;;  %s5345_s7 = inlined_call_operand.vmem [shape: f32[2,1,128], index: 7, kind: input, shape index: {}]   ;;  %s5346_s8 = inlined_call_operand.vmem [shape: f32[32,3], index: 8, kind: input, shape index: {}]   ;;  %s5347_s9 = inlined_call_operand.vmem [shape: f32[1,3], index: 9, kind: input, shape index: {}]   ;;  %s5348_s10 = inlined_call_operand.hbm [shape: f32[2,3], index: 10, kind: output, shape index: {}]  }
   0x1   :  { %v39_v0 = vld [vmem:[%s5339_s1 + $0x8] sm:$0xff]  ;;  %v38_v1 = vld [vmem:[%s5339_s1] sm:$0xff] }
   0x2   :  { %v36_v2 = vld [vmem:[%s5338_s0] sm:$0xff]  ;;  %v65_v3 = vand.u32 4294901760, %v39_v0  ;;  %v67_v4 = vand.u32 4294901760, %v38_v1  ;;  %v37_v6 = vld [vmem:[%s5338_s0 + $0x8] sm:$0x3f] }
   0x3   :  { %v46_v5 = vsel %vm44_vm0, %v36_v2, 0  ;;  %v49_v8 = vsel %vm44_vm0, %v37_v6, 0 }
   0x4   :  { %v69_v7 = vand.u32 4294901760, %v46_v5  ;;  %v101_v9 = vsub.f32 %v39_v0, %v65_v3  ;;  %66 = vmatpush.msra.mxu0 %v65_v3  ;;  %v107_v10 = vsub.f32 %v38_v1, %v67_v4  ;;  %167 = vmatpush.msra.mxu3 %v65_v3  ;;  %v77_v11 = vand.u32 4294901760, %v49_v8 }
   0x6   :  { %v70_v12 = vsub.f32 %v46_v5, %v69_v7 }
   0x7   :  { %15 = vsyncpa [#allocation3], 0  ;;  %137 = vmatpush.msra.mxu2 %v101_v9  ;;  %68 = vmatpush.msra.mxu0 %v67_v4  ;;  %v102_v13 = vand.u32 4294901760, %v101_v9  ;;  %v108_v14 = vand.u32 4294901760, %v107_v10  ;;  %v78_v15 = vsub.f32 %v49_v8, %v77_v11  ;;  %v4231_v26 = vld [vmem:[%s5340_s2] ss:$0 sm:$0xff] }
   0x8   :  { %169 = vmatpush.msra.mxu3 %v67_v4  ;;  %v71_v16 = vand.u32 4294901760, %v70_v12  ;;  %vm244_vm1 = vcmask 1040384   ;;  %s4358_s2 = smov 64   ;;  %s4359_s21 = smov 32   ;;  %vm270_vm2 = vcmask 1041408   ;;  %v4360_v58 = vmov 0.0  }
   0x9   :  { %140 = vmatpush.msra.mxu2 %v107_v10  ;;  %v103_v17 = vsub.f32 %v101_v9, %v102_v13  ;;  %200 = vmatpush.msrb.mxu0 %v102_v13  ;;  %v109_v18 = vsub.f32 %v107_v10, %v108_v14  ;;  %v79_v20 = vand.u32 4294901760, %v78_v15  ;;  %v258_v59 = vrot.slane %v4360_v58, 3  ;;  %s4361_s22 = smov 96   ;;  %v312_v5 = vld [vmem:[%s5341_s3 + $0x70] sm:$0xff]  ;;  %v311_v8 = vld [vmem:[%s5341_s3 + $0x68] sm:$0xff]  ;;  %s4362_s30 = smov [#allocation2]  }
   0xa   :  { %143 = vmatmul.f32.vlgmr.msra.gmra.mxu2 %v70_v12  ;;  %v72_v19 = vsub.f32 %v70_v12, %v71_v16  ;;  %173 = vmatmul.f32.vlgmr.msra.gmra.mxu3 %v71_v16  ;;  %vm256_vm3 = vcmask 1044480   ;;  %v310_v12 = vld [vmem:[%s5341_s3 + $0x60] sm:$0xff]  ;;  %vm263_vm4 = vcmask 261120   ;;  %vm265_vm5 = vcmask 523264   ;;  %s4194_s11 = sshll.u32 %s4362_s30, 4  ;;  %s4195_s11 = int_to_ptr.vmem [resolvable:$true] %s4194_s11 }
   0xb   :  { %v104_v21 = vand.u32 4294901760, %v103_v17  ;;  %v110_v22 = vand.u32 4294901760, %v109_v18  ;;  %204 = vmatpush.msrb.mxu0 %v108_v14  ;;  %v80_v24 = vsub.f32 %v78_v15, %v79_v20  ;;  %v4490_v16 = vand.u32 4294901760, %v310_v12  ;;  %v309_v17 = vld [vmem:[%s5341_s3 + $0x58] sm:$0xff] }
   0xc   :  { %v73_v23 = vand.u32 4294901760, %v72_v19  ;;  %vm267_vm6 = vcmask 785408   ;;  %vm296_vm7 = vcmask 1045504   ;;  %vm710_vm8 = vcmask 1042432  }
   0xd   :  { %105 = vmatpush.msra.mxu1 %v104_v21  ;;  %v81_v25 = vand.u32 4294901760, %v80_v24  ;;  %v4503_v21 = vsub.f32 %v310_v12, %v4490_v16  ;;  %vm712_vm9 = vcmask 1043456   ;;  %vm716_vm10 = vcmask 1046528  }
   0xe   :  { %74 = vmatmul.f32.vlgmr.msra.gmra.mxu0 %v73_v23  ;;  %v308_v23 = vld [vmem:[%s5341_s3 + $0x50] sm:$0xff] }
   0xf   :  { %111 = vmatpush.msra.mxu1 %v110_v22  ;;  %v4507_v22 = vand.u32 4294901760, %v309_v17 }
  0x10   :  { %113 = vmatmul.f32.vlgmr.msra.gmra.mxu1 %v69_v7 }
  0x11   :  { %229 = vmatpush.msrb.mxu1 %v65_v3  ;;  %v313_v3 = vld [vmem:[%s5341_s3 + $0x78] sm:$0xff] }
  0x12   :  { %148 = vmatmul.f32.gmra.mxu2 %v78_v15  ;;  %179 = vmatmul.f32.gmra.mxu3 %v79_v20 }
  0x13   :  { %231 = vmatpush.msrb.mxu1 %v67_v4  ;;  %v4456_v4 = vand.u32 4294901760, %v313_v3 }
  0x15   :  { %v4462_v6 = vsub.f32 %v313_v3, %v4456_v4  ;;  %319 = vmatpush.msrb.mxu2 %v4456_v4  ;;  %532 = vmatpush.msra.mxu1 %v4456_v4 }
  0x16   :  { %82 = vmatmul.f32.gmra.mxu0 %v81_v25 }
  0x17   :  { %v369_v9 = vand.u32 4294901760, %v4462_v6  ;;  %474 = vmatpush.msra.mxu0 %v4462_v6 }
  0x18   :  { %117 = vmatmul.f32.gmra.mxu1 %v77_v11 }
  0x19   :  { %v370_v13 = vsub.f32 %v4462_v6, %v369_v9 }
  0x1b   :  { %v371_v18 = vand.u32 4294901760, %v370_v13  ;;  %v301_v13 = vld [vmem:[%s5341_s3 + $0x18] sm:$0xff] }
  0x1d   :  { %372 = vmatpush.msrb.mxu3 %v371_v18 }
  0x1e   :  { %206 = vmatmul.f32.vlgmr.msrb.gmra.mxu0 %v69_v7 }
  0x20   :  { %233 = vmatmul.f32.vlgmr.msrb.gmra.mxu1 %v69_v7  ;;  %v4464_v7 = vand.u32 4294901760, %v312_v5 }
  0x22   :  { %v4473_v10 = vsub.f32 %v312_v5, %v4464_v7  ;;  %321 = vmatpush.msrb.mxu2 %v4464_v7  ;;  %534 = vmatpush.msra.mxu1 %v4464_v7 }
  0x24   :  { %v375_v14 = vand.u32 4294901760, %v4473_v10  ;;  %477 = vmatpush.msra.mxu0 %v4473_v10 }
  0x26   :  { %210 = vmatmul.f32.gmra.mxu0 %v77_v11  ;;  %v376_v19 = vsub.f32 %v4473_v10, %v375_v14 }
  0x28   :  { %237 = vmatmul.f32.gmra.mxu1 %v77_v11  ;;  %v4475_v11 = vand.u32 4294901760, %v311_v8  ;;  %v377_v24 = vand.u32 4294901760, %v376_v19  ;;  %v4626_v19 = vand.u32 4294901760, %v301_v13 }
  0x2a   :  { %v4488_v15 = vsub.f32 %v311_v8, %v4475_v11  ;;  %323 = vmatpush.msrb.mxu2 %v4475_v11  ;;  %536 = vmatpush.msra.mxu1 %v4475_v11 }
  0x2b   :  { %378 = vmatpush.msrb.mxu3 %v377_v24  ;;  %v300_v24 = vld [vmem:[%s5341_s3 + $0x10] sm:$0xff] }
  0x2c   :  { %v381_v20 = vand.u32 4294901760, %v4488_v15  ;;  %325 = vmatpush.msrb.mxu2 %v4490_v16  ;;  %480 = vmatpush.msra.mxu0 %v4488_v15 }
  0x2d   :  { %538 = vmatpush.msra.mxu1 %v4490_v16 }
  0x2e   :  { %v382_v25 = vsub.f32 %v4488_v15, %v381_v20  ;;  %483 = vmatpush.msra.mxu0 %v4503_v21  ;;  %327 = vmatpush.msrb.mxu2 %v4507_v22 }
  0x2f   :  { %540 = vmatpush.msra.mxu1 %v4507_v22 }
  0x8b   :  { %v75_v27 = vpop.f32.mrf.mxu0 }
  0x8c   :  { %v76_v29 = vadd.f32 %v4231_v26, %v75_v27  ;;  %v4517_v27 = vand.u32 4294901760, %v308_v23 }
  0x8d   :  { %v114_v28 = vpop.f32.mrf.mxu1  ;;  %v144_v30 = vpop.f32.mrf.mxu2 }
  0x8e   :  { %v115_v31 = vadd.f32 %v114_v28, %v76_v29  ;;  %v174_v33 = vpop.f32.mrf.mxu3  ;;  %v4521_v28 = vsub.f32 %v309_v17, %v4507_v22  ;;  %v307_v29 = vld [vmem:[%s5341_s3 + $0x48] sm:$0xff]  ;;  %329 = vmatpush.msrb.mxu2 %v4517_v27  ;;  %542 = vmatpush.msra.mxu1 %v4517_v27 }
  0x90   :  { %v145_v35 = vadd.f32 %v144_v30, %v115_v31  ;;  %v383_v30 = vand.u32 4294901760, %v382_v25  ;;  %486 = vmatpush.msra.mxu0 %v4521_v28 }
  0x92   :  { %v175_v37 = vadd.f32 %v174_v33, %v145_v35  ;;  %v4534_v33 = vand.u32 4294901760, %v307_v29  ;;  %v306_v35 = vld [vmem:[%s5341_s3 + $0x40] sm:$0xff]  ;;  %384 = vmatpush.msrb.mxu3 %v383_v30  ;;  %v4638_v30 = vand.u32 4294901760, %v300_v24 }
  0x93   :  { %v83_v32 = vpop.f32.mrf.mxu0 }
  0x94   :  { %v84_v36 = vadd.f32 %v4231_v26, %v83_v32  ;;  %v387_v26 = vand.u32 4294901760, %v4503_v21  ;;  %v4532_v32 = vsub.f32 %v308_v23, %v4517_v27  ;;  %331 = vmatpush.msrb.mxu2 %v4534_v33  ;;  %544 = vmatpush.msra.mxu1 %v4534_v33 }
  0x95   :  { %v118_v34 = vpop.f32.mrf.mxu1  ;;  %v149_v39 = vpop.f32.mrf.mxu2 }
  0x96   :  { %v119_v38 = vadd.f32 %v118_v34, %v84_v36  ;;  %v180_v45 = vpop.f32.mrf.mxu3  ;;  %v388_v31 = vsub.f32 %v4503_v21, %v387_v26  ;;  %v393_v34 = vand.u32 4294901760, %v4521_v28  ;;  %489 = vmatpush.msra.mxu0 %v4532_v32 }
  0x98   :  { %v150_v43 = vadd.f32 %v149_v39, %v119_v38  ;;  %v389_v36 = vand.u32 4294901760, %v388_v31  ;;  %v4544_v38 = vsub.f32 %v307_v29, %v4534_v33  ;;  %v4546_v39 = vand.u32 4294901760, %v306_v35 }
  0x99   :  { %v4636_v29 = vsub.f32 %v301_v13, %v4626_v19 }
  0x9a   :  { %v181_v47 = vadd.f32 %v180_v45, %v150_v43  ;;  %v303_v43 = vld [vmem:[%s5341_s3 + $0x28] sm:$0xff]  ;;  %390 = vmatpush.msrb.mxu3 %v389_v36  ;;  %v405_v45 = vand.u32 4294901760, %v4544_v38  ;;  %333 = vmatpush.msrb.mxu2 %v4546_v39 }
  0x9b   :  { %v207_v40 = vpop.f32.mrf.mxu0  ;;  %492 = vmatpush.msra.mxu0 %v4544_v38  ;;  %546 = vmatpush.msra.mxu1 %v4546_v39 }
  0x9c   :  { %v208_v41 = vadd.f32 %v207_v40, %v175_v37  ;;  %v399_v37 = vand.u32 4294901760, %v4532_v32  ;;  %v394_v40 = vsub.f32 %v4521_v28, %v393_v34 }
  0x9d   :  { %v234_v42 = vpop.f32.mrf.mxu1 }
  0x9e   :  { %v235_v44 = vadd.f32 %v234_v42, %v208_v41  ;;  %v305_v41 = vld [vmem:[%s5341_s3 + $0x38] sm:$0xff]  ;;  %v304_v42 = vld [vmem:[%s5341_s3 + $0x30] sm:$0xff] }
  0xa0   :  { %v242_v46 = vrot.slane %v235_v44, 7  ;;  %v271_v55 = vrot.slane %v235_v44, 6  ;;  %v400_v44 = vsub.f32 %v4532_v32, %v399_v37 }
  0xa2   :  { %v4434_v48 = vsel %vm244_vm1, 0.0, %v242_v46  ;;  %v4568_v46 = vsub.f32 %v306_v35, %v4546_v39  ;;  %v299_v35 = vld [vmem:[%s5341_s3 + $0x8] sm:$0xff] }
  0xa3   :  { %v211_v49 = vpop.f32.mrf.mxu0  ;;  %v251_v50 = vrot.slane %v4434_v48, 2  ;;  %v247_v51 = vrot.slane %v4434_v48, 1  ;;  %v257_v57 = vrot.slane %v4434_v48, 3 }
  0xa4   :  { %v212_v52 = vadd.f32 %v211_v49, %v181_v47  ;;  %v4570_v47 = vand.u32 4294901760, %v305_v41  ;;  %v395_v49 = vand.u32 4294901760, %v394_v40  ;;  %495 = vmatpush.msra.mxu0 %v4568_v46  ;;  %v441_v40 = vand.u32 4294901760, %v4636_v29 }
  0xa5   :  { %v238_v53 = vpop.f32.mrf.mxu1  ;;  %252 = vrot.lane.b32.xlu2 %v251_v50, %s4358_s2  ;;  %248 = vrot.lane.b32.xlu1 %v247_v51, %s4359_s21  ;;  %v259_v62 = vsel %vm256_vm3, %v257_v57, %v258_v59  ;;  %v4573_v50 = vand.u32 4294901760, %v304_v42  ;;  %v4575_v51 = vand.u32 4294901760, %v303_v43 }
  0xa6   :  { %v239_v54 = vadd.f32 %v238_v53, %v212_v52  ;;  %v401_v52 = vand.u32 4294901760, %v400_v44  ;;  %v406_v53 = vsub.f32 %v4544_v38, %v405_v45  ;;  %396 = vmatpush.msrb.mxu3 %v395_v49  ;;  %335 = vmatpush.msrb.mxu2 %v4570_v47  ;;  %v442_v49 = vsub.f32 %v4636_v29, %v441_v40 }
  0xa7   :  { %v4591_v57 = vsub.f32 %v303_v43, %v4575_v51  ;;  %548 = vmatpush.msra.mxu1 %v4570_v47  ;;  %v298_v43 = vld [vmem:[%s5341_s3] sm:$0xff] }
  0xa8   :  { %v272_v56 = vrot.slane %v239_v54, 6  ;;  %v411_v54 = vand.u32 4294901760, %v4568_v46  ;;  %402 = vmatpush.msrb.mxu3 %v401_v52  ;;  %337 = vmatpush.msrb.mxu2 %v4573_v50 }
  0xa9   :  { %550 = vmatpush.msra.mxu1 %v4573_v50 }
  0xaa   :  { %v273_v60 = vsel %vm270_vm2, %v271_v55, %v272_v56  ;;  %v4584_v55 = vsub.f32 %v305_v41, %v4570_v47  ;;  %v4588_v56 = vsub.f32 %v304_v42, %v4573_v50  ;;  %339 = vmatpush.msrb.mxu2 %v4575_v51  ;;  %v446_v41 = vsub.f32 %v300_v24, %v4638_v30 }
  0xab   :  { %v4444_v61 = vsel %vm244_vm1, 0.0, %v273_v60  ;;  %v412_v60 = vsub.f32 %v4568_v46, %v411_v54  ;;  %552 = vmatpush.msra.mxu1 %v4575_v51  ;;  %v4651_v42 = vand.u32 4294901760, %v299_v35  ;;  %v724_v46 = vld [vmem:[%s5343_s5 + $0x18] sm:$0xff] }
  0xac   :  { %v277_v63 = vrot.slane %v4444_v61, 1  ;;  %v285_v0 = vrot.slane %v4444_v61, 3  ;;  %v281_v2 = vrot.slane %v4444_v61, 2  ;;  %498 = vmatpush.msra.mxu0 %v4584_v55  ;;  %v447_v52 = vand.u32 4294901760, %v446_v41 }
  0xad   :  { %260 = vrot.lane.b32.xlu2 %v259_v62, %s4361_s22  ;;  %v417_v62 = vand.u32 4294901760, %v4584_v55 }
  0xae   :  { %278 = vrot.lane.b32.xlu0 %v277_v63, %s4359_s21  ;;  %v286_v1 = vsel %vm256_vm3, %v285_v0, %v258_v59  ;;  %v407_v59 = vand.u32 4294901760, %v406_v53  ;;  %v423_v63 = vand.u32 4294901760, %v4588_v56  ;;  %v429_v0 = vand.u32 4294901760, %v4591_v57  ;;  %501 = vmatpush.msra.mxu0 %v4588_v56 }
  0xaf   :  { %287 = vrot.lane.b32.xlu1 %v286_v1, %s4361_s22  ;;  %v302_v1 = vld [vmem:[%s5341_s3 + $0x20] sm:$0xff]  ;;  %v418_v3 = vsub.f32 %v4584_v55, %v417_v62  ;;  %v452_v53 = vsub.f32 %v299_v35, %v4651_v42  ;;  %v722_v55 = vld [vmem:[%s5343_s5 + $0x8] sm:$0xff]  ;;  %s4196_s3 = sshll.u32 %s5348_s10, 4  ;;  %s4197_s3 = int_to_ptr.hbm [resolvable:$true] %s4196_s3 }
  0xb0   :  { %v4609_v5 = vand.u32 4294901760, %v302_v1  ;;  %408 = vmatpush.msrb.mxu3 %v407_v59  ;;  %v424_v8 = vsub.f32 %v4588_v56, %v423_v63  ;;  %v430_v12 = vsub.f32 %v4591_v57, %v429_v0  ;;  %504 = vmatpush.msra.mxu0 %v4591_v57  ;;  %v348_v59 = vand.u32 4294901760, %v298_v43 }
  0xb1   :  { %v419_v17 = vand.u32 4294901760, %v418_v3 }
  0xb2   :  { %v4624_v18 = vsub.f32 %v302_v1, %v4609_v5  ;;  %v425_v23 = vand.u32 4294901760, %v424_v8  ;;  %341 = vmatpush.msrb.mxu2 %v4609_v5  ;;  %554 = vmatpush.msra.mxu1 %v4609_v5  ;;  %v431_v31 = vand.u32 4294901760, %v430_v12  ;;  %v448_v1 = vsub.f32 %v446_v41, %v447_v52 }
  0xb3   :  { %v458_v3 = vsub.f32 %v298_v43, %v348_v59 }
  0xb4   :  { %v435_v25 = vand.u32 4294901760, %v4624_v18  ;;  %343 = vmatpush.msrb.mxu2 %v4626_v19  ;;  %507 = vmatpush.msra.mxu0 %v4624_v18  ;;  %v449_v8 = vand.u32 4294901760, %v448_v1 }
  0xb5   :  { %556 = vmatpush.msra.mxu1 %v4626_v19  ;;  %v459_v13 = vand.u32 4294901760, %v458_v3 }
  0xb6   :  { %282 = vrot.lane.b32.xlu0 %v281_v2, %s4358_s2  ;;  %v413_v2 = vand.u32 4294901760, %v412_v60  ;;  %v436_v36 = vsub.f32 %v4624_v18, %v435_v25  ;;  %345 = vmatpush.msrb.mxu2 %v4638_v30  ;;  %v443_v60 = vand.u32 4294901760, %v442_v49 }
  0xb7   :  { %510 = vmatpush.msra.mxu0 %v4636_v29  ;;  %558 = vmatpush.msra.mxu1 %v4638_v30 }
  0xb8   :  { %414 = vmatpush.msrb.mxu3 %v413_v2  ;;  %v437_v44 = vand.u32 4294901760, %v436_v36  ;;  %347 = vmatpush.msrb.mxu2 %v4651_v42  ;;  %v453_v2 = vand.u32 4294901760, %v452_v53 }
  0xb9   :  { %513 = vmatpush.msra.mxu0 %v446_v41  ;;  %560 = vmatpush.msra.mxu1 %v4651_v42 }
  0xba   :  { %420 = vmatpush.msrb.mxu3 %v419_v17  ;;  %349 = vmatpush.msrb.mxu2 %v348_v59  ;;  %v454_v12 = vsub.f32 %v452_v53, %v453_v2 }
  0xbb   :  { %516 = vmatpush.msra.mxu0 %v452_v53  ;;  %562 = vmatpush.msra.mxu1 %v348_v59 }
  0xbc   :  { %426 = vmatpush.msrb.mxu3 %v425_v23  ;;  %579 = vmatpush.msra.mxu2 %v369_v9  ;;  %v455_v17 = vand.u32 4294901760, %v454_v12  ;;  %v460_v23 = vsub.f32 %v458_v3, %v459_v13 }
  0xbd   :  { %519 = vmatpush.msra.mxu0 %v458_v3 }
  0xbe   :  { %432 = vmatpush.msrb.mxu3 %v431_v31  ;;  %583 = vmatpush.msra.mxu2 %v375_v14  ;;  %v461_v24 = vand.u32 4294901760, %v460_v23 }
  0xc0   :  { %438 = vmatpush.msrb.mxu3 %v437_v44  ;;  %587 = vmatpush.msra.mxu2 %v381_v20 }
  0xc2   :  { %444 = vmatpush.msrb.mxu3 %v443_v60  ;;  %591 = vmatpush.msra.mxu2 %v387_v26 }
  0xc4   :  { %450 = vmatpush.msrb.mxu3 %v449_v8  ;;  %595 = vmatpush.msra.mxu2 %v393_v34 }
  0xc6   :  { %456 = vmatpush.msrb.mxu3 %v455_v17  ;;  %599 = vmatpush.msra.mxu2 %v399_v37 }
  0xc8   :  { %462 = vmatpush.msrb.mxu3 %v461_v24  ;;  %603 = vmatpush.msra.mxu2 %v405_v45 }
  0xca   :  { %650 = vmatpush.msra.mxu3 %v4456_v4  ;;  %607 = vmatpush.msra.mxu2 %v411_v54 }
  0xcc   :  { %652 = vmatpush.msra.mxu3 %v4464_v7  ;;  %611 = vmatpush.msra.mxu2 %v417_v62  ;;  %v755_v62 = vand.u32 4294901760, %v722_v55 }
  0xce   :  { %654 = vmatpush.msra.mxu3 %v4475_v11  ;;  %615 = vmatpush.msra.mxu2 %v423_v63  ;;  %v721_v63 = vld [vmem:[%s5343_s5] sm:$0xff]  ;;  %v801_v18 = vsub.f32 %v722_v55, %v755_v62 }
  0xd0   :  { %656 = vmatpush.msra.mxu3 %v4490_v16  ;;  %619 = vmatpush.msra.mxu2 %v429_v0  ;;  %v802_v31 = vand.u32 4294901760, %v801_v18 }
  0xd2   :  { %658 = vmatpush.msra.mxu3 %v4507_v22  ;;  %623 = vmatpush.msra.mxu2 %v435_v25 }
  0xd4   :  { %660 = vmatpush.msra.mxu3 %v4517_v27  ;;  %627 = vmatpush.msra.mxu2 %v441_v40  ;;  %v803_v40 = vsub.f32 %v801_v18, %v802_v31 }
  0xd6   :  { %662 = vmatpush.msra.mxu3 %v4534_v33  ;;  %631 = vmatpush.msra.mxu2 %v447_v52  ;;  %v804_v44 = vand.u32 4294901760, %v803_v40 }
  0xd8   :  { %664 = vmatpush.msra.mxu3 %v4546_v39  ;;  %635 = vmatpush.msra.mxu2 %v453_v2 }
  0xda   :  { %666 = vmatpush.msra.mxu3 %v4570_v47  ;;  %639 = vmatpush.msra.mxu2 %v459_v13  ;;  %v751_v47 = vand.u32 4294901760, %v724_v46 }
  0xdc   :  { %668 = vmatpush.msra.mxu3 %v4573_v50  ;;  %v723_v50 = vld [vmem:[%s5343_s5 + $0x10] sm:$0xff]  ;;  %752 = vmatpush.msrb.mxu0 %v751_v47 }
  0xdd   :  { %v753_v54 = vand.u32 4294901760, %v723_v50 }
  0xde   :  { %670 = vmatpush.msra.mxu3 %v4575_v51  ;;  %v789_v51 = vsub.f32 %v724_v46, %v751_v47  ;;  %v726_v46 = vld [vmem:[%s5344_s6 + $0x8] sm:$0xff] }
  0xdf   :  { %v795_v57 = vsub.f32 %v723_v50, %v753_v54  ;;  %754 = vmatpush.msrb.mxu0 %v753_v54 }
  0xe0   :  { %672 = vmatpush.msra.mxu3 %v4609_v5  ;;  %v790_v56 = vand.u32 4294901760, %v789_v51 }
  0xe1   :  { %v796_v5 = vand.u32 4294901760, %v795_v57  ;;  %756 = vmatpush.msrb.mxu0 %v755_v62 }
  0xe2   :  { %674 = vmatpush.msra.mxu3 %v4626_v19  ;;  %v791_v0 = vsub.f32 %v789_v51, %v790_v56  ;;  %v757_v19 = vand.u32 4294901760, %v721_v63 }
  0xe4   :  { %676 = vmatpush.msra.mxu3 %v4638_v30  ;;  %v792_v29 = vand.u32 4294901760, %v791_v0  ;;  %v797_v30 = vsub.f32 %v795_v57, %v796_v5  ;;  %v807_v35 = vsub.f32 %v721_v63, %v757_v19  ;;  %758 = vmatpush.msrb.mxu0 %v757_v19 }
  0xe6   :  { %678 = vmatpush.msra.mxu3 %v4651_v42  ;;  %793 = vmatpush.msrb.mxu1 %v792_v29  ;;  %v798_v36 = vand.u32 4294901760, %v797_v30  ;;  %v808_v41 = vand.u32 4294901760, %v807_v35  ;;  %v4232_v42 = vld [vmem:[%s5342_s4] ss:$0 sm:$0xff] }
  0xe8   :  { %680 = vmatpush.msra.mxu3 %v348_v59  ;;  %799 = vmatpush.msrb.mxu1 %v798_v36  ;;  %v809_v49 = vsub.f32 %v807_v35, %v808_v41  ;;  %v725_v36 = vld [vmem:[%s5344_s6] sm:$0xff] }
  0xea   :  { %805 = vmatpush.msrb.mxu1 %v804_v44  ;;  %v810_v52 = vand.u32 4294901760, %v809_v49 }
  0xec   :  { %811 = vmatpush.msrb.mxu1 %v810_v52 }
  0xff   :  { %v253_v6 = vpop.permute.xlu2 %252 }
 0x107   :  { %v261_v21 = vpop.permute.xlu2 %260 }
 0x117   :  { %v249_v7 = vpop.permute.xlu1 %248 }
 0x118   :  { %v264_v9 = vsel %vm263_vm4, %v4434_v48, %v249_v7 }
 0x119   :  { %v266_v14 = vsel %vm265_vm5, %v264_v9, %v253_v6 }
 0x11a   :  { %v268_v26 = vsel %vm267_vm6, %v266_v14, %v261_v21  ;;  %v728_v14 = vld [vmem:[%s5344_s6 + $0x18] sm:$0xff] }
 0x120   :  { %v279_v4 = vpop.permute.xlu0 %278 }
 0x121   :  { %v290_v10 = vsel %vm263_vm4, %v4444_v61, %v279_v4  ;;  %v288_v15 = vpop.permute.xlu1 %287 }
 0x128   :  { %v283_v11 = vpop.permute.xlu0 %282 }
 0x129   :  { %v291_v16 = vsel %vm265_vm5, %v290_v10, %v283_v11 }
 0x12a   :  { %v292_v20 = vsel %vm267_vm6, %v291_v16, %v288_v15  ;;  %v4727_v16 = vand.u32 4294901760, %v728_v14 }
 0x12b   :  { %v294_v22 = vrot.slane %v292_v20, 2 }
 0x12d   :  { %v297_v27 = vsel %vm296_vm7, %v268_v26, %v294_v22  ;;  %v358_v32 = vand.u32 4294901760, %v294_v22 }
 0x12e   :  { %v350_v28 = vand.u32 4294901760, %v297_v27 }
 0x12f   :  { %v359_v34 = vsub.f32 %v294_v22, %v358_v32 }
 0x130   :  { %464 = vmatmul.f32.vlgmr.msrb.gmra.mxu3 %v350_v28  ;;  %v351_v33 = vsub.f32 %v297_v27, %v350_v28  ;;  %v4732_v27 = vsub.f32 %v728_v14, %v4727_v16 }
 0x131   :  { %v360_v38 = vand.u32 4294901760, %v359_v34  ;;  %939 = vmatpush.msrb.mxu3 %v751_v47 }
 0x132   :  { %522 = vmatmul.f32.vlgmr.msra.gmra.mxu0 %v351_v33  ;;  %v352_v48 = vand.u32 4294901760, %v351_v33 }
 0x133   :  { %v361_v39 = vsub.f32 %v359_v34, %v360_v38  ;;  %941 = vmatpush.msrb.mxu3 %v753_v54  ;;  %835 = vmatpush.msra.mxu0 %v789_v51 }
 0x134   :  { %566 = vmatmul.f32.vlgmr.msra.gmra.mxu1 %v352_v48  ;;  %v353_v61 = vsub.f32 %v351_v33, %v352_v48 }
 0x135   :  { %v362_v45 = vand.u32 4294901760, %v361_v39  ;;  %943 = vmatpush.msrb.mxu3 %v755_v62  ;;  %838 = vmatpush.msra.mxu0 %v795_v57  ;;  %v4738_v39 = vand.u32 4294901760, %v4732_v27 }
 0x136   :  { %v354_v37 = vand.u32 4294901760, %v353_v61  ;;  %869 = vmatpush.msra.mxu1 %v751_v47 }
 0x137   :  { %945 = vmatpush.msrb.mxu3 %v757_v19  ;;  %841 = vmatpush.msra.mxu0 %v801_v18 }
 0x138   :  { %355 = vmatmul.f32.vlgmr.msrb.gmra.mxu2 %v354_v37  ;;  %468 = vmatmul.f32.gmra.mxu3 %v358_v32 }
 0x139   :  { %904 = vmatpush.msrb.mxu2 %v790_v56  ;;  %844 = vmatpush.msra.mxu0 %v807_v35 }
 0x13a   :  { %527 = vmatmul.f32.gmra.mxu0 %v359_v34  ;;  %871 = vmatpush.msra.mxu1 %v753_v54  ;;  %v4749_v54 = vand.u32 4294901760, %v726_v46 }
 0x13b   :  { %908 = vmatpush.msrb.mxu2 %v796_v5 }
 0x13c   :  { %572 = vmatmul.f32.gmra.mxu1 %v360_v38 }
 0x13d   :  { %912 = vmatpush.msrb.mxu2 %v802_v31  ;;  %873 = vmatpush.msra.mxu1 %v755_v62  ;;  %v1001_v62 = vsub.f32 %v4732_v27, %v4738_v39 }
 0x13f   :  { %916 = vmatpush.msrb.mxu2 %v808_v41  ;;  %875 = vmatpush.msra.mxu1 %v757_v19  ;;  %v4768_v31 = vand.u32 4294901760, %v1001_v62 }
 0x140   :  { %363 = vmatmul.f32.gmra.mxu2 %v362_v45  ;;  %682 = vmatmul.f32.vlgmr.msra.gmra.mxu3 %v350_v28  ;;  %v727_v45 = vld [vmem:[%s5344_s6 + $0x10] sm:$0xff] }
 0x141   :  { %1070 = vmatpush.msra.mxu3 %v4727_v16  ;;  %v4747_v51 = vand.u32 4294901760, %v727_v45 }
 0x143   :  { %v4758_v5 = vsub.f32 %v727_v45, %v4747_v51  ;;  %1072 = vmatpush.msra.mxu3 %v4747_v51 }
 0x145   :  { %v4772_v35 = vand.u32 4294901760, %v4758_v5  ;;  %1074 = vmatpush.msra.mxu3 %v4749_v54 }
 0x148   :  { %641 = vmatmul.f32.vlgmr.msra.gmra.mxu2 %v350_v28  ;;  %686 = vmatmul.f32.gmra.mxu3 %v358_v32 }
 0x149   :  { %1041 = vmatpush.msra.mxu2 %v4732_v27 }
 0x14b   :  { %1044 = vmatpush.msra.mxu2 %v4758_v5 }
 0x150   :  { %645 = vmatmul.f32.gmra.mxu2 %v358_v32 }
 0x1af   :  { %v523_v1 = vpop.f32.mrf.mxu0 }
 0x1b1   :  { %v567_v12 = vpop.f32.mrf.mxu1 }
 0x1b3   :  { %v465_v25 = vpop.f32.mrf.mxu3 }
 0x1b7   :  { %v528_v6 = vpop.f32.mrf.mxu0 }
 0x1b9   :  { %v573_v15 = vpop.f32.mrf.mxu1 }
 0x1bb   :  { %v356_v43 = vpop.f32.mrf.mxu2  ;;  %v469_v59 = vpop.f32.mrf.mxu3 }
 0x1bc   :  { %v357_v53 = vadd.f32 %v4232_v42, %v356_v43  ;;  %v1007_v43 = vsub.f32 %v4758_v5, %v4772_v35 }
 0x1be   :  { %v466_v60 = vadd.f32 %v465_v25, %v357_v53  ;;  %v4764_v25 = vsub.f32 %v726_v46, %v4749_v54  ;;  %v4790_v53 = vand.u32 4294901760, %v1007_v43 }
 0x1c0   :  { %v524_v8 = vadd.f32 %v523_v1, %v466_v60  ;;  %1047 = vmatpush.msra.mxu2 %v4764_v25  ;;  %v4784_v49 = vand.u32 4294901760, %v4764_v25 }
 0x1c2   :  { %v568_v17 = vadd.f32 %v567_v12, %v524_v8  ;;  %v1013_v1 = vsub.f32 %v4764_v25, %v4784_v49 }
 0x1c3   :  { %v364_v2 = vpop.f32.mrf.mxu2  ;;  %v683_v23 = vpop.f32.mrf.mxu3 }
 0x1c4   :  { %v365_v3 = vadd.f32 %v4232_v42, %v364_v2  ;;  %v4778_v42 = vand.u32 4294901760, %v725_v36  ;;  %v4801_v8 = vand.u32 4294901760, %v1013_v1 }
 0x1c6   :  { %v470_v13 = vadd.f32 %v469_v59, %v365_v3  ;;  %v4787_v52 = vsub.f32 %v725_v36, %v4778_v42  ;;  %1076 = vmatpush.msra.mxu3 %v4778_v42 }
 0x1c8   :  { %v529_v9 = vadd.f32 %v528_v6, %v470_v13  ;;  %1050 = vmatpush.msra.mxu2 %v4787_v52  ;;  %v4797_v2 = vand.u32 4294901760, %v4787_v52 }
 0x1ca   :  { %v574_v20 = vadd.f32 %v573_v15, %v529_v9  ;;  %v1019_v12 = vsub.f32 %v4787_v52, %v4797_v2 }
 0x1cb   :  { %v642_v24 = vpop.f32.mrf.mxu2  ;;  %v687_v33 = vpop.f32.mrf.mxu3 }
 0x1cc   :  { %v643_v4 = vadd.f32 %v642_v24, %v568_v17 }
 0x1ce   :  { %v684_v7 = vadd.f32 %v683_v23, %v643_v4  ;;  %v4808_v23 = vand.u32 4294901760, %v1019_v12 }
 0x1d0   :  { %v693_v10 = vrot.slane %v684_v7, 7  ;;  %v691_v11 = vrot.slane %v684_v7, 5  ;;  %v695_v28 = vrot.slane %v684_v7, 4  ;;  %v697_v61 = vrot.slane %v684_v7, 6 }
 0x1d1   :  { %v706_v50 = vrot.slane %v684_v7, 3 }
 0x1d2   :  { %v708_v21 = vsel %vm244_vm1, %v684_v7, %v691_v11 }
 0x1d3   :  { %v646_v22 = vpop.f32.mrf.mxu2  ;;  %v709_v26 = vsel %vm270_vm2, %v708_v21, %v693_v10 }
 0x1d4   :  { %v647_v32 = vadd.f32 %v646_v22, %v574_v20  ;;  %v711_v34 = vsel %vm710_vm8, %v709_v26, %v695_v28  ;;  %v4233_v20 = vld [vmem:[%s5345_s7] ss:$0 sm:$0xff] }
 0x1d5   :  { %v713_v47 = vsel %vm712_vm9, %v711_v34, %v697_v61 }
 0x1d6   :  { %v688_v48 = vadd.f32 %v687_v33, %v647_v32 }
 0x1d8   :  { %v700_v37 = vrot.slane %v688_v48, 3  ;;  %v704_v38 = vrot.slane %v688_v48, 1  ;;  %v702_v55 = vrot.slane %v688_v48, 2 }
 0x1da   :  { %v714_v56 = vsel %vm256_vm3, %v713_v47, %v700_v37  ;;  %v718_v57 = vsel %vm244_vm1, %v695_v28, %v704_v38 }
 0x1db   :  { %v715_v63 = vsel %vm296_vm7, %v714_v56, %v691_v11  ;;  %v719_v0 = vsel %vm270_vm2, %v718_v57, %v706_v50 }
 0x1dc   :  { %v717_v18 = vsel %vm716_vm10, %v715_v63, %v702_v55  ;;  %v720_v19 = vsel %vm710_vm8, %v719_v0, %v688_v48 }
 0x1dd   :  { %v734_v29 = vsel %vm263_vm4, %v717_v18, 0  ;;  %v737_v30 = vsel %vm263_vm4, %v720_v19, 0 }
 0x1de   :  { %v759_v40 = vand.u32 4294901760, %v734_v29  ;;  %v767_v41 = vand.u32 4294901760, %v737_v30 }
 0x1e0   :  { %v760_v44 = vsub.f32 %v734_v29, %v759_v40  ;;  %813 = vmatmul.f32.vlgmr.msrb.gmra.mxu1 %v759_v40  ;;  %918 = vmatmul.f32.vlgmr.msrb.gmra.mxu2 %v759_v40  ;;  %v768_v60 = vsub.f32 %v737_v30, %v767_v41 }
 0x1e1   :  { %947 = vmatmul.f32.vlgmr.msrb.gmra.mxu3 %v759_v40  ;;  %1003 = vmatpush.msrb.mxu1 %v4768_v31 }
 0x1e2   :  { %v761_v59 = vand.u32 4294901760, %v760_v44  ;;  %1231 = vmatpush.msrb.mxu3 %v4768_v31  ;;  %1198 = vmatpush.msrb.mxu2 %v4727_v16  ;;  %v769_v17 = vand.u32 4294901760, %v768_v60 }
 0x1e3   :  { %1009 = vmatpush.msrb.mxu1 %v4790_v53 }
 0x1e4   :  { %v762_v3 = vsub.f32 %v760_v44, %v761_v59  ;;  %1237 = vmatpush.msrb.mxu3 %v4790_v53  ;;  %1200 = vmatpush.msrb.mxu2 %v4747_v51  ;;  %v770_v24 = vsub.f32 %v768_v60, %v769_v17 }
 0x1e5   :  { %1015 = vmatpush.msrb.mxu1 %v4801_v8 }
 0x1e6   :  { %v763_v13 = vand.u32 4294901760, %v762_v3  ;;  %1243 = vmatpush.msrb.mxu3 %v4801_v8  ;;  %1202 = vmatpush.msrb.mxu2 %v4749_v54  ;;  %v771_v4 = vand.u32 4294901760, %v770_v24 }
 0x1e7   :  { %1021 = vmatpush.msrb.mxu1 %v4808_v23 }
 0x1e8   :  { %764 = vmatmul.f32.vlgmr.msrb.gmra.mxu0 %v763_v13  ;;  %817 = vmatmul.f32.gmra.mxu1 %v767_v41 }
 0x1e9   :  { %922 = vmatmul.f32.gmra.mxu2 %v767_v41  ;;  %951 = vmatmul.f32.gmra.mxu3 %v767_v41 }
 0x1ea   :  { %970 = vmatpush.msrb.mxu0 %v4727_v16  ;;  %1249 = vmatpush.msrb.mxu3 %v4808_v23 }
 0x1eb   :  { %1204 = vmatpush.msrb.mxu2 %v4778_v42 }
 0x1ec   :  { %972 = vmatpush.msrb.mxu0 %v4747_v51 }
 0x1ee   :  { %974 = vmatpush.msrb.mxu0 %v4749_v54 }
 0x1f0   :  { %772 = vmatmul.f32.gmra.mxu0 %v771_v4  ;;  %879 = vmatmul.f32.vlgmr.msra.gmra.mxu1 %v761_v59 }
 0x1f1   :  { %976 = vmatpush.msrb.mxu0 %v4778_v42  ;;  %1053 = vmatmul.f32.vlgmr.msra.gmra.mxu2 %v4360_v58 }
 0x1f2   :  { %1080 = vmatmul.f32.vlgmr.msra.gmra.mxu3 %v4360_v58  ;;  %1130 = vmatpush.msra.mxu1 %v4727_v16 }
 0x1f3   :  { %1358 = vmatpush.msra.mxu3 %v4727_v16  ;;  %1327 = vmatpush.msra.mxu2 %v4738_v39 }
 0x1f4   :  { %1132 = vmatpush.msra.mxu1 %v4747_v51 }
 0x1f5   :  { %1360 = vmatpush.msra.mxu3 %v4747_v51  ;;  %1331 = vmatpush.msra.mxu2 %v4772_v35 }
 0x1f6   :  { %1134 = vmatpush.msra.mxu1 %v4749_v54 }
 0x1f7   :  { %1362 = vmatpush.msra.mxu3 %v4749_v54  ;;  %1335 = vmatpush.msra.mxu2 %v4784_v49 }
 0x1f8   :  { %847 = vmatmul.f32.vlgmr.msra.gmra.mxu0 %v760_v44  ;;  %885 = vmatmul.f32.gmra.mxu1 %v769_v17 }
 0x1f9   :  { %1099 = vmatpush.msra.mxu0 %v4738_v39  ;;  %1136 = vmatpush.msra.mxu1 %v4778_v42 }
 0x1fa   :  { %1364 = vmatpush.msra.mxu3 %v4778_v42  ;;  %1339 = vmatpush.msra.mxu2 %v4797_v2 }
 0x1fb   :  { %1103 = vmatpush.msra.mxu0 %v4772_v35 }
 0x1fd   :  { %1107 = vmatpush.msra.mxu0 %v4784_v49 }
 0x1ff   :  { %1111 = vmatpush.msra.mxu0 %v4797_v2 }
 0x200   :  { %852 = vmatmul.f32.gmra.mxu0 %v768_v60  ;;  %1023 = vmatmul.f32.vlgmr.msrb.gmra.mxu1 %v4360_v58 }
 0x201   :  { %1298 = vmatpush.msrb.mxu1 %v4727_v16 }
 0x203   :  { %1300 = vmatpush.msrb.mxu1 %v4747_v51 }
 0x205   :  { %1302 = vmatpush.msrb.mxu1 %v4749_v54 }
 0x207   :  { %1304 = vmatpush.msrb.mxu1 %v4778_v42 }
 0x208   :  { %982 = vmatmul.f32.vlgmr.msrb.gmra.mxu0 %v4360_v58  ;;  %1138 = vmatmul.f32.vlgmr.msra.gmra.mxu1 %v4360_v58 }
 0x209   :  { %1269 = vmatpush.msrb.mxu0 %v4732_v27  ;;  %1466 = vmatpush.msra.mxu1 %v4768_v31 }
 0x20b   :  { %1272 = vmatpush.msrb.mxu0 %v4758_v5  ;;  %1472 = vmatpush.msra.mxu1 %v4790_v53 }
 0x20d   :  { %1275 = vmatpush.msrb.mxu0 %v4764_v25  ;;  %1478 = vmatpush.msra.mxu1 %v4801_v8 }
 0x20f   :  { %1278 = vmatpush.msrb.mxu0 %v4787_v52  ;;  %1484 = vmatpush.msra.mxu1 %v4808_v23 }
 0x210   :  { %1113 = vmatmul.f32.vlgmr.msra.gmra.mxu0 %v4360_v58 }
 0x211   :  { %1433 = vmatpush.msra.mxu0 %v4727_v16 }
 0x213   :  { %1435 = vmatpush.msra.mxu0 %v4747_v51 }
 0x215   :  { %1437 = vmatpush.msra.mxu0 %v4749_v54 }
 0x217   :  { %1439 = vmatpush.msra.mxu0 %v4778_v42 }
 0x25d   :  { %v814_v6 = vpop.f32.mrf.mxu1 }
 0x263   :  { %v919_v14 = vpop.f32.mrf.mxu2 }
 0x264   :  { %v948_v21 = vpop.f32.mrf.mxu3 }
 0x265   :  { %v765_v7 = vpop.f32.mrf.mxu0  ;;  %v818_v9 = vpop.f32.mrf.mxu1 }
 0x266   :  { %v766_v48 = vadd.f32 %v4233_v20, %v765_v7 }
 0x268   :  { %v815_v38 = vadd.f32 %v814_v6, %v766_v48 }
 0x26c   :  { %v923_v32 = vpop.f32.mrf.mxu2  ;;  %v952_v37 = vpop.f32.mrf.mxu3 }
 0x26d   :  { %v773_v10 = vpop.f32.mrf.mxu0  ;;  %v880_v11 = vpop.f32.mrf.mxu1 }
 0x26e   :  { %v774_v22 = vadd.f32 %v4233_v20, %v773_v10 }
 0x270   :  { %v819_v28 = vadd.f32 %v818_v9, %v774_v22 }
 0x274   :  { %v1054_v56 = vpop.f32.mrf.mxu2 }
 0x275   :  { %v848_v15 = vpop.f32.mrf.mxu0  ;;  %v886_v26 = vpop.f32.mrf.mxu1 }
 0x276   :  { %v849_v47 = vadd.f32 %v848_v15, %v815_v38  ;;  %v1081_v0 = vpop.f32.mrf.mxu3 }
 0x278   :  { %v881_v62 = vadd.f32 %v880_v11, %v849_v47 }
 0x27a   :  { %v920_v18 = vadd.f32 %v919_v14, %v881_v62 }
 0x27c   :  { %v4863_v40 = vadd.f32 %v948_v21, %v920_v18 }
 0x27d   :  { %v853_v33 = vpop.f32.mrf.mxu0  ;;  %v1024_v46 = vpop.f32.mrf.mxu1 }
 0x27e   :  { %v854_v34 = vadd.f32 %v853_v33, %v819_v28 }
 0x280   :  { %v887_v61 = vadd.f32 %v886_v26, %v854_v34 }
 0x282   :  { %v924_v45 = vadd.f32 %v923_v32, %v887_v61 }
 0x284   :  { %v4861_v50 = vadd.f32 %v952_v37, %v924_v45 }
 0x285   :  { %v983_v55 = vpop.f32.mrf.mxu0  ;;  %v1139_v30 = vpop.f32.mrf.mxu1 }
 0x286   :  { %v1025_v57 = vadd.f32 %v1024_v46, %v983_v55 }
 0x288   :  { %v1055_v63 = vadd.f32 %v1054_v56, %v1025_v57 }
 0x28a   :  { %v1082_v19 = vadd.f32 %v1081_v0, %v1055_v63 }
 0x28d   :  { %v1114_v29 = vpop.f32.mrf.mxu0 }
 0x28e   :  { %v1115_v36 = vadd.f32 %v1114_v29, %v1082_v19 }
 0x290   :  { %v1140_v41 = vadd.f32 %v1139_v30, %v1115_v36 }
 0x292   :  { %v1142_v43 = vadd.f32 %v1140_v41, %v4863_v40 }
 0x294   :  { %4236 = vtanh.f32 %v1142_v43  ;;  %v4205_v59 = vmul.f32 -1.442695, %v1142_v43 }
 0x296   :  { %4238 = vpow2.f32 %v4205_v59 }
 0x29a   :  { %v4237_v44 = vpop.eup %4236 }
 0x29b   :  { %1165 = vrot.lane.b32.xlu0 %v4237_v44, %s4358_s2 }
 0x29c   :  { %v4239_v60 = vpop.eup %4238 }
 0x29d   :  { %v1146_v1 = vadd.f32 1.0, %v4239_v60 }
 0x29f   :  { %4240 = vrcp.f32 %v1146_v1  ;;  %v1158_v4 = vand.u32 2147483648, %v1146_v1  ;;  %vm1152_vm12 = vweird.f32 %v1146_v1  ;;  %v1156_v6 = vand.u32 2147483647, %v1146_v1 }
 0x2a1   :  { %v1159_v9 = vor.u32 1.1754944e-38, %v1158_v4  ;;  %vm1157_vm14 = vcmp.eq.f32.partialorder %v1156_v6, 8.507059e+37 }
 0x2a5   :  { %v4241_v3 = vpop.eup %4240 }
 0x2a6   :  { %v1148_v12 = vmul.f32 %v4241_v3, %v1146_v1  ;;  %vm1153_vm11 = vweird.f32 %v4241_v3 }
 0x2a7   :  { %vm1154_vm13 = vmor %vm1152_vm12, %vm1153_vm11 }
 0x2a8   :  { %v1149_v13 = vsub.f32 1.0, %v1148_v12 }
 0x2aa   :  { %v1150_v17 = vmul.f32 %v4241_v3, %v1149_v13 }
 0x2ac   :  { %v1151_v24 = vadd.f32 %v4241_v3, %v1150_v17 }
 0x2ae   :  { %v1155_v7 = vsel %vm1154_vm13, %v4241_v3, %v1151_v24 }
 0x2af   :  { %v1160_v11 = vsel %vm1157_vm14, %v1159_v9, %v1155_v7 }
 0x2b0   :  { %v1163_v15 = vmul.f32 0.0, %v1160_v11 }
 0x30d   :  { %v1166_v10 = vpop.permute.xlu0 %1165 }
 0x30e   :  { %v1168_v14 = vmul.f32 %v1166_v10, %v1160_v11 }
 0x310   :  { %1170 = vrot.lane.b32.xlu1 %v1168_v14, %s4359_s21 }
 0x382   :  { %v1171_v20 = vpop.permute.xlu1 %1170 }
 0x383   :  { %v4868_v21 = vadd.f32 %v1171_v20, %v1163_v15 }
 0x385   :  { %4242 = vtanh.f32 %v4868_v21  ;;  %v1395_v10 = vrot.slane %v4868_v21, 6 }
 0x38b   :  { %v4243_v22 = vpop.eup %4242 }
 0x38c   :  { %1176 = vrot.lane.b32.xlu2 %v4243_v22, %s4358_s2 }
 0x3e6   :  { %v1177_v26 = vpop.permute.xlu2 %1176 }
 0x3e7   :  { %v4872_v28 = vmul.f32 %v1177_v26, %v1160_v11 }
 0x3e9   :  { %1181 = vrot.lane.b32.xlu0 %v4872_v28, %s4359_s21 }
 0x45b   :  { %v1182_v32 = vpop.permute.xlu0 %1181 }
 0x45c   :  { %v1183_v33 = vsel %vm263_vm4, %v1182_v32, 0 }
 0x45d   :  { %v1205_v48 = vand.u32 4294901760, %v1183_v33 }
 0x45f   :  { %v1206_v34 = vsub.f32 %v1183_v33, %v1205_v48  ;;  %1251 = vmatmul.f32.vlgmr.msrb.gmra.mxu3 %v1205_v48 }
 0x460   :  { %1533 = vmatpush.msrb.mxu3 %v4727_v16 }
 0x461   :  { %v1207_v61 = vand.u32 4294901760, %v1206_v34  ;;  %1281 = vmatmul.f32.vlgmr.msrb.gmra.mxu0 %v1206_v34 }
 0x462   :  { %1535 = vmatpush.msrb.mxu3 %v4747_v51  ;;  %1562 = vmatpush.msrb.mxu0 %v4738_v39 }
 0x463   :  { %v1208_v37 = vsub.f32 %v1206_v34, %v1207_v61  ;;  %1308 = vmatmul.f32.vlgmr.msrb.gmra.mxu1 %v1207_v61 }
 0x464   :  { %1537 = vmatpush.msrb.mxu3 %v4749_v54  ;;  %1593 = vmatpush.msrb.mxu1 %v4727_v16 }
 0x465   :  { %v1209_v38 = vand.u32 4294901760, %v1208_v37  ;;  %1566 = vmatpush.msrb.mxu0 %v4772_v35 }
 0x466   :  { %1539 = vmatpush.msrb.mxu3 %v4778_v42  ;;  %1595 = vmatpush.msrb.mxu1 %v4747_v51 }
 0x467   :  { %1210 = vmatmul.f32.vlgmr.msrb.gmra.mxu2 %v1209_v38  ;;  %1366 = vmatmul.f32.vlgmr.msra.gmra.mxu3 %v1205_v48 }
 0x468   :  { %1504 = vmatpush.msrb.mxu2 %v4732_v27  ;;  %1597 = vmatpush.msrb.mxu1 %v4749_v54 }
 0x469   :  { %1570 = vmatpush.msrb.mxu0 %v4784_v49  ;;  %1701 = vmatpush.msra.mxu3 %v4768_v31 }
 0x46a   :  { %1507 = vmatpush.msrb.mxu2 %v4758_v5  ;;  %1599 = vmatpush.msrb.mxu1 %v4778_v42 }
 0x46b   :  { %1574 = vmatpush.msrb.mxu0 %v4797_v2  ;;  %1707 = vmatpush.msra.mxu3 %v4790_v53 }
 0x46c   :  { %1510 = vmatpush.msrb.mxu2 %v4764_v25 }
 0x46d   :  { %1713 = vmatpush.msra.mxu3 %v4801_v8 }
 0x46e   :  { %1513 = vmatpush.msrb.mxu2 %v4787_v52 }
 0x46f   :  { %1341 = vmatmul.f32.vlgmr.msra.gmra.mxu2 %v1205_v48  ;;  %1719 = vmatpush.msra.mxu3 %v4808_v23 }
 0x470   :  { %1668 = vmatpush.msra.mxu2 %v4727_v16 }
 0x472   :  { %1670 = vmatpush.msra.mxu2 %v4747_v51 }
 0x474   :  { %1672 = vmatpush.msra.mxu2 %v4749_v54 }
 0x476   :  { %1674 = vmatpush.msra.mxu2 %v4778_v42 }
 0x4de   :  { %v1282_v55 = vpop.f32.mrf.mxu0 }
 0x4e0   :  { %v1309_v57 = vpop.f32.mrf.mxu1 }
 0x4e2   :  { %v1252_v45 = vpop.f32.mrf.mxu3 }
 0x4ea   :  { %v1211_v46 = vpop.f32.mrf.mxu2  ;;  %v1367_v18 = vpop.f32.mrf.mxu3 }
 0x4eb   :  { %v1253_v47 = vadd.f32 %v1252_v45, %v1211_v46 }
 0x4ed   :  { %v1283_v56 = vadd.f32 %v1282_v55, %v1253_v47 }
 0x4ef   :  { %v1310_v62 = vadd.f32 %v1309_v57, %v1283_v56 }
 0x4f2   :  { %v1342_v63 = vpop.f32.mrf.mxu2 }
 0x4f3   :  { %v1343_v0 = vadd.f32 %v1342_v63, %v1310_v62 }
 0x4f5   :  { %v1368_v19 = vadd.f32 %v1367_v18, %v1343_v0 }
 0x4f7   :  { %v1371_v29 = vrot.slane %v1368_v19, 6 }
 0x4f9   :  { %v1373_v30 = vadd.f32 %v1371_v29, %v4863_v40 }
 0x4fb   :  { %4244 = vtanh.f32 %v1373_v30  ;;  %v4206_v41 = vmul.f32 -1.442695, %v1373_v30 }
 0x4fd   :  { %4246 = vpow2.f32 %v4206_v41 }
 0x501   :  { %v4245_v36 = vpop.eup %4244 }
 0x502   :  { %1399 = vrot.lane.b32.xlu1 %v4245_v36, %s4358_s2 }
 0x503   :  { %v4247_v43 = vpop.eup %4246 }
 0x504   :  { %v1377_v44 = vadd.f32 1.0, %v4247_v43 }
 0x506   :  { %4248 = vrcp.f32 %v1377_v44  ;;  %v1389_v13 = vand.u32 2147483648, %v1377_v44  ;;  %vm1383_vm0 = vweird.f32 %v1377_v44  ;;  %v1387_v17 = vand.u32 2147483647, %v1377_v44 }
 0x508   :  { %v1390_v4 = vor.u32 1.1754944e-38, %v1389_v13  ;;  %vm1388_vm3 = vcmp.eq.f32.partialorder %v1387_v17, 8.507059e+37 }
 0x50c   :  { %v4249_v59 = vpop.eup %4248 }
 0x50d   :  { %v1379_v60 = vmul.f32 %v4249_v59, %v1377_v44  ;;  %vm1384_vm15 = vweird.f32 %v4249_v59 }
 0x50e   :  { %vm1385_vm1 = vmor %vm1383_vm0, %vm1384_vm15 }
 0x50f   :  { %v1380_v1 = vsub.f32 1.0, %v1379_v60 }
 0x511   :  { %v1381_v3 = vmul.f32 %v4249_v59, %v1380_v1 }
 0x513   :  { %v1382_v12 = vadd.f32 %v4249_v59, %v1381_v3 }
 0x515   :  { %v1386_v24 = vsel %vm1385_vm1, %v4249_v59, %v1382_v12 }
 0x516   :  { %v1391_v7 = vsel %vm1388_vm3, %v1390_v4, %v1386_v24 }
 0x517   :  { %v1397_v11 = vmul.f32 %v1395_v10, %v1391_v7 }
 0x574   :  { %v1400_v6 = vpop.permute.xlu1 %1399 }
 0x575   :  { %v1402_v9 = vmul.f32 %v1400_v6, %v1391_v7 }
 0x577   :  { %1404 = vrot.lane.b32.xlu2 %v1402_v9, %s4359_s21 }
 0x5d1   :  { %v1405_v14 = vpop.permute.xlu2 %1404 }
 0x5d2   :  { %v4905_v15 = vadd.f32 %v1405_v14, %v1397_v11 }
 0x5d4   :  { %4250 = vtanh.f32 %v4905_v15  ;;  %v1630_v10 = vrot.slane %v4905_v15, 6 }
 0x5da   :  { %v4251_v20 = vpop.eup %4250 }
 0x5db   :  { %1410 = vrot.lane.b32.xlu0 %v4251_v20, %s4358_s2 }
 0x64d   :  { %v1411_v22 = vpop.permute.xlu0 %1410 }
 0x64e   :  { %v4909_v26 = vmul.f32 %v1411_v22, %v1391_v7 }
 0x650   :  { %v1415_v32 = vrot.slane %v4909_v26, 2 }
 0x652   :  { %1416 = vrot.lane.b32.xlu1 %v1415_v32, %s4359_s21 }
 0x6c4   :  { %v1417_v33 = vpop.permute.xlu1 %1416 }
 0x6c5   :  { %v1418_v48 = vsel %vm263_vm4, %v1417_v33, 0 }
 0x6c6   :  { %v1440_v21 = vand.u32 4294901760, %v1418_v48 }
 0x6c8   :  { %v1441_v34 = vsub.f32 %v1418_v48, %v1440_v21  ;;  %1486 = vmatmul.f32.vlgmr.msra.gmra.mxu1 %v1440_v21  ;;  %v2350_v48 = vsel %vm270_vm2, %v4872_v28, %v4909_v26 }
 0x6c9   :  { %1768 = vmatpush.msra.mxu1 %v4727_v16 }
 0x6ca   :  { %v1442_v61 = vand.u32 4294901760, %v1441_v34  ;;  %1516 = vmatmul.f32.vlgmr.msrb.gmra.mxu2 %v1441_v34 }
 0x6cb   :  { %1770 = vmatpush.msra.mxu1 %v4747_v51  ;;  %1797 = vmatpush.msrb.mxu2 %v4738_v39 }
 0x6cc   :  { %v1443_v37 = vsub.f32 %v1441_v34, %v1442_v61  ;;  %1543 = vmatmul.f32.vlgmr.msrb.gmra.mxu3 %v1442_v61 }
 0x6cd   :  { %1772 = vmatpush.msra.mxu1 %v4749_v54  ;;  %1828 = vmatpush.msrb.mxu3 %v4727_v16 }
 0x6ce   :  { %v1444_v38 = vand.u32 4294901760, %v1443_v37  ;;  %1801 = vmatpush.msrb.mxu2 %v4772_v35 }
 0x6cf   :  { %1774 = vmatpush.msra.mxu1 %v4778_v42  ;;  %1830 = vmatpush.msrb.mxu3 %v4747_v51 }
 0x6d0   :  { %1445 = vmatmul.f32.vlgmr.msra.gmra.mxu0 %v1444_v38  ;;  %1601 = vmatmul.f32.vlgmr.msrb.gmra.mxu1 %v1440_v21 }
 0x6d1   :  { %1739 = vmatpush.msra.mxu0 %v4732_v27  ;;  %1832 = vmatpush.msrb.mxu3 %v4749_v54 }
 0x6d2   :  { %1805 = vmatpush.msrb.mxu2 %v4784_v49  ;;  %1936 = vmatpush.msrb.mxu1 %v4768_v31 }
 0x6d3   :  { %1742 = vmatpush.msra.mxu0 %v4758_v5  ;;  %1834 = vmatpush.msrb.mxu3 %v4778_v42 }
 0x6d4   :  { %1809 = vmatpush.msrb.mxu2 %v4797_v2  ;;  %1942 = vmatpush.msrb.mxu1 %v4790_v53 }
 0x6d5   :  { %1745 = vmatpush.msra.mxu0 %v4764_v25 }
 0x6d6   :  { %1948 = vmatpush.msrb.mxu1 %v4801_v8 }
 0x6d7   :  { %1748 = vmatpush.msra.mxu0 %v4787_v52 }
 0x6d8   :  { %1576 = vmatmul.f32.vlgmr.msrb.gmra.mxu0 %v1440_v21  ;;  %1954 = vmatpush.msrb.mxu1 %v4808_v23 }
 0x6d9   :  { %1903 = vmatpush.msrb.mxu0 %v4727_v16 }
 0x6db   :  { %1905 = vmatpush.msrb.mxu0 %v4747_v51 }
 0x6dd   :  { %1907 = vmatpush.msrb.mxu0 %v4749_v54 }
 0x6df   :  { %1909 = vmatpush.msrb.mxu0 %v4778_v42 }
 0x745   :  { %v1487_v45 = vpop.f32.mrf.mxu1 }
 0x74d   :  { %v1446_v46 = vpop.f32.mrf.mxu0  ;;  %v1517_v55 = vpop.f32.mrf.mxu2 }
 0x74e   :  { %v1488_v47 = vadd.f32 %v1487_v45, %v1446_v46  ;;  %v1602_v18 = vpop.f32.mrf.mxu1 }
 0x74f   :  { %v1544_v57 = vpop.f32.mrf.mxu3 }
 0x750   :  { %v1518_v56 = vadd.f32 %v1517_v55, %v1488_v47 }
 0x752   :  { %v1545_v62 = vadd.f32 %v1544_v57, %v1518_v56 }
 0x755   :  { %v1577_v63 = vpop.f32.mrf.mxu0 }
 0x756   :  { %v1578_v0 = vadd.f32 %v1577_v63, %v1545_v62 }
 0x758   :  { %v1603_v19 = vadd.f32 %v1602_v18, %v1578_v0 }
 0x75a   :  { %v1606_v29 = vrot.slane %v1603_v19, 4 }
 0x75c   :  { %v1608_v30 = vadd.f32 %v1606_v29, %v4863_v40 }
 0x75e   :  { %4252 = vtanh.f32 %v1608_v30  ;;  %v4207_v41 = vmul.f32 -1.442695, %v1608_v30 }
 0x760   :  { %4254 = vpow2.f32 %v4207_v41 }
 0x764   :  { %v4253_v36 = vpop.eup %4252 }
 0x765   :  { %1634 = vrot.lane.b32.xlu2 %v4253_v36, %s4358_s2 }
 0x766   :  { %v4255_v43 = vpop.eup %4254 }
 0x767   :  { %v1612_v44 = vadd.f32 1.0, %v4255_v43 }
 0x769   :  { %4256 = vrcp.f32 %v1612_v44  ;;  %v1624_v13 = vand.u32 2147483648, %v1612_v44  ;;  %vm1618_vm6 = vweird.f32 %v1612_v44  ;;  %v1622_v17 = vand.u32 2147483647, %v1612_v44 }
 0x76b   :  { %v1625_v4 = vor.u32 1.1754944e-38, %v1624_v13  ;;  %vm1623_vm10 = vcmp.eq.f32.partialorder %v1622_v17, 8.507059e+37 }
 0x76f   :  { %v4257_v59 = vpop.eup %4256 }
 0x770   :  { %v1614_v60 = vmul.f32 %v4257_v59, %v1612_v44  ;;  %vm1619_vm5 = vweird.f32 %v4257_v59 }
 0x771   :  { %vm1620_vm8 = vmor %vm1618_vm6, %vm1619_vm5 }
 0x772   :  { %v1615_v1 = vsub.f32 1.0, %v1614_v60 }
 0x774   :  { %v1616_v3 = vmul.f32 %v4257_v59, %v1615_v1 }
 0x776   :  { %v1617_v12 = vadd.f32 %v4257_v59, %v1616_v3 }
 0x778   :  { %v1621_v24 = vsel %vm1620_vm8, %v4257_v59, %v1617_v12 }
 0x779   :  { %v1626_v7 = vsel %vm1623_vm10, %v1625_v4, %v1621_v24 }
 0x77a   :  { %v1632_v11 = vmul.f32 %v1630_v10, %v1626_v7 }
 0x7bf   :  { %v1635_v6 = vpop.permute.xlu2 %1634 }
 0x7c0   :  { %v1637_v9 = vmul.f32 %v1635_v6, %v1626_v7 }
 0x7c2   :  { %1639 = vrot.lane.b32.xlu0 %v1637_v9, %s4359_s21 }
 0x834   :  { %v1640_v14 = vpop.permute.xlu0 %1639 }
 0x835   :  { %v4942_v20 = vadd.f32 %v1640_v14, %v1632_v11 }
 0x837   :  { %4258 = vtanh.f32 %v4942_v20  ;;  %v1865_v4 = vrot.slane %v4942_v20, 6 }
 0x83d   :  { %v4259_v22 = vpop.eup %4258 }
 0x83e   :  { %1645 = vrot.lane.b32.xlu1 %v4259_v22, %s4358_s2 }
 0x8b0   :  { %v1646_v32 = vpop.permute.xlu1 %1645 }
 0x8b1   :  { %v1648_v33 = vmul.f32 %v1646_v32, %v1626_v7 }
 0x8b3   :  { %v1650_v21 = vrot.slane %v1648_v33, 4  ;;  %v4950_v34 = vsel %vm712_vm9, %v2350_v48, %v1648_v33 }
 0x8b5   :  { %1651 = vrot.lane.b32.xlu2 %v1650_v21, %s4359_s21 }
 0x90f   :  { %v1652_v15 = vpop.permute.xlu2 %1651 }
 0x910   :  { %v1653_v61 = vsel %vm263_vm4, %v1652_v15, 0 }
 0x911   :  { %v1675_v37 = vand.u32 4294901760, %v1653_v61 }
 0x913   :  { %v1676_v38 = vsub.f32 %v1653_v61, %v1675_v37  ;;  %1721 = vmatmul.f32.vlgmr.msra.gmra.mxu3 %v1675_v37 }
 0x914   :  { %2003 = vmatpush.msra.mxu3 %v4727_v16 }
 0x915   :  { %v1677_v45 = vand.u32 4294901760, %v1676_v38  ;;  %1751 = vmatmul.f32.vlgmr.msra.gmra.mxu0 %v1676_v38 }
 0x916   :  { %2005 = vmatpush.msra.mxu3 %v4747_v51  ;;  %2032 = vmatpush.msra.mxu0 %v4738_v39 }
 0x917   :  { %v1678_v28 = vsub.f32 %v1676_v38, %v1677_v45  ;;  %1778 = vmatmul.f32.vlgmr.msra.gmra.mxu1 %v1677_v45 }
 0x918   :  { %2007 = vmatpush.msra.mxu3 %v4749_v54  ;;  %2063 = vmatpush.msra.mxu1 %v4727_v16 }
 0x919   :  { %v1679_v26 = vand.u32 4294901760, %v1678_v28  ;;  %2036 = vmatpush.msra.mxu0 %v4772_v35 }
 0x91a   :  { %2009 = vmatpush.msra.mxu3 %v4778_v42  ;;  %2065 = vmatpush.msra.mxu1 %v4747_v51 }
 0x91b   :  { %1680 = vmatmul.f32.vlgmr.msra.gmra.mxu2 %v1679_v26  ;;  %1836 = vmatmul.f32.vlgmr.msrb.gmra.mxu3 %v1675_v37 }
 0x91c   :  { %1974 = vmatpush.msra.mxu2 %v4732_v27  ;;  %2067 = vmatpush.msra.mxu1 %v4749_v54 }
 0x91d   :  { %2040 = vmatpush.msra.mxu0 %v4784_v49  ;;  %2167 = vmatpush.msrb.mxu3 %v4768_v31 }
 0x91e   :  { %1977 = vmatpush.msra.mxu2 %v4758_v5  ;;  %2069 = vmatpush.msra.mxu1 %v4778_v42 }
 0x91f   :  { %2044 = vmatpush.msra.mxu0 %v4797_v2  ;;  %2173 = vmatpush.msrb.mxu3 %v4790_v53 }
 0x920   :  { %1980 = vmatpush.msra.mxu2 %v4764_v25 }
 0x921   :  { %2179 = vmatpush.msrb.mxu3 %v4801_v8 }
 0x922   :  { %1983 = vmatpush.msra.mxu2 %v4787_v52 }
 0x923   :  { %1811 = vmatmul.f32.vlgmr.msrb.gmra.mxu2 %v1675_v37  ;;  %2185 = vmatpush.msrb.mxu3 %v4808_v23 }
 0x924   :  { %2134 = vmatpush.msrb.mxu2 %v4727_v16 }
 0x926   :  { %2136 = vmatpush.msrb.mxu2 %v4747_v51 }
 0x928   :  { %2138 = vmatpush.msrb.mxu2 %v4749_v54 }
 0x92a   :  { %2140 = vmatpush.msrb.mxu2 %v4778_v42 }
 0x992   :  { %v1752_v47 = vpop.f32.mrf.mxu0 }
 0x994   :  { %v1779_v56 = vpop.f32.mrf.mxu1 }
 0x996   :  { %v1722_v31 = vpop.f32.mrf.mxu3 }
 0x99e   :  { %v1681_v46 = vpop.f32.mrf.mxu2  ;;  %v1837_v63 = vpop.f32.mrf.mxu3 }
 0x99f   :  { %v1723_v53 = vadd.f32 %v1722_v31, %v1681_v46 }
 0x9a1   :  { %v1753_v55 = vadd.f32 %v1752_v47, %v1723_v53 }
 0x9a3   :  { %v1780_v8 = vadd.f32 %v1779_v56, %v1753_v55 }
 0x9a6   :  { %v1812_v57 = vpop.f32.mrf.mxu2 }
 0x9a7   :  { %v1813_v62 = vadd.f32 %v1812_v57, %v1780_v8 }
 0x9a9   :  { %v1838_v0 = vadd.f32 %v1837_v63, %v1813_v62 }
 0x9ab   :  { %v1841_v23 = vrot.slane %v1838_v0, 2 }
 0x9ad   :  { %v1843_v18 = vadd.f32 %v1841_v23, %v4863_v40 }
 0x9af   :  { %4260 = vtanh.f32 %v1843_v18  ;;  %v4208_v29 = vmul.f32 -1.442695, %v1843_v18 }
 0x9b1   :  { %4262 = vpow2.f32 %v4208_v29 }
 0x9b5   :  { %v4261_v19 = vpop.eup %4260 }
 0x9b6   :  { %1869 = vrot.lane.b32.xlu0 %v4261_v19, %s4358_s2 }
 0x9b7   :  { %v4263_v30 = vpop.eup %4262 }
 0x9b8   :  { %v1847_v36 = vadd.f32 1.0, %v4263_v30 }
 0x9ba   :  { %4264 = vrcp.f32 %v1847_v36  ;;  %v1859_v1 = vand.u32 2147483648, %v1847_v36  ;;  %vm1853_vm11 = vweird.f32 %v1847_v36  ;;  %v1857_v3 = vand.u32 2147483647, %v1847_v36 }
 0x9bc   :  { %v1860_v12 = vor.u32 1.1754944e-38, %v1859_v1  ;;  %vm1858_vm13 = vcmp.eq.f32.partialorder %v1857_v3, 8.507059e+37 }
 0x9c0   :  { %v4265_v41 = vpop.eup %4264 }
 0x9c1   :  { %v1849_v43 = vmul.f32 %v4265_v41, %v1847_v36  ;;  %vm1854_vm9 = vweird.f32 %v4265_v41 }
 0x9c2   :  { %vm1855_vm12 = vmor %vm1853_vm11, %vm1854_vm9 }
 0x9c3   :  { %v1850_v44 = vsub.f32 1.0, %v1849_v43 }
 0x9c5   :  { %v1851_v59 = vmul.f32 %v4265_v41, %v1850_v44 }
 0x9c7   :  { %v1852_v60 = vadd.f32 %v4265_v41, %v1851_v59 }
 0x9c9   :  { %v1856_v40 = vsel %vm1855_vm12, %v4265_v41, %v1852_v60 }
 0x9ca   :  { %v1861_v17 = vsel %vm1858_vm13, %v1860_v12, %v1856_v40 }
 0x9cb   :  { %v1867_v6 = vmul.f32 %v1865_v4, %v1861_v17 }
 0xa28   :  { %v1870_v13 = vpop.permute.xlu0 %1869 }
 0xa29   :  { %v1872_v24 = vmul.f32 %v1870_v13, %v1861_v17 }
 0xa2b   :  { %1874 = vrot.lane.b32.xlu1 %v1872_v24, %s4359_s21 }
 0xa9d   :  { %v1875_v7 = vpop.permute.xlu1 %1874 }
 0xa9e   :  { %v4982_v9 = vadd.f32 %v1875_v7, %v1867_v6 }
 0xaa0   :  { %4266 = vtanh.f32 %v4982_v9  ;;  %v2097_v23 = vrot.slane %v4982_v9, 6 }
 0xaa6   :  { %v4267_v10 = vpop.eup %4266 }
 0xaa7   :  { %1880 = vrot.lane.b32.xlu2 %v4267_v10, %s4358_s2 }
 0xb01   :  { %v1881_v11 = vpop.permute.xlu2 %1880 }
 0xb02   :  { %v1883_v14 = vmul.f32 %v1881_v11, %v1861_v17 }
 0xb04   :  { %v1885_v22 = vrot.slane %v1883_v14, 6  ;;  %v4988_v32 = vsel %vm296_vm7, %v4950_v34, %v1883_v14 }
 0xb06   :  { %1886 = vrot.lane.b32.xlu0 %v1885_v22, %s4359_s21 }
 0xb78   :  { %v1887_v33 = vpop.permute.xlu0 %1886 }
 0xb79   :  { %v1888_v20 = vsel %vm263_vm4, %v1887_v33, 0 }
 0xb7a   :  { %v1910_v48 = vand.u32 4294901760, %v1888_v20 }
 0xb7c   :  { %v1911_v21 = vsub.f32 %v1888_v20, %v1910_v48  ;;  %1956 = vmatmul.f32.vlgmr.msrb.gmra.mxu1 %v1910_v48 }
 0xb7d   :  { %2234 = vmatpush.msrb.mxu1 %v4727_v16 }
 0xb7e   :  { %v1912_v15 = vand.u32 4294901760, %v1911_v21  ;;  %1986 = vmatmul.f32.vlgmr.msra.gmra.mxu2 %v1911_v21 }
 0xb7f   :  { %2236 = vmatpush.msrb.mxu1 %v4747_v51  ;;  %2263 = vmatpush.msra.mxu2 %v4738_v39 }
 0xb80   :  { %v1913_v61 = vsub.f32 %v1911_v21, %v1912_v15  ;;  %2013 = vmatmul.f32.vlgmr.msra.gmra.mxu3 %v1912_v15  ;;  %v4214_v21 = vld [vmem:[%s5343_s5 + $0x38] sm:$0xff] }
 0xb81   :  { %2238 = vmatpush.msrb.mxu1 %v4749_v54  ;;  %2294 = vmatpush.msra.mxu3 %v4727_v16 }
 0xb82   :  { %v1914_v34 = vand.u32 4294901760, %v1913_v61  ;;  %2267 = vmatpush.msra.mxu2 %v4772_v35  ;;  %v2391_v61 = vand.u32 4294901760, %v4214_v21 }
 0xb83   :  { %2240 = vmatpush.msrb.mxu1 %v4778_v42  ;;  %2296 = vmatpush.msra.mxu3 %v4747_v51 }
 0xb84   :  { %1915 = vmatmul.f32.vlgmr.msrb.gmra.mxu0 %v1914_v34  ;;  %2071 = vmatmul.f32.vlgmr.msra.gmra.mxu1 %v1910_v48  ;;  %v4213_v34 = vld [vmem:[%s5343_s5 + $0x30] sm:$0xff] }
 0xb85   :  { %2205 = vmatpush.msrb.mxu0 %v4732_v27  ;;  %2298 = vmatpush.msra.mxu3 %v4749_v54 }
 0xb86   :  { %2271 = vmatpush.msra.mxu2 %v4784_v49 }
 0xb87   :  { %2208 = vmatpush.msrb.mxu0 %v4758_v5  ;;  %2300 = vmatpush.msra.mxu3 %v4778_v42 }
 0xb88   :  { %2275 = vmatpush.msra.mxu2 %v4797_v2 }
 0xb89   :  { %2211 = vmatpush.msrb.mxu0 %v4764_v25 }
 0xb8b   :  { %2214 = vmatpush.msrb.mxu0 %v4787_v52 }
 0xb8c   :  { %2046 = vmatmul.f32.vlgmr.msra.gmra.mxu0 %v1910_v48 }
 0xb8d   :  { %2392 = vmatpush.msra.mxu0 %v2391_v61 }
 0xbf9   :  { %v1957_v16 = vpop.f32.mrf.mxu1 }
 0xc01   :  { %v1916_v39 = vpop.f32.mrf.mxu0  ;;  %v1987_v35 = vpop.f32.mrf.mxu2 }
 0xc02   :  { %v1958_v51 = vadd.f32 %v1957_v16, %v1916_v39  ;;  %v2072_v45 = vpop.f32.mrf.mxu1  ;;  %v2393_v16 = vand.u32 4294901760, %v4213_v34 }
 0xc03   :  { %v2014_v37 = vpop.f32.mrf.mxu3 }
 0xc04   :  { %v1988_v27 = vadd.f32 %v1987_v35, %v1958_v51  ;;  %v2435_v35 = vsub.f32 %v4213_v34, %v2393_v16  ;;  %2394 = vmatpush.msra.mxu0 %v2393_v16 }
 0xc06   :  { %v2015_v54 = vadd.f32 %v2014_v37, %v1988_v27  ;;  %v4211_v37 = vld [vmem:[%s5343_s5 + $0x20] sm:$0xff] }
 0xc09   :  { %v2047_v38 = vpop.f32.mrf.mxu0 }
 0xc0a   :  { %v2048_v49 = vadd.f32 %v2047_v38, %v2015_v54  ;;  %v2436_v38 = vand.u32 4294901760, %v2435_v35 }
 0xc0c   :  { %v2073_v5 = vadd.f32 %v2072_v45, %v2048_v49  ;;  %v2397_v45 = vand.u32 4294901760, %v4211_v37 }
 0xc0e   :  { %v2075_v42 = vadd.f32 %v2073_v5, %v4861_v50 }
 0xc10   :  { %4268 = vtanh.f32 %v2075_v42  ;;  %v4209_v25 = vmul.f32 -1.442695, %v2075_v42  ;;  %v2437_v42 = vsub.f32 %v2435_v35, %v2436_v38 }
 0xc12   :  { %4270 = vpow2.f32 %v4209_v25  ;;  %v2447_v25 = vsub.f32 %v4211_v37, %v2397_v45 }
 0xc16   :  { %v4269_v2 = vpop.eup %4268 }
 0xc17   :  { %2101 = vrot.lane.b32.xlu1 %v4269_v2, %s4358_s2 }
 0xc18   :  { %v4271_v52 = vpop.eup %4270 }
 0xc19   :  { %v2079_v28 = vadd.f32 1.0, %v4271_v52  ;;  %v2438_v52 = vand.u32 4294901760, %v2437_v42 }
 0xc1b   :  { %4272 = vrcp.f32 %v2079_v28  ;;  %v2091_v55 = vand.u32 2147483648, %v2079_v28  ;;  %vm2085_vm14 = vweird.f32 %v2079_v28  ;;  %v2089_v56 = vand.u32 2147483647, %v2079_v28 }
 0xc1d   :  { %v2092_v57 = vor.u32 1.1754944e-38, %v2091_v55  ;;  %vm2090_vm0 = vcmp.eq.f32.partialorder %v2089_v56, 8.507059e+37 }
 0xc21   :  { %v4273_v26 = vpop.eup %4272 }
 0xc22   :  { %v2081_v31 = vmul.f32 %v4273_v26, %v2079_v28  ;;  %vm2086_vm7 = vweird.f32 %v4273_v26 }
 0xc23   :  { %vm2087_vm15 = vmor %vm2085_vm14, %vm2086_vm7 }
 0xc24   :  { %v2082_v46 = vsub.f32 1.0, %v2081_v31 }
 0xc26   :  { %v2083_v53 = vmul.f32 %v4273_v26, %v2082_v46 }
 0xc28   :  { %v2084_v47 = vadd.f32 %v4273_v26, %v2083_v53 }
 0xc2a   :  { %v2088_v8 = vsel %vm2087_vm15, %v4273_v26, %v2084_v47  ;;  %v2448_v26 = vand.u32 4294901760, %v2447_v25 }
 0xc2b   :  { %v2093_v63 = vsel %vm2090_vm0, %v2092_v57, %v2088_v8 }
 0xc2c   :  { %v2099_v18 = vmul.f32 %v2097_v23, %v2093_v63  ;;  %v2449_v46 = vsub.f32 %v2447_v25, %v2448_v26 }
 0xc2e   :  { %v2450_v47 = vand.u32 4294901760, %v2449_v46 }
 0xc89   :  { %v2102_v62 = vpop.permute.xlu1 %2101 }
 0xc8a   :  { %v2104_v0 = vmul.f32 %v2102_v62, %v2093_v63 }
 0xc8c   :  { %2106 = vrot.lane.b32.xlu2 %v2104_v0, %s4359_s21 }
 0xce6   :  { %v2107_v19 = vpop.permute.xlu2 %2106 }
 0xce7   :  { %v5012_v29 = vadd.f32 %v2107_v19, %v2099_v18 }
 0xce9   :  { %4274 = vtanh.f32 %v5012_v29 }
 0xcef   :  { %v4275_v30 = vpop.eup %4274 }
 0xcf0   :  { %2112 = vrot.lane.b32.xlu0 %v4275_v30, %s4358_s2 }
 0xd62   :  { %v2113_v36 = vpop.permute.xlu0 %2112 }
 0xd63   :  { %v5016_v41 = vmul.f32 %v2113_v36, %v2093_v63 }
 0xd65   :  { %2117 = vrot.lane.b32.xlu1 %v5016_v41, %s4359_s21 }
 0xdd7   :  { %v2118_v43 = vpop.permute.xlu1 %2117 }
 0xdd8   :  { %v2119_v44 = vsel %vm263_vm4, %v2118_v43, 0 }
 0xdd9   :  { %v2141_v59 = vand.u32 4294901760, %v2119_v44 }
 0xddb   :  { %v2142_v60 = vsub.f32 %v2119_v44, %v2141_v59  ;;  %2187 = vmatmul.f32.vlgmr.msrb.gmra.mxu3 %v2141_v59 }
 0xddc   :  { %2509 = vmatpush.msrb.mxu3 %v2391_v61 }
 0xddd   :  { %v2143_v1 = vand.u32 4294901760, %v2142_v60  ;;  %2217 = vmatmul.f32.vlgmr.msrb.gmra.mxu0 %v2142_v60 }
 0xdde   :  { %2511 = vmatpush.msrb.mxu3 %v2393_v16 }
 0xddf   :  { %v2144_v3 = vsub.f32 %v2142_v60, %v2143_v1  ;;  %2244 = vmatmul.f32.vlgmr.msrb.gmra.mxu1 %v2143_v1 }
 0xde1   :  { %v2145_v40 = vand.u32 4294901760, %v2144_v3 }
 0xde3   :  { %2146 = vmatmul.f32.vlgmr.msrb.gmra.mxu2 %v2145_v40  ;;  %2302 = vmatmul.f32.vlgmr.msra.gmra.mxu3 %v2141_v59  ;;  %v2331_v40 = vrot.slane %v5012_v29, 6  ;;  %v4217_v29 = vld [vmem:[%s5344_s6 + $0x30] sm:$0xff] }
 0xdeb   :  { %2277 = vmatmul.f32.vlgmr.msra.gmra.mxu2 %v2141_v59 }
 0xe5a   :  { %v2218_v24 = vpop.f32.mrf.mxu0 }
 0xe5c   :  { %v2245_v6 = vpop.f32.mrf.mxu1 }
 0xe5e   :  { %v2188_v12 = vpop.f32.mrf.mxu3 }
 0xe66   :  { %v2147_v13 = vpop.f32.mrf.mxu2  ;;  %v2303_v11 = vpop.f32.mrf.mxu3 }
 0xe67   :  { %v2189_v17 = vadd.f32 %v2188_v12, %v2147_v13 }
 0xe69   :  { %v2219_v4 = vadd.f32 %v2218_v24, %v2189_v17 }
 0xe6b   :  { %v2246_v7 = vadd.f32 %v2245_v6, %v2219_v4 }
 0xe6e   :  { %v2278_v9 = vpop.f32.mrf.mxu2 }
 0xe6f   :  { %v2279_v10 = vadd.f32 %v2278_v9, %v2246_v7  ;;  %v4218_v9 = vld [vmem:[%s5344_s6 + $0x38] sm:$0xff] }
 0xe71   :  { %v2304_v14 = vadd.f32 %v2303_v11, %v2279_v10  ;;  %v5051_v10 = vand.u32 4294901760, %v4218_v9 }
 0xe73   :  { %v2307_v22 = vrot.slane %v2304_v14, 6  ;;  %v5058_v11 = vsub.f32 %v4218_v9, %v5051_v10  ;;  %v5060_v14 = vand.u32 4294901760, %v4217_v29 }
 0xe75   :  { %v2309_v33 = vadd.f32 %v2307_v22, %v4861_v50  ;;  %v2429_v50 = vsub.f32 %v4214_v21, %v2391_v61  ;;  %v5067_v22 = vand.u32 4294901760, %v5058_v11 }
 0xe77   :  { %4276 = vtanh.f32 %v2309_v33  ;;  %v4210_v48 = vmul.f32 -1.442695, %v2309_v33  ;;  %v2430_v51 = vand.u32 4294901760, %v2429_v50  ;;  %2475 = vmatpush.msrb.mxu2 %v2429_v50  ;;  %v5071_v33 = vsub.f32 %v4217_v29, %v5060_v14 }
 0xe78   :  { %v2639_v21 = vsub.f32 %v5058_v11, %v5067_v22 }
 0xe79   :  { %4278 = vpow2.f32 %v4210_v48  ;;  %v2431_v54 = vsub.f32 %v2429_v50, %v2430_v51  ;;  %2478 = vmatpush.msrb.mxu2 %v2435_v35  ;;  %v4215_v48 = vld [vmem:[%s5344_s6 + $0x20] sm:$0xff] }
 0xe7a   :  { %v5088_v34 = vand.u32 4294901760, %v4215_v48  ;;  %v5092_v50 = vand.u32 4294901760, %v2639_v21 }
 0xe7b   :  { %v2432_v5 = vand.u32 4294901760, %v2431_v54 }
 0xe7d   :  { %v4277_v20 = vpop.eup %4276  ;;  %2433 = vmatpush.msra.mxu1 %v2432_v5 }
 0xe7e   :  { %2335 = vrot.lane.b32.xlu2 %v4277_v20, %s4358_s2 }
 0xe7f   :  { %v4279_v15 = vpop.eup %4278  ;;  %2439 = vmatpush.msra.mxu1 %v2438_v52 }
 0xe80   :  { %v2313_v39 = vadd.f32 1.0, %v4279_v15  ;;  %v5082_v15 = vand.u32 4294901760, %v5071_v33 }
 0xe82   :  { %4280 = vrcp.f32 %v2313_v39  ;;  %v2325_v62 = vand.u32 2147483648, %v2313_v39  ;;  %vm2319_vm3 = vweird.f32 %v2313_v39  ;;  %v2323_v63 = vand.u32 2147483647, %v2313_v39 }
 0xe84   :  { %v2326_v23 = vor.u32 1.1754944e-38, %v2325_v62  ;;  %vm2324_vm6 = vcmp.eq.f32.partialorder %v2323_v63, 8.507059e+37 }
 0xe86   :  { %2371 = vrot.lane.b32.xlu2 %v4988_v32, %s4359_s21  ;;  %v4212_v32 = vld [vmem:[%s5343_s5 + $0x28] sm:$0xff] }
 0xe87   :  { %v2395_v27 = vand.u32 4294901760, %v4212_v32 }
 0xe88   :  { %v4281_v53 = vpop.eup %4280 }
 0xe89   :  { %v2441_v49 = vsub.f32 %v4212_v32, %v2395_v27  ;;  %2513 = vmatpush.msrb.mxu3 %v2395_v27  ;;  %2396 = vmatpush.msra.mxu0 %v2395_v27  ;;  %v2315_v55 = vmul.f32 %v4281_v53, %v2313_v39  ;;  %vm2320_vm1 = vweird.f32 %v4281_v53  ;;  %v5101_v32 = vsub.f32 %v4215_v48, %v5088_v34 }
 0xe8a   :  { %vm2321_vm5 = vmor %vm2319_vm3, %vm2320_vm1 }
 0xe8b   :  { %v2442_v2 = vand.u32 4294901760, %v2441_v49  ;;  %2481 = vmatpush.msrb.mxu2 %v2441_v49  ;;  %2515 = vmatpush.msrb.mxu3 %v2397_v45  ;;  %v2316_v56 = vsub.f32 1.0, %v2315_v55 }
 0xe8c   :  { %2398 = vmatpush.msra.mxu0 %v2397_v45 }
 0xe8d   :  { %v2443_v28 = vsub.f32 %v2441_v49, %v2442_v2  ;;  %2484 = vmatpush.msrb.mxu2 %v2447_v25  ;;  %v2317_v8 = vmul.f32 %v4281_v53, %v2316_v56  ;;  %2641 = vmatpush.msra.mxu3 %v5092_v50 }
 0xe8e   :  { %2544 = vmatpush.msrb.mxu0 %v2430_v51 }
 0xe8f   :  { %v2444_v31 = vand.u32 4294901760, %v2443_v28  ;;  %v2318_v57 = vadd.f32 %v4281_v53, %v2317_v8  ;;  %2608 = vmatpush.msra.mxu2 %v5051_v10 }
 0xe90   :  { %2548 = vmatpush.msrb.mxu0 %v2436_v38 }
 0xe91   :  { %2445 = vmatpush.msra.mxu1 %v2444_v31  ;;  %v2322_v0 = vsel %vm2321_vm5, %v4281_v53, %v2318_v57  ;;  %2610 = vmatpush.msra.mxu2 %v5060_v14 }
 0xe92   :  { %2552 = vmatpush.msrb.mxu0 %v2442_v2  ;;  %v2327_v19 = vsel %vm2324_vm6, %v2326_v23, %v2322_v0 }
 0xe93   :  { %2451 = vmatpush.msra.mxu1 %v2450_v47  ;;  %v2333_v12 = vmul.f32 %v2331_v40, %v2327_v19  ;;  %v4234_v47 = vld [vmem:[%s5345_s7 + $0x1] ss:$0 sm:$0xff] }
 0xe94   :  { %2556 = vmatpush.msrb.mxu0 %v2448_v26 }
 0xe95   :  { %2579 = vmatpush.msrb.mxu1 %v2391_v61 }
 0xe97   :  { %2581 = vmatpush.msrb.mxu1 %v2393_v16  ;;  %v2645_v16 = vsub.f32 %v5071_v33, %v5082_v15 }
 0xe99   :  { %2583 = vmatpush.msrb.mxu1 %v2395_v27  ;;  %v5107_v51 = vand.u32 4294901760, %v2645_v16  ;;  %v5112_v27 = vand.u32 4294901760, %v5101_v32 }
 0xe9b   :  { %2585 = vmatpush.msrb.mxu1 %v2397_v45  ;;  %2647 = vmatpush.msra.mxu3 %v5107_v51  ;;  %v2657_v54 = vsub.f32 %v5101_v32, %v5112_v27 }
 0xe9d   :  { %v5124_v38 = vand.u32 4294901760, %v2657_v54 }
 0xed8   :  { %v2336_v18 = vpop.permute.xlu2 %2335 }
 0xed9   :  { %v2338_v30 = vmul.f32 %v2336_v18, %v2327_v19 }
 0xedb   :  { %2340 = vrot.lane.b32.xlu0 %v2338_v30, %s4359_s21 }
 0xee0   :  { %v2372_v36 = vpop.permute.xlu2 %2371 }
 0xee1   :  { %v2375_v43 = vsel %vm263_vm4, %v2372_v36, 0 }
 0xee2   :  { %v5039_v44 = vand.u32 4294901760, %v2375_v43 }
 0xee4   :  { %v2400_v59 = vsub.f32 %v2375_v43, %v5039_v44  ;;  %2453 = vmatmul.f32.vlgmr.msra.gmra.mxu1 %v5039_v44 }
 0xee5   :  { %2768 = vmatpush.msra.mxu1 %v5051_v10 }
 0xee6   :  { %v2401_v60 = vand.u32 4294901760, %v2400_v59  ;;  %2487 = vmatmul.f32.vlgmr.msrb.gmra.mxu2 %v2400_v59 }
 0xee7   :  { %2770 = vmatpush.msra.mxu1 %v5060_v14 }
 0xee8   :  { %v2402_v1 = vsub.f32 %v2400_v59, %v2401_v60  ;;  %2519 = vmatmul.f32.vlgmr.msrb.gmra.mxu3 %v2401_v60 }
 0xeea   :  { %v2403_v3 = vand.u32 4294901760, %v2402_v1 }
 0xeec   :  { %2404 = vmatmul.f32.vlgmr.msra.gmra.mxu0 %v2403_v3 }
 0xeed   :  { %2737 = vmatpush.msra.mxu0 %v5067_v22 }
 0xeef   :  { %2741 = vmatpush.msra.mxu0 %v5082_v15 }
 0xf4d   :  { %v2341_v13 = vpop.permute.xlu0 %2340 }
 0xf4e   :  { %v2343_v17 = vadd.f32 %v2341_v13, %v2333_v12 }
 0xf50   :  { %4282 = vtanh.f32 %v2343_v17 }
 0xf56   :  { %v4283_v24 = vpop.eup %4282 }
 0xf57   :  { %2346 = vrot.lane.b32.xlu1 %v4283_v24, %s4358_s2 }
 0xf61   :  { %v2454_v28 = vpop.f32.mrf.mxu1 }
 0xf69   :  { %v2405_v26 = vpop.f32.mrf.mxu0  ;;  %v2488_v31 = vpop.f32.mrf.mxu2 }
 0xf6b   :  { %v2520_v46 = vpop.f32.mrf.mxu3 }
 0xfc9   :  { %v2347_v4 = vpop.permute.xlu1 %2346 }
 0xfca   :  { %v2349_v6 = vmul.f32 %v2347_v4, %v2327_v19  ;;  %v2406_v19 = vadd.f32 %v4234_v47, %v2405_v26 }
 0xfcc   :  { %v2353_v7 = vsel %vm270_vm2, %v5016_v41, %v2349_v6  ;;  %v4216_v41 = vld [vmem:[%s5344_s6 + $0x28] sm:$0xff]  ;;  %v2455_v36 = vadd.f32 %v2454_v28, %v2406_v19 }
 0xfcd   :  { %2373 = vrot.lane.b32.xlu0 %v2353_v7, %s4359_s21  ;;  %v5073_v20 = vand.u32 4294901760, %v4216_v41 }
 0xfce   :  { %v2489_v60 = vadd.f32 %v2488_v31, %v2455_v36 }
 0xfcf   :  { %2612 = vmatpush.msra.mxu2 %v5073_v20  ;;  %v5086_v61 = vsub.f32 %v4216_v41, %v5073_v20  ;;  %2772 = vmatpush.msra.mxu1 %v5073_v20 }
 0xfd0   :  { %v2521_v17 = vadd.f32 %v2520_v46, %v2489_v60 }
 0xfd1   :  { %v5097_v39 = vand.u32 4294901760, %v5086_v61  ;;  %2614 = vmatpush.msra.mxu2 %v5088_v34  ;;  %2774 = vmatpush.msra.mxu1 %v5088_v34 }
 0xfd3   :  { %2679 = vmatpush.msrb.mxu2 %v5058_v11  ;;  %v2651_v35 = vsub.f32 %v5086_v61, %v5097_v39  ;;  %2745 = vmatpush.msra.mxu0 %v5097_v39 }
 0xfd5   :  { %2682 = vmatpush.msrb.mxu2 %v5071_v33  ;;  %v5117_v37 = vand.u32 4294901760, %v2651_v35  ;;  %2749 = vmatpush.msra.mxu0 %v5112_v27 }
 0xfd7   :  { %2685 = vmatpush.msrb.mxu2 %v5086_v61  ;;  %2653 = vmatpush.msra.mxu3 %v5117_v37 }
 0xfd9   :  { %2688 = vmatpush.msrb.mxu2 %v5101_v32  ;;  %2659 = vmatpush.msra.mxu3 %v5124_v38 }
 0xfdb   :  { %2708 = vmatpush.msrb.mxu3 %v5051_v10 }
 0xfdd   :  { %2710 = vmatpush.msrb.mxu3 %v5060_v14 }
 0xfdf   :  { %2712 = vmatpush.msrb.mxu3 %v5073_v20 }
 0xfe1   :  { %2714 = vmatpush.msrb.mxu3 %v5088_v34 }
0x103f   :  { %v2374_v49 = vpop.permute.xlu0 %2373 }
0x1040   :  { %v2377_v45 = vsel %vm263_vm4, %v2374_v49, 0 }
0x1041   :  { %v2407_v5 = vand.u32 4294901760, %v2377_v45 }
0x1043   :  { %v2408_v42 = vsub.f32 %v2377_v45, %v2407_v5  ;;  %2457 = vmatmul.f32.gmra.mxu1 %v2407_v5 }
0x1045   :  { %2492 = vmatmul.f32.gmra.mxu2 %v2408_v42  ;;  %v2409_v2 = vand.u32 4294901760, %v2408_v42 }
0x1047   :  { %2525 = vmatmul.f32.gmra.mxu3 %v2409_v2  ;;  %v2410_v25 = vsub.f32 %v2408_v42, %v2409_v2 }
0x1049   :  { %v2411_v52 = vand.u32 4294901760, %v2410_v25 }
0x104b   :  { %2412 = vmatmul.f32.gmra.mxu0 %v2411_v52  ;;  %2587 = vmatmul.f32.vlgmr.msrb.gmra.mxu1 %v5039_v44 }
0x104c   :  { %2936 = vmatpush.msrb.mxu1 %v5051_v10 }
0x104d   :  { %2620 = vmatmul.f32.vlgmr.msra.gmra.mxu2 %v4360_v58 }
0x104e   :  { %2938 = vmatpush.msrb.mxu1 %v5060_v14  ;;  %2836 = vmatpush.msra.mxu2 %v5051_v10 }
0x104f   :  { %2661 = vmatmul.f32.vlgmr.msra.gmra.mxu3 %v4360_v58 }
0x1050   :  { %2869 = vmatpush.msra.mxu3 %v5092_v50  ;;  %2940 = vmatpush.msrb.mxu1 %v5073_v20 }
0x1051   :  { %2838 = vmatpush.msra.mxu2 %v5060_v14 }
0x1052   :  { %2875 = vmatpush.msra.mxu3 %v5107_v51  ;;  %2942 = vmatpush.msrb.mxu1 %v5088_v34 }
0x1053   :  { %2558 = vmatmul.f32.vlgmr.msrb.gmra.mxu0 %v5039_v44  ;;  %2591 = vmatmul.f32.gmra.mxu1 %v2407_v5 }
0x1054   :  { %2907 = vmatpush.msrb.mxu0 %v5058_v11  ;;  %2881 = vmatpush.msra.mxu3 %v5117_v37 }
0x1055   :  { %2691 = vmatmul.f32.vlgmr.msrb.gmra.mxu2 %v4360_v58 }
0x1056   :  { %2910 = vmatpush.msrb.mxu0 %v5071_v33  ;;  %2887 = vmatpush.msra.mxu3 %v5124_v38 }
0x1057   :  { %2718 = vmatmul.f32.vlgmr.msrb.gmra.mxu3 %v4360_v58  ;;  %2840 = vmatpush.msra.mxu2 %v5073_v20 }
0x1058   :  { %2913 = vmatpush.msrb.mxu0 %v5086_v61  ;;  %2996 = vmatpush.msrb.mxu3 %v5051_v10 }
0x1059   :  { %2842 = vmatpush.msra.mxu2 %v5088_v34 }
0x105a   :  { %2916 = vmatpush.msrb.mxu0 %v5101_v32  ;;  %2998 = vmatpush.msrb.mxu3 %v5060_v14 }
0x105b   :  { %2562 = vmatmul.f32.gmra.mxu0 %v2407_v5  ;;  %2776 = vmatmul.f32.vlgmr.msra.gmra.mxu1 %v4360_v58 }
0x105c   :  { %3000 = vmatpush.msrb.mxu3 %v5073_v20  ;;  %2965 = vmatpush.msrb.mxu2 %v5067_v22 }
0x105d   :  { %3104 = vmatpush.msra.mxu1 %v5092_v50 }
0x105e   :  { %3002 = vmatpush.msrb.mxu3 %v5088_v34  ;;  %2969 = vmatpush.msrb.mxu2 %v5082_v15 }
0x105f   :  { %3110 = vmatpush.msra.mxu1 %v5107_v51 }
0x1060   :  { %2973 = vmatpush.msrb.mxu2 %v5097_v39 }
0x1061   :  { %3116 = vmatpush.msra.mxu1 %v5117_v37 }
0x1062   :  { %2977 = vmatpush.msrb.mxu2 %v5112_v27 }
0x1063   :  { %2751 = vmatmul.f32.vlgmr.msra.gmra.mxu0 %v4360_v58  ;;  %3122 = vmatpush.msra.mxu1 %v5124_v38 }
0x1064   :  { %3071 = vmatpush.msra.mxu0 %v5051_v10 }
0x1066   :  { %3073 = vmatpush.msra.mxu0 %v5060_v14 }
0x1068   :  { %3075 = vmatpush.msra.mxu0 %v5073_v20 }
0x106a   :  { %3077 = vmatpush.msra.mxu0 %v5088_v34 }
0x10c0   :  { %v2458_v53 = vpop.f32.mrf.mxu1 }
0x10c8   :  { %v2413_v58 = vpop.f32.mrf.mxu0  ;;  %v2493_v55 = vpop.f32.mrf.mxu2 }
0x10c9   :  { %v2414_v56 = vadd.f32 %v4234_v47, %v2413_v58  ;;  %v2588_v63 = vpop.f32.mrf.mxu1 }
0x10ca   :  { %v2526_v8 = vpop.f32.mrf.mxu3 }
0x10cb   :  { %v2459_v57 = vadd.f32 %v2458_v53, %v2414_v56 }
0x10cd   :  { %v2494_v62 = vadd.f32 %v2493_v55, %v2459_v57 }
0x10cf   :  { %v2527_v0 = vadd.f32 %v2526_v8, %v2494_v62 }
0x10d0   :  { %v2559_v23 = vpop.f32.mrf.mxu0  ;;  %v2621_v18 = vpop.f32.mrf.mxu2 }
0x10d1   :  { %v2592_v43 = vpop.f32.mrf.mxu1  ;;  %v2560_v24 = vadd.f32 %v2559_v23, %v2521_v17 }
0x10d2   :  { %v2662_v30 = vpop.f32.mrf.mxu3 }
0x10d3   :  { %v2663_v1 = vadd.f32 %v2662_v30, %v2621_v18  ;;  %v5178_v29 = vadd.f32 %v2588_v63, %v2560_v24 }
0x10d8   :  { %v2563_v44 = vpop.f32.mrf.mxu0  ;;  %v2692_v59 = vpop.f32.mrf.mxu2 }
0x10d9   :  { %v2564_v3 = vadd.f32 %v2563_v44, %v2527_v0  ;;  %v2693_v12 = vadd.f32 %v2692_v59, %v2663_v1  ;;  %v2777_v7 = vpop.f32.mrf.mxu1 }
0x10da   :  { %v2719_v13 = vpop.f32.mrf.mxu3 }
0x10db   :  { %v5176_v40 = vadd.f32 %v2592_v43, %v2564_v3  ;;  %v2720_v4 = vadd.f32 %v2719_v13, %v2693_v12 }
0x10e0   :  { %v2752_v6 = vpop.f32.mrf.mxu0 }
0x10e1   :  { %v2753_v9 = vadd.f32 %v2752_v6, %v2720_v4 }
0x10e3   :  { %v2778_v41 = vadd.f32 %v2777_v7, %v2753_v9 }
0x10e5   :  { %v2780_v48 = vadd.f32 %v2778_v41, %v5178_v29 }
0x10e7   :  { %4284 = vtanh.f32 %v2780_v48  ;;  %v4220_v16 = vmul.f32 -1.442695, %v2780_v48 }
0x10e9   :  { %4286 = vpow2.f32 %v4220_v16 }
0x10ed   :  { %v4285_v21 = vpop.eup %4284 }
0x10ee   :  { %2803 = vrot.lane.b32.xlu1 %v4285_v21, %s4358_s2 }
0x10ef   :  { %v4287_v35 = vpop.eup %4286 }
0x10f0   :  { %v2784_v54 = vadd.f32 1.0, %v4287_v35 }
0x10f2   :  { %4288 = vrcp.f32 %v2784_v54  ;;  %v2796_v25 = vand.u32 2147483648, %v2784_v54  ;;  %vm2790_vm8 = vweird.f32 %v2784_v54  ;;  %v2794_v52 = vand.u32 2147483647, %v2784_v54 }
0x10f4   :  { %v2797_v26 = vor.u32 1.1754944e-38, %v2796_v25  ;;  %vm2795_vm9 = vcmp.eq.f32.partialorder %v2794_v52, 8.507059e+37 }
0x10f8   :  { %v4289_v49 = vpop.eup %4288 }
0x10f9   :  { %v2786_v45 = vmul.f32 %v4289_v49, %v2784_v54  ;;  %vm2791_vm2 = vweird.f32 %v4289_v49 }
0x10fa   :  { %vm2792_vm10 = vmor %vm2790_vm8, %vm2791_vm2 }
0x10fb   :  { %v2787_v5 = vsub.f32 1.0, %v2786_v45 }
0x10fd   :  { %v2788_v42 = vmul.f32 %v4289_v49, %v2787_v5 }
0x10ff   :  { %v2789_v2 = vadd.f32 %v4289_v49, %v2788_v42 }
0x1101   :  { %v2793_v28 = vsel %vm2792_vm10, %v4289_v49, %v2789_v2 }
0x1102   :  { %v2798_v46 = vsel %vm2795_vm9, %v2797_v26, %v2793_v28 }
0x1103   :  { %v2801_v47 = vmul.f32 0.0, %v2798_v46 }
0x1160   :  { %v2804_v31 = vpop.permute.xlu1 %2803 }
0x1161   :  { %v2806_v53 = vmul.f32 %v2804_v31, %v2798_v46 }
0x1163   :  { %2808 = vrot.lane.b32.xlu2 %v2806_v53, %s4359_s21 }
0x11bd   :  { %v2809_v58 = vpop.permute.xlu2 %2808 }
0x11be   :  { %v5183_v55 = vadd.f32 %v2809_v58, %v2801_v47 }
0x11c0   :  { %4290 = vtanh.f32 %v5183_v55  ;;  %v3033_v26 = vrot.slane %v5183_v55, 6 }
0x11c6   :  { %v4291_v56 = vpop.eup %4290 }
0x11c7   :  { %2814 = vrot.lane.b32.xlu0 %v4291_v56, %s4358_s2 }
0x1239   :  { %v2815_v8 = vpop.permute.xlu0 %2814 }
0x123a   :  { %v2817_v57 = vmul.f32 %v2815_v8, %v2798_v46 }
0x123c   :  { %2819 = vrot.lane.b32.xlu1 %v2817_v57, %s4359_s21 }
0x12ae   :  { %v2820_v62 = vpop.permute.xlu1 %2819 }
0x12af   :  { %v2821_v63 = vsel %vm263_vm4, %v2820_v62, 0 }
0x12b0   :  { %v2843_v0 = vand.u32 4294901760, %v2821_v63 }
0x12b2   :  { %v2844_v23 = vsub.f32 %v2821_v63, %v2843_v0  ;;  %2889 = vmatmul.f32.vlgmr.msra.gmra.mxu3 %v2843_v0 }
0x12b3   :  { %3171 = vmatpush.msra.mxu3 %v5051_v10 }
0x12b4   :  { %v2845_v18 = vand.u32 4294901760, %v2844_v23  ;;  %2919 = vmatmul.f32.vlgmr.msrb.gmra.mxu0 %v2844_v23 }
0x12b5   :  { %3173 = vmatpush.msra.mxu3 %v5060_v14  ;;  %3200 = vmatpush.msrb.mxu0 %v5067_v22 }
0x12b6   :  { %v2846_v19 = vsub.f32 %v2844_v23, %v2845_v18  ;;  %2946 = vmatmul.f32.vlgmr.msrb.gmra.mxu1 %v2845_v18 }
0x12b7   :  { %3175 = vmatpush.msra.mxu3 %v5073_v20  ;;  %3231 = vmatpush.msrb.mxu1 %v5051_v10 }
0x12b8   :  { %v2847_v30 = vand.u32 4294901760, %v2846_v19  ;;  %3204 = vmatpush.msrb.mxu0 %v5082_v15 }
0x12b9   :  { %3177 = vmatpush.msra.mxu3 %v5088_v34  ;;  %3233 = vmatpush.msrb.mxu1 %v5060_v14 }
0x12ba   :  { %2848 = vmatmul.f32.vlgmr.msra.gmra.mxu2 %v2847_v30  ;;  %3004 = vmatmul.f32.vlgmr.msrb.gmra.mxu3 %v2843_v0 }
0x12bb   :  { %3142 = vmatpush.msra.mxu2 %v5058_v11  ;;  %3235 = vmatpush.msrb.mxu1 %v5073_v20 }
0x12bc   :  { %3208 = vmatpush.msrb.mxu0 %v5097_v39  ;;  %3339 = vmatpush.msrb.mxu3 %v5092_v50 }
0x12bd   :  { %3145 = vmatpush.msra.mxu2 %v5071_v33  ;;  %3237 = vmatpush.msrb.mxu1 %v5088_v34 }
0x12be   :  { %3212 = vmatpush.msrb.mxu0 %v5112_v27  ;;  %3345 = vmatpush.msrb.mxu3 %v5107_v51 }
0x12bf   :  { %3148 = vmatpush.msra.mxu2 %v5086_v61 }
0x12c0   :  { %3351 = vmatpush.msrb.mxu3 %v5117_v37 }
0x12c1   :  { %3151 = vmatpush.msra.mxu2 %v5101_v32 }
0x12c2   :  { %2979 = vmatmul.f32.vlgmr.msrb.gmra.mxu2 %v2843_v0  ;;  %3357 = vmatpush.msrb.mxu3 %v5124_v38 }
0x12c3   :  { %3306 = vmatpush.msrb.mxu2 %v5051_v10 }
0x12c5   :  { %3308 = vmatpush.msrb.mxu2 %v5060_v14 }
0x12c7   :  { %3310 = vmatpush.msrb.mxu2 %v5073_v20 }
0x12c9   :  { %3312 = vmatpush.msrb.mxu2 %v5088_v34 }
0x1331   :  { %v2920_v59 = vpop.f32.mrf.mxu0 }
0x1333   :  { %v2947_v1 = vpop.f32.mrf.mxu1 }
0x1335   :  { %v2890_v36 = vpop.f32.mrf.mxu3 }
0x133d   :  { %v2849_v43 = vpop.f32.mrf.mxu2  ;;  %v3005_v17 = vpop.f32.mrf.mxu3 }
0x133e   :  { %v2891_v44 = vadd.f32 %v2890_v36, %v2849_v43 }
0x1340   :  { %v2921_v60 = vadd.f32 %v2920_v59, %v2891_v44 }
0x1342   :  { %v2948_v3 = vadd.f32 %v2947_v1, %v2921_v60 }
0x1345   :  { %v2980_v12 = vpop.f32.mrf.mxu2 }
0x1346   :  { %v2981_v13 = vadd.f32 %v2980_v12, %v2948_v3 }
0x1348   :  { %v3006_v24 = vadd.f32 %v3005_v17, %v2981_v13 }
0x134a   :  { %v3009_v4 = vrot.slane %v3006_v24, 6 }
0x134c   :  { %v3011_v6 = vadd.f32 %v3009_v4, %v5178_v29 }
0x134e   :  { %4292 = vtanh.f32 %v3011_v6  ;;  %v4221_v9 = vmul.f32 -1.442695, %v3011_v6 }
0x1350   :  { %4294 = vpow2.f32 %v4221_v9 }
0x1354   :  { %v4293_v7 = vpop.eup %4292 }
0x1355   :  { %3037 = vrot.lane.b32.xlu2 %v4293_v7, %s4358_s2 }
0x1356   :  { %v4295_v41 = vpop.eup %4294 }
0x1357   :  { %v3015_v48 = vadd.f32 1.0, %v4295_v41 }
0x1359   :  { %4296 = vrcp.f32 %v3015_v48  ;;  %v3027_v45 = vand.u32 2147483648, %v3015_v48  ;;  %vm3021_vm12 = vweird.f32 %v3015_v48  ;;  %v3025_v5 = vand.u32 2147483647, %v3015_v48 }
0x135b   :  { %v3028_v2 = vor.u32 1.1754944e-38, %v3027_v45  ;;  %vm3026_vm7 = vcmp.eq.f32.partialorder %v3025_v5, 8.507059e+37 }
0x135f   :  { %v4297_v21 = vpop.eup %4296 }
0x1360   :  { %v3017_v16 = vmul.f32 %v4297_v21, %v3015_v48  ;;  %vm3022_vm11 = vweird.f32 %v4297_v21 }
0x1361   :  { %vm3023_vm13 = vmor %vm3021_vm12, %vm3022_vm11 }
0x1362   :  { %v3018_v35 = vsub.f32 1.0, %v3017_v16 }
0x1364   :  { %v3019_v54 = vmul.f32 %v4297_v21, %v3018_v35 }
0x1366   :  { %v3020_v49 = vadd.f32 %v4297_v21, %v3019_v54 }
0x1368   :  { %v3024_v42 = vsel %vm3023_vm13, %v4297_v21, %v3020_v49 }
0x1369   :  { %v3029_v52 = vsel %vm3026_vm7, %v3028_v2, %v3024_v42 }
0x136a   :  { %v3035_v31 = vmul.f32 %v3033_v26, %v3029_v52 }
0x13af   :  { %v3038_v25 = vpop.permute.xlu2 %3037 }
0x13b0   :  { %v3040_v28 = vmul.f32 %v3038_v25, %v3029_v52 }
0x13b2   :  { %3042 = vrot.lane.b32.xlu0 %v3040_v28, %s4359_s21 }
0x1424   :  { %v3043_v46 = vpop.permute.xlu0 %3042 }
0x1425   :  { %v5217_v53 = vadd.f32 %v3043_v46, %v3035_v31 }
0x1427   :  { %4298 = vtanh.f32 %v5217_v53 }
0x142d   :  { %v4299_v47 = vpop.eup %4298 }
0x142e   :  { %3048 = vrot.lane.b32.xlu1 %v4299_v47, %s4358_s2 }
0x14a0   :  { %v3049_v58 = vpop.permute.xlu1 %3048 }
0x14a1   :  { %v3051_v56 = vmul.f32 %v3049_v58, %v3029_v52  ;;  %v3268_v52 = vrot.slane %v5217_v53, 6 }
0x14a3   :  { %v3053_v8 = vrot.slane %v3051_v56, 2 }
0x14a5   :  { %3054 = vrot.lane.b32.xlu2 %v3053_v8, %s4359_s21 }
0x14ff   :  { %v3055_v57 = vpop.permute.xlu2 %3054 }
0x1500   :  { %v3056_v62 = vsel %vm263_vm4, %v3055_v57, 0 }
0x1501   :  { %v3078_v63 = vand.u32 4294901760, %v3056_v62 }
0x1503   :  { %v3079_v0 = vsub.f32 %v3056_v62, %v3078_v63  ;;  %3124 = vmatmul.f32.vlgmr.msra.gmra.mxu1 %v3078_v63 }
0x1504   :  { %3406 = vmatpush.msra.mxu1 %v5051_v10 }
0x1505   :  { %v3080_v55 = vand.u32 4294901760, %v3079_v0  ;;  %3154 = vmatmul.f32.vlgmr.msra.gmra.mxu2 %v3079_v0 }
0x1506   :  { %3408 = vmatpush.msra.mxu1 %v5060_v14  ;;  %3435 = vmatpush.msra.mxu2 %v5067_v22 }
0x1507   :  { %v3081_v23 = vsub.f32 %v3079_v0, %v3080_v55  ;;  %3181 = vmatmul.f32.vlgmr.msra.gmra.mxu3 %v3080_v55 }
0x1508   :  { %3410 = vmatpush.msra.mxu1 %v5073_v20  ;;  %3466 = vmatpush.msra.mxu3 %v5051_v10 }
0x1509   :  { %v3082_v18 = vand.u32 4294901760, %v3081_v23  ;;  %3439 = vmatpush.msra.mxu2 %v5082_v15 }
0x150a   :  { %3412 = vmatpush.msra.mxu1 %v5088_v34  ;;  %3468 = vmatpush.msra.mxu3 %v5060_v14 }
0x150b   :  { %3083 = vmatmul.f32.vlgmr.msra.gmra.mxu0 %v3082_v18  ;;  %3239 = vmatmul.f32.vlgmr.msrb.gmra.mxu1 %v3078_v63 }
0x150c   :  { %3377 = vmatpush.msra.mxu0 %v5058_v11  ;;  %3470 = vmatpush.msra.mxu3 %v5073_v20 }
0x150d   :  { %3443 = vmatpush.msra.mxu2 %v5097_v39  ;;  %3574 = vmatpush.msrb.mxu1 %v5092_v50 }
0x150e   :  { %3380 = vmatpush.msra.mxu0 %v5071_v33  ;;  %3472 = vmatpush.msra.mxu3 %v5088_v34 }
0x150f   :  { %3447 = vmatpush.msra.mxu2 %v5112_v27  ;;  %3580 = vmatpush.msrb.mxu1 %v5107_v51 }
0x1510   :  { %3383 = vmatpush.msra.mxu0 %v5086_v61 }
0x1511   :  { %3586 = vmatpush.msrb.mxu1 %v5117_v37 }
0x1512   :  { %3386 = vmatpush.msra.mxu0 %v5101_v32 }
0x1513   :  { %3214 = vmatmul.f32.vlgmr.msrb.gmra.mxu0 %v3078_v63  ;;  %3592 = vmatpush.msrb.mxu1 %v5124_v38 }
0x1514   :  { %3541 = vmatpush.msrb.mxu0 %v5051_v10 }
0x1516   :  { %3543 = vmatpush.msrb.mxu0 %v5060_v14 }
0x1518   :  { %3545 = vmatpush.msrb.mxu0 %v5073_v20 }
0x151a   :  { %3547 = vmatpush.msrb.mxu0 %v5088_v34 }
0x1580   :  { %v3125_v19 = vpop.f32.mrf.mxu1 }
0x1588   :  { %v3084_v30 = vpop.f32.mrf.mxu0  ;;  %v3155_v43 = vpop.f32.mrf.mxu2 }
0x1589   :  { %v3126_v36 = vadd.f32 %v3125_v19, %v3084_v30  ;;  %v3240_v12 = vpop.f32.mrf.mxu1 }
0x158a   :  { %v3182_v59 = vpop.f32.mrf.mxu3 }
0x158b   :  { %v3156_v44 = vadd.f32 %v3155_v43, %v3126_v36 }
0x158d   :  { %v3183_v60 = vadd.f32 %v3182_v59, %v3156_v44 }
0x1590   :  { %v3215_v1 = vpop.f32.mrf.mxu0 }
0x1591   :  { %v3216_v3 = vadd.f32 %v3215_v1, %v3183_v60 }
0x1593   :  { %v3241_v13 = vadd.f32 %v3240_v12, %v3216_v3 }
0x1595   :  { %v3244_v17 = vrot.slane %v3241_v13, 4 }
0x1597   :  { %v3246_v24 = vadd.f32 %v3244_v17, %v5178_v29 }
0x1599   :  { %4300 = vtanh.f32 %v3246_v24  ;;  %v4222_v6 = vmul.f32 -1.442695, %v3246_v24 }
0x159b   :  { %4302 = vpow2.f32 %v4222_v6 }
0x159f   :  { %v4301_v4 = vpop.eup %4300 }
0x15a0   :  { %3272 = vrot.lane.b32.xlu0 %v4301_v4, %s4358_s2 }
0x15a1   :  { %v4303_v7 = vpop.eup %4302 }
0x15a2   :  { %v3250_v9 = vadd.f32 1.0, %v4303_v7 }
0x15a4   :  { %4304 = vrcp.f32 %v3250_v9  ;;  %v3262_v54 = vand.u32 2147483648, %v3250_v9  ;;  %vm3256_vm15 = vweird.f32 %v3250_v9  ;;  %v3260_v49 = vand.u32 2147483647, %v3250_v9 }
0x15a6   :  { %v3263_v5 = vor.u32 1.1754944e-38, %v3262_v54  ;;  %vm3261_vm1 = vcmp.eq.f32.partialorder %v3260_v49, 8.507059e+37 }
0x15aa   :  { %v4305_v41 = vpop.eup %4304 }
0x15ab   :  { %v3252_v48 = vmul.f32 %v4305_v41, %v3250_v9  ;;  %vm3257_vm14 = vweird.f32 %v4305_v41 }
0x15ac   :  { %vm3258_vm0 = vmor %vm3256_vm15, %vm3257_vm14 }
0x15ad   :  { %v3253_v21 = vsub.f32 1.0, %v3252_v48 }
0x15af   :  { %v3254_v16 = vmul.f32 %v4305_v41, %v3253_v21 }
0x15b1   :  { %v3255_v35 = vadd.f32 %v4305_v41, %v3254_v16 }
0x15b3   :  { %v3259_v45 = vsel %vm3258_vm0, %v4305_v41, %v3255_v35 }
0x15b4   :  { %v3264_v2 = vsel %vm3261_vm1, %v3263_v5, %v3259_v45 }
0x15b5   :  { %v3270_v28 = vmul.f32 %v3268_v52, %v3264_v2 }
0x1612   :  { %v3273_v42 = vpop.permute.xlu0 %3272 }
0x1613   :  { %v3275_v25 = vmul.f32 %v3273_v42, %v3264_v2 }
0x1615   :  { %3277 = vrot.lane.b32.xlu1 %v3275_v25, %s4359_s21 }
0x1687   :  { %v3278_v26 = vpop.permute.xlu1 %3277 }
0x1688   :  { %v5251_v31 = vadd.f32 %v3278_v26, %v3270_v28 }
0x168a   :  { %4306 = vtanh.f32 %v5251_v31  ;;  %v3503_v54 = vrot.slane %v5251_v31, 6 }
0x1690   :  { %v4307_v46 = vpop.eup %4306 }
0x1691   :  { %3283 = vrot.lane.b32.xlu2 %v4307_v46, %s4358_s2 }
0x16eb   :  { %v3284_v47 = vpop.permute.xlu2 %3283 }
0x16ec   :  { %v3286_v58 = vmul.f32 %v3284_v47, %v3264_v2 }
0x16ee   :  { %v3288_v56 = vrot.slane %v3286_v58, 4 }
0x16f0   :  { %3289 = vrot.lane.b32.xlu0 %v3288_v56, %s4359_s21 }
0x1762   :  { %v3290_v8 = vpop.permute.xlu0 %3289 }
0x1763   :  { %v3291_v57 = vsel %vm263_vm4, %v3290_v8, 0 }
0x1764   :  { %v3313_v62 = vand.u32 4294901760, %v3291_v57 }
0x1766   :  { %v3314_v63 = vsub.f32 %v3291_v57, %v3313_v62  ;;  %3359 = vmatmul.f32.vlgmr.msrb.gmra.mxu3 %v3313_v62 }
0x1767   :  { %3641 = vmatpush.msrb.mxu3 %v5051_v10 }
0x1768   :  { %v3315_v53 = vand.u32 4294901760, %v3314_v63  ;;  %3389 = vmatmul.f32.vlgmr.msra.gmra.mxu0 %v3314_v63 }
0x1769   :  { %3643 = vmatpush.msrb.mxu3 %v5060_v14  ;;  %3670 = vmatpush.msra.mxu0 %v5067_v22 }
0x176a   :  { %v3316_v0 = vsub.f32 %v3314_v63, %v3315_v53  ;;  %3416 = vmatmul.f32.vlgmr.msra.gmra.mxu1 %v3315_v53 }
0x176b   :  { %3645 = vmatpush.msrb.mxu3 %v5073_v20  ;;  %3701 = vmatpush.msra.mxu1 %v5051_v10 }
0x176c   :  { %v3317_v55 = vand.u32 4294901760, %v3316_v0  ;;  %3674 = vmatpush.msra.mxu0 %v5082_v15 }
0x176d   :  { %3647 = vmatpush.msrb.mxu3 %v5088_v34  ;;  %3703 = vmatpush.msra.mxu1 %v5060_v14 }
0x176e   :  { %3318 = vmatmul.f32.vlgmr.msrb.gmra.mxu2 %v3317_v55  ;;  %3474 = vmatmul.f32.vlgmr.msra.gmra.mxu3 %v3313_v62 }
0x176f   :  { %3612 = vmatpush.msrb.mxu2 %v5058_v11  ;;  %3705 = vmatpush.msra.mxu1 %v5073_v20 }
0x1770   :  { %3678 = vmatpush.msra.mxu0 %v5097_v39  ;;  %3805 = vmatpush.msra.mxu3 %v5092_v50 }
0x1771   :  { %3615 = vmatpush.msrb.mxu2 %v5071_v33  ;;  %3707 = vmatpush.msra.mxu1 %v5088_v34 }
0x1772   :  { %3682 = vmatpush.msra.mxu0 %v5112_v27  ;;  %3811 = vmatpush.msra.mxu3 %v5107_v51 }
0x1773   :  { %3618 = vmatpush.msrb.mxu2 %v5086_v61 }
0x1774   :  { %3817 = vmatpush.msra.mxu3 %v5117_v37 }
0x1775   :  { %3621 = vmatpush.msrb.mxu2 %v5101_v32 }
0x1776   :  { %3449 = vmatmul.f32.vlgmr.msra.gmra.mxu2 %v3313_v62  ;;  %3823 = vmatpush.msra.mxu3 %v5124_v38 }
0x1777   :  { %3772 = vmatpush.msra.mxu2 %v5051_v10 }
0x1779   :  { %3774 = vmatpush.msra.mxu2 %v5060_v14 }
0x177b   :  { %3776 = vmatpush.msra.mxu2 %v5073_v20 }
0x177d   :  { %3778 = vmatpush.msra.mxu2 %v5088_v34 }
0x17e5   :  { %v3390_v18 = vpop.f32.mrf.mxu0 }
0x17e7   :  { %v3417_v30 = vpop.f32.mrf.mxu1 }
0x17e9   :  { %v3360_v50 = vpop.f32.mrf.mxu3 }
0x17f1   :  { %v3319_v23 = vpop.f32.mrf.mxu2  ;;  %v3475_v44 = vpop.f32.mrf.mxu3 }
0x17f2   :  { %v3361_v51 = vadd.f32 %v3360_v50, %v3319_v23 }
0x17f4   :  { %v3391_v19 = vadd.f32 %v3390_v18, %v3361_v51 }
0x17f6   :  { %v3418_v37 = vadd.f32 %v3417_v30, %v3391_v19 }
0x17f9   :  { %v3450_v36 = vpop.f32.mrf.mxu2 }
0x17fa   :  { %v3451_v43 = vadd.f32 %v3450_v36, %v3418_v37 }
0x17fc   :  { %v3476_v59 = vadd.f32 %v3475_v44, %v3451_v43 }
0x17fe   :  { %v3479_v38 = vrot.slane %v3476_v59, 2 }
0x1800   :  { %v3481_v60 = vadd.f32 %v3479_v38, %v5178_v29 }
0x1802   :  { %4308 = vtanh.f32 %v3481_v60  ;;  %v4223_v3 = vmul.f32 -1.442695, %v3481_v60 }
0x1804   :  { %4310 = vpow2.f32 %v4223_v3 }
0x1808   :  { %v4309_v1 = vpop.eup %4308 }
0x1809   :  { %3507 = vrot.lane.b32.xlu1 %v4309_v1, %s4358_s2 }
0x180a   :  { %v4311_v12 = vpop.eup %4310 }
0x180b   :  { %v3485_v13 = vadd.f32 1.0, %v4311_v12 }
0x180d   :  { %4312 = vrcp.f32 %v3485_v13  ;;  %v3497_v9 = vand.u32 2147483648, %v3485_v13  ;;  %vm3491_vm5 = vweird.f32 %v3485_v13  ;;  %v3495_v41 = vand.u32 2147483647, %v3485_v13 }
0x180f   :  { %v3498_v48 = vor.u32 1.1754944e-38, %v3497_v9  ;;  %vm3496_vm2 = vcmp.eq.f32.partialorder %v3495_v41, 8.507059e+37 }
0x1813   :  { %v4313_v17 = vpop.eup %4312 }
0x1814   :  { %v3487_v24 = vmul.f32 %v4313_v17, %v3485_v13  ;;  %vm3492_vm3 = vweird.f32 %v4313_v17 }
0x1815   :  { %vm3493_vm6 = vmor %vm3491_vm5, %vm3492_vm3 }
0x1816   :  { %v3488_v4 = vsub.f32 1.0, %v3487_v24 }
0x1818   :  { %v3489_v6 = vmul.f32 %v4313_v17, %v3488_v4 }
0x181a   :  { %v3490_v7 = vadd.f32 %v4313_v17, %v3489_v6 }
0x181c   :  { %v3494_v29 = vsel %vm3493_vm6, %v4313_v17, %v3490_v7 }
0x181d   :  { %v3499_v16 = vsel %vm3496_vm2, %v3498_v48, %v3494_v29 }
0x181e   :  { %v3505_v49 = vmul.f32 %v3503_v54, %v3499_v16 }
0x187b   :  { %v3508_v21 = vpop.permute.xlu1 %3507 }
0x187c   :  { %v3510_v35 = vmul.f32 %v3508_v21, %v3499_v16 }
0x187e   :  { %3512 = vrot.lane.b32.xlu2 %v3510_v35, %s4359_s21 }
0x18d8   :  { %v3513_v45 = vpop.permute.xlu2 %3512 }
0x18d9   :  { %v5285_v5 = vadd.f32 %v3513_v45, %v3505_v49 }
0x18db   :  { %4314 = vtanh.f32 %v5285_v5  ;;  %v3735_v44 = vrot.slane %v5285_v5, 6 }
0x18e1   :  { %v4315_v42 = vpop.eup %4314 }
0x18e2   :  { %3518 = vrot.lane.b32.xlu0 %v4315_v42, %s4358_s2 }
0x1954   :  { %v3519_v2 = vpop.permute.xlu0 %3518 }
0x1955   :  { %v3521_v25 = vmul.f32 %v3519_v2, %v3499_v16 }
0x1957   :  { %v3523_v52 = vrot.slane %v3521_v25, 6 }
0x1959   :  { %3524 = vrot.lane.b32.xlu1 %v3523_v52, %s4359_s21 }
0x19cb   :  { %v3525_v28 = vpop.permute.xlu1 %3524 }
0x19cc   :  { %v3526_v26 = vsel %vm263_vm4, %v3525_v28, 0 }
0x19cd   :  { %v3548_v46 = vand.u32 4294901760, %v3526_v26 }
0x19cf   :  { %v3549_v47 = vsub.f32 %v3526_v26, %v3548_v46  ;;  %3594 = vmatmul.f32.vlgmr.msrb.gmra.mxu1 %v3548_v46 }
0x19d0   :  { %3872 = vmatpush.msrb.mxu1 %v5051_v10 }
0x19d1   :  { %v3550_v31 = vand.u32 4294901760, %v3549_v47  ;;  %3624 = vmatmul.f32.vlgmr.msrb.gmra.mxu2 %v3549_v47 }
0x19d2   :  { %3874 = vmatpush.msrb.mxu1 %v5060_v14  ;;  %3901 = vmatpush.msrb.mxu2 %v5067_v22 }
0x19d3   :  { %v3551_v58 = vsub.f32 %v3549_v47, %v3550_v31  ;;  %3651 = vmatmul.f32.vlgmr.msrb.gmra.mxu3 %v3550_v31 }
0x19d4   :  { %3876 = vmatpush.msrb.mxu1 %v5073_v20  ;;  %3932 = vmatpush.msrb.mxu3 %v5051_v10 }
0x19d5   :  { %v3552_v56 = vand.u32 4294901760, %v3551_v58  ;;  %3905 = vmatpush.msrb.mxu2 %v5082_v15 }
0x19d6   :  { %3878 = vmatpush.msrb.mxu1 %v5088_v34  ;;  %3934 = vmatpush.msrb.mxu3 %v5060_v14 }
0x19d7   :  { %3553 = vmatmul.f32.vlgmr.msrb.gmra.mxu0 %v3552_v56  ;;  %3709 = vmatmul.f32.vlgmr.msra.gmra.mxu1 %v3548_v46 }
0x19d8   :  { %3843 = vmatpush.msrb.mxu0 %v5058_v11  ;;  %3936 = vmatpush.msrb.mxu3 %v5073_v20 }
0x19d9   :  { %3909 = vmatpush.msrb.mxu2 %v5097_v39 }
0x19da   :  { %3846 = vmatpush.msrb.mxu0 %v5071_v33  ;;  %3938 = vmatpush.msrb.mxu3 %v5088_v34 }
0x19db   :  { %3913 = vmatpush.msrb.mxu2 %v5112_v27 }
0x19dc   :  { %3849 = vmatpush.msrb.mxu0 %v5086_v61 }
0x19de   :  { %3852 = vmatpush.msrb.mxu0 %v5101_v32 }
0x19df   :  { %3684 = vmatmul.f32.vlgmr.msra.gmra.mxu0 %v3548_v46 }
0x1a4c   :  { %v3595_v10 = vpop.f32.mrf.mxu1 }
0x1a54   :  { %v3554_v14 = vpop.f32.mrf.mxu0  ;;  %v3625_v15 = vpop.f32.mrf.mxu2 }
0x1a55   :  { %v3596_v22 = vadd.f32 %v3595_v10, %v3554_v14  ;;  %v3710_v62 = vpop.f32.mrf.mxu1 }
0x1a56   :  { %v3652_v8 = vpop.f32.mrf.mxu3 }
0x1a57   :  { %v3626_v11 = vadd.f32 %v3625_v15, %v3596_v22 }
0x1a59   :  { %v3653_v20 = vadd.f32 %v3652_v8, %v3626_v11 }
0x1a5c   :  { %v3685_v57 = vpop.f32.mrf.mxu0 }
0x1a5d   :  { %v3686_v39 = vadd.f32 %v3685_v57, %v3653_v20 }
0x1a5f   :  { %v3711_v33 = vadd.f32 %v3710_v62, %v3686_v39 }
0x1a61   :  { %v3713_v34 = vadd.f32 %v3711_v33, %v5176_v40 }
0x1a63   :  { %4316 = vtanh.f32 %v3713_v34  ;;  %v4224_v61 = vmul.f32 -1.442695, %v3713_v34 }
0x1a65   :  { %4318 = vpow2.f32 %v4224_v61  ;;  %v3990_v61 = vld [vmem:[%s5346_s8 + $0x10] sm:$0xff] }
0x1a69   :  { %v4317_v27 = vpop.eup %4316 }
0x1a6a   :  { %3739 = vrot.lane.b32.xlu2 %v4317_v27, %s4358_s2  ;;  %v3991_v27 = vld [vmem:[%s5346_s8 + $0x18] sm:$0xff] }
0x1a6b   :  { %v4319_v32 = vpop.eup %4318 }
0x1a6c   :  { %v3717_v63 = vadd.f32 1.0, %v4319_v32  ;;  %v4014_v32 = vand.u32 4294901760, %v3991_v27 }
0x1a6e   :  { %4320 = vrcp.f32 %v3717_v63  ;;  %v3729_v51 = vand.u32 2147483648, %v3717_v63  ;;  %vm3723_vm10 = vweird.f32 %v3717_v63  ;;  %v3727_v18 = vand.u32 2147483647, %v3717_v63  ;;  %4015 = vmatpush.msra.mxu0 %v4014_v32 }
0x1a70   :  { %v3730_v30 = vor.u32 1.1754944e-38, %v3729_v51  ;;  %vm3728_vm11 = vcmp.eq.f32.partialorder %v3727_v18, 8.507059e+37 }
0x1a74   :  { %v4321_v53 = vpop.eup %4320 }
0x1a75   :  { %v3719_v0 = vmul.f32 %v4321_v53, %v3717_v63  ;;  %vm3724_vm8 = vweird.f32 %v4321_v53  ;;  %v4016_v63 = vand.u32 4294901760, %v3990_v61 }
0x1a76   :  { %vm3725_vm9 = vmor %vm3723_vm10, %vm3724_vm8 }
0x1a77   :  { %v3720_v55 = vsub.f32 1.0, %v3719_v0  ;;  %v4050_v0 = vsub.f32 %v3990_v61, %v4016_v63  ;;  %4017 = vmatpush.msra.mxu0 %v4016_v63 }
0x1a79   :  { %v3721_v50 = vmul.f32 %v4321_v53, %v3720_v55 }
0x1a7b   :  { %v3722_v23 = vadd.f32 %v4321_v53, %v3721_v50  ;;  %v4051_v50 = vand.u32 4294901760, %v4050_v0 }
0x1a7d   :  { %v3726_v19 = vsel %vm3725_vm9, %v4321_v53, %v3722_v23  ;;  %v4044_v53 = vsub.f32 %v3991_v27, %v4014_v32  ;;  %v4052_v51 = vsub.f32 %v4050_v0, %v4051_v50 }
0x1a7e   :  { %v3731_v36 = vsel %vm3728_vm11, %v3730_v30, %v3726_v19 }
0x1a7f   :  { %v3737_v59 = vmul.f32 %v3735_v44, %v3731_v36  ;;  %v4045_v55 = vand.u32 4294901760, %v4044_v53  ;;  %v4053_v19 = vand.u32 4294901760, %v4052_v51 }
0x1a81   :  { %v4046_v23 = vsub.f32 %v4044_v53, %v4045_v55 }
0x1a83   :  { %v4047_v18 = vand.u32 4294901760, %v4046_v23 }
0x1a85   :  { %4048 = vmatpush.msra.mxu1 %v4047_v18 }
0x1a87   :  { %4054 = vmatpush.msra.mxu1 %v4053_v19 }
0x1ac4   :  { %v3740_v37 = vpop.permute.xlu2 %3739 }
0x1ac5   :  { %v3742_v43 = vmul.f32 %v3740_v37, %v3731_v36 }
0x1ac7   :  { %3744 = vrot.lane.b32.xlu0 %v3742_v43, %s4359_s21  ;;  %v3989_v43 = vld [vmem:[%s5346_s8 + $0x8] sm:$0xff] }
0x1ac8   :  { %v4018_v44 = vand.u32 4294901760, %v3989_v43 }
0x1aca   :  { %4019 = vmatpush.msra.mxu0 %v4018_v44 }
0x1b39   :  { %v3745_v38 = vpop.permute.xlu0 %3744 }
0x1b3a   :  { %v3747_v60 = vadd.f32 %v3745_v38, %v3737_v59  ;;  %v3988_v59 = vld [vmem:[%s5346_s8] sm:$0xff]  ;;  %v4056_v38 = vsub.f32 %v3989_v43, %v4018_v44 }
0x1b3c   :  { %4322 = vtanh.f32 %v3747_v60  ;;  %v3969_v57 = vrot.slane %v3747_v60, 6  ;;  %v4020_v60 = vand.u32 4294901760, %v3988_v59 }
0x1b3e   :  { %4021 = vmatpush.msra.mxu0 %v4020_v60 }
0x1b42   :  { %v4323_v1 = vpop.eup %4322 }
0x1b43   :  { %3750 = vrot.lane.b32.xlu1 %v4323_v1, %s4358_s2  ;;  %v4057_v1 = vand.u32 4294901760, %v4056_v38 }
0x1bb5   :  { %v3751_v3 = vpop.permute.xlu1 %3750 }
0x1bb6   :  { %v3753_v12 = vmul.f32 %v3751_v3, %v3731_v36  ;;  %v4062_v3 = vsub.f32 %v3988_v59, %v4020_v60 }
0x1bb8   :  { %3755 = vrot.lane.b32.xlu2 %v3753_v12, %s4359_s21  ;;  %v4058_v12 = vsub.f32 %v4056_v38, %v4057_v1 }
0x1c12   :  { %v3756_v13 = vpop.permute.xlu2 %3755 }
0x1c13   :  { %v3757_v17 = vsel %vm263_vm4, %v3756_v13, 0  ;;  %v4063_v13 = vand.u32 4294901760, %v4062_v3 }
0x1c14   :  { %v3779_v24 = vand.u32 4294901760, %v3757_v17 }
0x1c16   :  { %v3780_v4 = vsub.f32 %v3757_v17, %v3779_v24  ;;  %3825 = vmatmul.f32.vlgmr.msra.gmra.mxu3 %v3779_v24  ;;  %v4059_v17 = vand.u32 4294901760, %v4058_v12 }
0x1c17   :  { %4115 = vmatpush.msra.mxu3 %v4014_v32 }
0x1c18   :  { %v3781_v6 = vand.u32 4294901760, %v3780_v4  ;;  %3855 = vmatmul.f32.vlgmr.msrb.gmra.mxu0 %v3780_v4  ;;  %4060 = vmatpush.msra.mxu1 %v4059_v17 }
0x1c19   :  { %4117 = vmatpush.msra.mxu3 %v4016_v63  ;;  %4144 = vmatpush.msrb.mxu0 %v4045_v55 }
0x1c1a   :  { %v3782_v7 = vsub.f32 %v3780_v4, %v3781_v6  ;;  %3882 = vmatmul.f32.vlgmr.msrb.gmra.mxu1 %v3781_v6 }
0x1c1b   :  { %4119 = vmatpush.msra.mxu3 %v4018_v44  ;;  %4148 = vmatpush.msrb.mxu0 %v4051_v50 }
0x1c1c   :  { %v3783_v9 = vand.u32 4294901760, %v3782_v7 }
0x1c1d   :  { %4121 = vmatpush.msra.mxu3 %v4020_v60  ;;  %4152 = vmatpush.msrb.mxu0 %v4057_v1 }
0x1c1e   :  { %3784 = vmatmul.f32.vlgmr.msra.gmra.mxu2 %v3783_v9  ;;  %3940 = vmatmul.f32.vlgmr.msrb.gmra.mxu3 %v3779_v24 }
0x1c1f   :  { %4086 = vmatpush.msra.mxu2 %v4044_v53  ;;  %4156 = vmatpush.msrb.mxu0 %v4063_v13 }
0x1c21   :  { %4089 = vmatpush.msra.mxu2 %v4050_v0 }
0x1c23   :  { %4092 = vmatpush.msra.mxu2 %v4056_v38 }
0x1c25   :  { %4095 = vmatpush.msra.mxu2 %v4062_v3 }
0x1c26   :  { %3915 = vmatmul.f32.vlgmr.msrb.gmra.mxu2 %v3779_v24  ;;  %v4064_v24 = vsub.f32 %v4062_v3, %v4063_v13 }
0x1c28   :  { %v4065_v4 = vand.u32 4294901760, %v4064_v24 }
0x1c2a   :  { %4066 = vmatpush.msra.mxu1 %v4065_v4 }
0x1c2c   :  { %4175 = vmatpush.msrb.mxu1 %v4014_v32 }
0x1c2e   :  { %4177 = vmatpush.msrb.mxu1 %v4016_v63 }
0x1c30   :  { %4179 = vmatpush.msrb.mxu1 %v4018_v44 }
0x1c32   :  { %4181 = vmatpush.msrb.mxu1 %v4020_v60 }
0x1c95   :  { %v3856_v21 = vpop.f32.mrf.mxu0 }
0x1c97   :  { %v3883_v35 = vpop.f32.mrf.mxu1 }
0x1c99   :  { %v3826_v41 = vpop.f32.mrf.mxu3 }
0x1ca1   :  { %v3785_v29 = vpop.f32.mrf.mxu2  ;;  %v3941_v5 = vpop.f32.mrf.mxu3 }
0x1ca2   :  { %v3827_v48 = vadd.f32 %v3826_v41, %v3785_v29 }
0x1ca4   :  { %v3857_v16 = vadd.f32 %v3856_v21, %v3827_v48 }
0x1ca6   :  { %v3884_v54 = vadd.f32 %v3883_v35, %v3857_v16  ;;  %v4235_v16 = vld [vmem:[%s5347_s9] ss:$0 sm:$0xff] }
0x1ca9   :  { %v3916_v49 = vpop.f32.mrf.mxu2 }
0x1caa   :  { %v3917_v45 = vadd.f32 %v3916_v49, %v3884_v54 }
0x1cac   :  { %v3942_v42 = vadd.f32 %v3941_v5, %v3917_v45 }
0x1cae   :  { %v3945_v2 = vrot.slane %v3942_v42, 6 }
0x1cb0   :  { %v3947_v25 = vadd.f32 %v3945_v2, %v5176_v40 }
0x1cb2   :  { %4324 = vtanh.f32 %v3947_v25  ;;  %v4225_v28 = vmul.f32 -1.442695, %v3947_v25 }
0x1cb4   :  { %4326 = vpow2.f32 %v4225_v28 }
0x1cb8   :  { %v4325_v52 = vpop.eup %4324 }
0x1cb9   :  { %3973 = vrot.lane.b32.xlu0 %v4325_v52, %s4358_s2 }
0x1cba   :  { %v4327_v26 = vpop.eup %4326 }
0x1cbb   :  { %v3951_v46 = vadd.f32 1.0, %v4327_v26 }
0x1cbd   :  { %4328 = vrcp.f32 %v3951_v46  ;;  %v3963_v14 = vand.u32 2147483648, %v3951_v46  ;;  %vm3957_vm13 = vweird.f32 %v3951_v46  ;;  %v3961_v22 = vand.u32 2147483647, %v3951_v46 }
0x1cbf   :  { %v3964_v15 = vor.u32 1.1754944e-38, %v3963_v14  ;;  %vm3962_vm14 = vcmp.eq.f32.partialorder %v3961_v22, 8.507059e+37 }
0x1cc3   :  { %v4329_v47 = vpop.eup %4328 }
0x1cc4   :  { %v3953_v31 = vmul.f32 %v4329_v47, %v3951_v46  ;;  %vm3958_vm12 = vweird.f32 %v4329_v47 }
0x1cc5   :  { %vm3959_vm7 = vmor %vm3957_vm13, %vm3958_vm12 }
0x1cc6   :  { %v3954_v58 = vsub.f32 1.0, %v3953_v31 }
0x1cc8   :  { %v3955_v56 = vmul.f32 %v4329_v47, %v3954_v58 }
0x1cca   :  { %v3956_v10 = vadd.f32 %v4329_v47, %v3955_v56 }
0x1ccc   :  { %v3960_v40 = vsel %vm3959_vm7, %v4329_v47, %v3956_v10 }
0x1ccd   :  { %v3965_v8 = vsel %vm3962_vm14, %v3964_v15, %v3960_v40 }
0x1cce   :  { %v3971_v39 = vmul.f32 %v3969_v57, %v3965_v8 }
0x1d2b   :  { %v3974_v11 = vpop.permute.xlu0 %3973 }
0x1d2c   :  { %v3976_v20 = vmul.f32 %v3974_v11, %v3965_v8 }
0x1d2e   :  { %3978 = vrot.lane.b32.xlu1 %v3976_v20, %s4359_s21 }
0x1da0   :  { %v3979_v62 = vpop.permute.xlu1 %3978 }
0x1da1   :  { %v3981_v33 = vadd.f32 %v3979_v62, %v3971_v39 }
0x1da3   :  { %4330 = vtanh.f32 %v3981_v33 }
0x1da9   :  { %v4331_v34 = vpop.eup %4330 }
0x1daa   :  { %3984 = vrot.lane.b32.xlu2 %v4331_v34, %s4358_s2 }
0x1e04   :  { %v3985_v30 = vpop.permute.xlu2 %3984 }
0x1e05   :  { %v3987_v37 = vmul.f32 %v3985_v30, %v3965_v8 }
0x1e07   :  { %v3997_v36 = vrot.slane %v3987_v37, 2 }
0x1e09   :  { %3998 = vrot.lane.b32.xlu0 %v3997_v36, %s4359_s21 }
0x1e7b   :  { %v3999_v6 = vpop.permute.xlu0 %3998 }
0x1e7c   :  { %v4000_v7 = vsel %vm263_vm4, %v3999_v6, 0  ;;  %vm4187_vm4 = vcmask 17408  }
0x1e7d   :  { %v4022_v9 = vand.u32 4294901760, %v4000_v7 }
0x1e7f   :  { %v4023_v41 = vsub.f32 %v4000_v7, %v4022_v9  ;;  %4068 = vmatmul.f32.vlgmr.msra.gmra.mxu1 %v4022_v9 }
0x1e81   :  { %v4024_v29 = vand.u32 4294901760, %v4023_v41  ;;  %4098 = vmatmul.f32.vlgmr.msra.gmra.mxu2 %v4023_v41 }
0x1e83   :  { %v4025_v48 = vsub.f32 %v4023_v41, %v4024_v29  ;;  %4125 = vmatmul.f32.vlgmr.msra.gmra.mxu3 %v4024_v29 }
0x1e85   :  { %v4026_v21 = vand.u32 4294901760, %v4025_v48 }
0x1e87   :  { %4027 = vmatmul.f32.vlgmr.msra.gmra.mxu0 %v4026_v21  ;;  %4183 = vmatmul.f32.vlgmr.msrb.gmra.mxu1 %v4022_v9 }
0x1e8f   :  { %4158 = vmatmul.f32.vlgmr.msrb.gmra.mxu0 %v4022_v9 }
0x1efc   :  { %v4069_v35 = vpop.f32.mrf.mxu1 }
0x1f04   :  { %v4028_v54 = vpop.f32.mrf.mxu0  ;;  %v4099_v5 = vpop.f32.mrf.mxu2 }
0x1f05   :  { %v4029_v49 = vadd.f32 %v4235_v16, %v4028_v54  ;;  %v4184_v26 = vpop.f32.mrf.mxu1 }
0x1f06   :  { %v4126_v2 = vpop.f32.mrf.mxu3 }
0x1f07   :  { %v4070_v45 = vadd.f32 %v4069_v35, %v4029_v49 }
0x1f09   :  { %v4100_v42 = vadd.f32 %v4099_v5, %v4070_v45 }
0x1f0b   :  { %v4127_v25 = vadd.f32 %v4126_v2, %v4100_v42 }
0x1f0c   :  { %v4159_v52 = vpop.f32.mrf.mxu0 }
0x1f0d   :  { %v4160_v28 = vadd.f32 %v4159_v52, %v4127_v25 }
0x1f0f   :  { %v4185_v46 = vadd.f32 %v4184_v26, %v4160_v28 }
0x1f11   :  { %4188 = vst.msk [vmem:[#allocation2] sm:$0x3] %vm4187_vm4, %v4185_v46 }
0x1f12   :  { %4199 = dma.vmem_to_hbm [thread:$0]  %s4195_s11, 32, %s4197_s3, [#allocation3]  }
0x1f13   :  { %4356 = dma.done.wait [#allocation3], 32  }
0x1f14   :  { %4357 = vsyncadd [#allocation3], 4294967264 }
0x1f15   :  { %4204 = vsyncpa [#allocation3], 1 }

</bundles_post_ra>
